<compile_context>
chip_gen: v6e
topology: v6e:2x2x1
jax: 0.10.0
libtpu: 0.0.40
codegen_flags: <defaults>
</compile_context>

<pallas_src>
import functools

import jax
import jax.numpy as jnp
from jax import lax
from jax.experimental import pallas as pl
from jax.experimental.pallas import tpu as pltpu

NUM_GROUPS = 16
GN_EPS = 1e-5


# ---------------------------------------------------------------------------
# shared in-kernel helpers
# ---------------------------------------------------------------------------
def _elu(y):
    return jnp.where(y > 0, y, jnp.exp(jnp.minimum(y, 0.0)) - 1.0)


def _gn_elu(h, gamma, beta, G, *, num_groups):
    """Two-pass GroupNorm (per sample, over all spatial x channels-in-group) + ELU.

    h: (S, C) f32; gamma/beta: (1, C); G: (C, C) block-diagonal group-membership
    matrix (the lane->group reduce + broadcast-back as one tiny MXU matmul).
    """
    S, C = h.shape
    cpg = C // num_groups
    count = float(S * cpg)
    sum_c = jnp.sum(h, axis=0, keepdims=True)                          # (1, C)
    mean = jnp.dot(sum_c, G, preferred_element_type=jnp.float32) / count
    d = h - mean
    ssq_c = jnp.sum(d * d, axis=0, keepdims=True)                      # (1, C)
    var = jnp.dot(ssq_c, G, preferred_element_type=jnp.float32) / count
    inv = lax.rsqrt(var + GN_EPS)
    return _elu(d * (inv * gamma) + beta)


def group_matrix(C, groups):
    gid = jnp.arange(C) // (C // groups)
    return (gid[:, None] == gid[None, :]).astype(jnp.float32)


# ---------------------------------------------------------------------------
# kernel A: down_conv (2x2x2, stride 2, im2col'ed to one matmul) + GN + ELU
# ---------------------------------------------------------------------------
def _down_gn_elu_kernel(xp_ref, w_ref, b_ref, gamma_ref, beta_ref, g_ref,
                        o_ref, *, num_groups):
    h = jnp.dot(xp_ref[...], w_ref[...], preferred_element_type=jnp.float32)
    h = h + b_ref[...]
    o_ref[...] = _gn_elu(h, gamma_ref[...], beta_ref[...], g_ref[...],
                         num_groups=num_groups)


def down_conv_gn_elu(xp_patches, w, b, gamma, beta, G):
    # xp_patches: (N, So, K=8*Cin) bf16 -> (N, So, C) f32
    N, S, K = xp_patches.shape
    C = w.shape[1]
    kern = functools.partial(_down_gn_elu_kernel, num_groups=NUM_GROUPS)
    return pl.pallas_call(
        kern,
        out_shape=jax.ShapeDtypeStruct((N, S, C), jnp.float32),
        grid=(N,),
        in_specs=[
            pl.BlockSpec((None, S, K), lambda n: (n, 0, 0)),
            pl.BlockSpec((K, C), lambda n: (0, 0)),
            pl.BlockSpec((1, C), lambda n: (0, 0)),
            pl.BlockSpec((1, C), lambda n: (0, 0)),
            pl.BlockSpec((1, C), lambda n: (0, 0)),
            pl.BlockSpec((C, C), lambda n: (0, 0)),
        ],
        out_specs=pl.BlockSpec((None, S, C), lambda n: (n, 0, 0)),
        compiler_params=pltpu.CompilerParams(
            dimension_semantics=("parallel",)),
    )(xp_patches, w, b, gamma, beta, G)


# ---------------------------------------------------------------------------
# kernel B: 5x5x5 "same" conv + GN + ELU (+ optional fused residual add + ELU)
# ---------------------------------------------------------------------------
def _conv5_gn_elu_kernel(xp_ref, w_ref, b_ref, gamma_ref, beta_ref, g_ref,
                         *rest, D, H, W, num_groups, fuse_residual):
    if fuse_residual:
        res_ref, o_ref, xs_ref, acc_ref = rest
    else:
        res_ref = None
        o_ref, xs_ref, acc_ref = rest

    C = xp_ref.shape[-1]
    S = D * H * W

    # (1) hoist the kw (sublane-axis) shift out of the tap loop: 5 shifted
    #     copies into a kw-stacked bf16 scratch instead of 125 relayouts.
    for kw in range(5):
        xs_ref[:, :, :, pl.ds(kw * C, C)] = (
            xp_ref[:, :, pl.ds(kw, W), :].astype(jnp.bfloat16))

    # (2) 25 statically-unrolled taps; kd/kh slice only leading (un-tiled)
    #     axes -> no relayout; each dot contracts K = 5*C on the MXU.
    for kd in range(5):
        for kh in range(5):
            t = kd * 5 + kh
            slab = xs_ref[pl.ds(kd, D), pl.ds(kh, H), :, :].reshape(S, 5 * C)
            p = jnp.dot(slab, w_ref[t], preferred_element_type=jnp.float32)
            if t == 0:
                acc_ref[...] = p
            else:
                acc_ref[...] += p

    h = acc_ref[...] + b_ref[...]
    y = _gn_elu(h, gamma_ref[...], beta_ref[...], g_ref[...],
                num_groups=num_groups)
    if fuse_residual:
        y = _elu(y + res_ref[...])          # relu2(add(out, down)) fused here
    o_ref[...] = y


def conv5_gn_elu(x_ndhwc, w_packed, b, gamma, beta, G, residual=None):
    # x_ndhwc: (N, D, H, W, C); w_packed: (25, 5*C, C) bf16; residual: (N, S, C) or None
    N, D, H, W, C = x_ndhwc.shape
    S = D * H * W
    # TODO(synk): replace this padded-HBM pass with in-kernel halo DMA
    # (memory_space=pl.ANY) once S is tiled for production volumes.
    xp = jnp.pad(x_ndhwc, ((0, 0), (2, 2), (2, 2), (2, 2), (0, 0)))
    fuse = residual is not None
    kern = functools.partial(_conv5_gn_elu_kernel, D=D, H=H, W=W,
                             num_groups=NUM_GROUPS, fuse_residual=fuse)
    in_specs = [
        pl.BlockSpec((None, D + 4, H + 4, W + 4, C),
                     lambda n: (n, 0, 0, 0, 0)),
        pl.BlockSpec((25, 5 * C, C), lambda n: (0, 0, 0)),
        pl.BlockSpec((1, C), lambda n: (0, 0)),
        pl.BlockSpec((1, C), lambda n: (0, 0)),
        pl.BlockSpec((1, C), lambda n: (0, 0)),
        pl.BlockSpec((C, C), lambda n: (0, 0)),
    ]
    args = [xp, w_packed, b, gamma, beta, G]
    if fuse:
        in_specs.append(pl.BlockSpec((None, S, C), lambda n: (n, 0, 0)))
        args.append(residual)
    return pl.pallas_call(
        kern,
        out_shape=jax.ShapeDtypeStruct((N, S, C), jnp.float32),
        grid=(N,),
        in_specs=in_specs,
        out_specs=pl.BlockSpec((None, S, C), lambda n: (n, 0, 0)),
        scratch_shapes=[
            pltpu.VMEM((D + 4, H + 4, W, 5 * C), jnp.bfloat16),  # kw-stacked slab
            pltpu.VMEM((S, C), jnp.float32),                     # f32 accumulator
        ],
        compiler_params=pltpu.CompilerParams(
            dimension_semantics=("parallel",)),
    )(*args)


# ---------------------------------------------------------------------------
# glue: full DownTransition forward
# ---------------------------------------------------------------------------
def down_transition_pallas(x, params, stride=2):
    # x: (N, inChans, D, H, W) NCDHW, like PyTorch.
    if stride != 2:
        # TODO(synk): general stride for the k=2 down_conv (VNet uses stride=2).
        raise NotImplementedError("only stride=2 is implemented")
    N, Cin, D, H, W = x.shape
    Do, Ho, Wo = D // 2, H // 2, W // 2
    So = Do * Ho * Wo
    C = params["down_w"].shape[1]          # outChans = 2 * inChans

    # NCDHW -> channels-last with the 2x2x2/stride-2 im2col folded into the
    # single layout-conversion transpose needed at the PyTorch boundary anyway.
    xp = x.reshape(N, Cin, Do, 2, Ho, 2, Wo, 2)
    xp = jnp.transpose(xp, (0, 2, 4, 6, 3, 5, 7, 1)).reshape(N, So, 8 * Cin)
    xp = xp.astype(jnp.bfloat16)           # MXU operand; halves its DMA

    G = group_matrix(C, NUM_GROUPS)
    down = down_conv_gn_elu(
        xp, params["down_w"], params["down_b"][None, :],
        params["down_gamma"][None, :], params["down_beta"][None, :], G)

    # TODO(synk): training-mode nn.Dropout3d (do1) not implemented; eval identity.
    cur = down
    n_convs = len(params["conv_w_packed"])
    for i in range(n_convs):
        res = down if i == n_convs - 1 else None   # fuse relu2(add) into last LUConv
        cur = conv5_gn_elu(
            cur.reshape(N, Do, Ho, Wo, C), params["conv_w_packed"][i],
            params["conv_b"][i][None, :], params["conv_gamma"][i][None, :],
            params["conv_beta"][i][None, :], G, residual=res)
    if n_convs == 0:
        cur = jax.nn.elu(down + down)
    return jnp.transpose(cur.reshape(N, Do, Ho, Wo, C), (0, 4, 1, 2, 3))


# ---------------------------------------------------------------------------
# deterministic parameter init (torch layouts, repacked for the kernels)
# ---------------------------------------------------------------------------
def init_params(key, inChans, nConvs):
    outChans = 2 * inChans
    keys = jax.random.split(key, 4 + 4 * nConvs)
    # down_conv torch weight: (outChans, inChans, 2, 2, 2)
    dw_t = 0.1 * jax.random.normal(keys[0], (outChans, inChans, 2, 2, 2),
                                   jnp.float32)
    dw_dhwio = jnp.transpose(dw_t, (2, 3, 4, 1, 0))             # (2,2,2,Ci,Co)
    down_w = dw_dhwio.reshape(8 * inChans, outChans).astype(jnp.bfloat16)
    down_b = 0.1 * jax.random.normal(keys[1], (outChans,), jnp.float32)
    down_gamma = 1.0 + 0.1 * jax.random.normal(keys[2], (outChans,), jnp.float32)
    down_beta = 0.1 * jax.random.normal(keys[3], (outChans,), jnp.float32)

    conv_w_dhwio, conv_w_packed = [], []
    conv_b, conv_gamma, conv_beta = [], [], []
    for i in range(nConvs):
        ks = keys[4 + 4 * i: 8 + 4 * i]
        # LUConv torch weight: (Cout, Cin, 5, 5, 5)
        w_t = 0.02 * jax.random.normal(ks[0], (outChans, outChans, 5, 5, 5),
                                       jnp.float32)
        w_dhwio = jnp.transpose(w_t, (2, 3, 4, 1, 0))           # (kd,kh,kw,Ci,Co)
        conv_w_dhwio.append(w_dhwio)
        # pack (kd,kh)->tap axis and (kw,Ci)->contraction axis; bf16 MXU operand
        conv_w_packed.append(
            w_dhwio.reshape(25, 5 * outChans, outChans).astype(jnp.bfloat16))
        conv_b.append(0.1 * jax.random.normal(ks[1], (outChans,), jnp.float32))
        conv_gamma.append(
            1.0 + 0.1 * jax.random.normal(ks[2], (outChans,), jnp.float32))
        conv_beta.append(0.1 * jax.random.normal(ks[3], (outChans,), jnp.float32))

    return dict(down_w=down_w, down_w_dhwio=dw_dhwio, down_b=down_b,
                down_gamma=down_gamma, down_beta=down_beta,
                conv_w_dhwio=conv_w_dhwio, conv_w_packed=conv_w_packed,
                conv_b=conv_b, conv_gamma=conv_gamma, conv_beta=conv_beta)


# ---------------------------------------------------------------------------
# pure-JAX reference (f32, HIGHEST precision) for numerical sanity check
# ---------------------------------------------------------------------------
def _ref_groupnorm(h, gamma, beta, groups):
    N, D, H, W, C = h.shape
    hg = h.reshape(N, D * H * W, groups, C // groups)
    mean = hg.mean(axis=(1, 3), keepdims=True)
    var = ((hg - mean) ** 2).mean(axis=(1, 3), keepdims=True)
    hn = (hg - mean) / jnp.sqrt(var + GN_EPS)
    return hn.reshape(N, D, H, W, C) * gamma + beta


def ref_forward(x, params):
    xl = jnp.transpose(x, (0, 2, 3, 4, 1))                      # NDHWC
    d = lax.conv_general_dilated(
        xl, params["down_w_dhwio"], (2, 2, 2), "VALID",
        dimension_numbers=("NDHWC", "DHWIO", "NDHWC"),
        precision=lax.Precision.HIGHEST) + params["down_b"]
    down = jax.nn.elu(_ref_groupnorm(d, params["down_gamma"],
                                     params["down_beta"], NUM_GROUPS))
    cur = down
    for i in range(len(params["conv_w_dhwio"])):
        c = lax.conv_general_dilated(
            cur, params["conv_w_dhwio"][i], (1, 1, 1), "SAME",
            dimension_numbers=("NDHWC", "DHWIO", "NDHWC"),
            precision=lax.Precision.HIGHEST) + params["conv_b"][i]
        cur = jax.nn.elu(_ref_groupnorm(c, params["conv_gamma"][i],
                                        params["conv_beta"][i], NUM_GROUPS))
    out = jax.nn.elu(cur + down)
    return jnp.transpose(out, (0, 4, 1, 2, 3))


# ---------------------------------------------------------------------------
if __name__ == "__main__":
    # VNet-style stage: inChans=64 -> outChans=128 (= TPU lane width), nConvs=2.
    inChans, nConvs, stride = 64, 2, 2
    outChans = 2 * inChans
    N, D, H, W = 2, 16, 16, 16

    key = jax.random.PRNGKey(0)
    kx, kp = jax.random.split(key)
    x = jax.random.normal(kx, (N, inChans, D, H, W), jnp.float32)
    params = init_params(kp, inChans, nConvs)

    out = jax.block_until_ready(down_transition_pallas(x, params, stride=stride))
    assert out.shape == (N, outChans, D // 2, H // 2, W // 2), out.shape

    ref = ref_forward(x, params)
    err = float(jnp.max(jnp.abs(out - ref)))
    # bf16 MXU operands (f32 accumulation) through three conv layers.
    assert jnp.allclose(out, ref, rtol=5e-2, atol=5e-2), f"max abs err {err}"

    print("KERNEL_OK")
</pallas_src>

<mosaic_0001>
module attributes {stable_mosaic.version = 11 : i64} {
  func.func @_down_gn_elu_kernel(%arg0: i32, %arg1: memref<1x512x512xbf16, #tpu.memory_space<vmem>>, %arg2: memref<512x128xbf16, #tpu.memory_space<vmem>>, %arg3: memref<1x128xf32, #tpu.memory_space<vmem>>, %arg4: memref<1x128xf32, #tpu.memory_space<vmem>>, %arg5: memref<1x128xf32, #tpu.memory_space<vmem>>, %arg6: memref<128x128xf32, #tpu.memory_space<vmem>>, %arg7: memref<1x512x128xf32, #tpu.memory_space<vmem>>) attributes {dimension_semantics = [#tpu.dimension_semantics<parallel>], iteration_bounds = array<i64: 2>, scalar_prefetch = 0 : i64, scratch_operands = 0 : i64, tpu.core_type = #tpu.core_type<tc>, window_params = [{transform_indices = @transform_0, window_bounds = array<i64: 1, 512, 512>}, {pipeline_mode = #tpu.pipeline_mode<synchronous>, transform_indices = @transform_1, window_bounds = array<i64: 512, 128>}, {pipeline_mode = #tpu.pipeline_mode<synchronous>, transform_indices = @transform_2, window_bounds = array<i64: 1, 128>}, {pipeline_mode = #tpu.pipeline_mode<synchronous>, transform_indices = @transform_3, window_bounds = array<i64: 1, 128>}, {pipeline_mode = #tpu.pipeline_mode<synchronous>, transform_indices = @transform_4, window_bounds = array<i64: 1, 128>}, {pipeline_mode = #tpu.pipeline_mode<synchronous>, transform_indices = @transform_5, window_bounds = array<i64: 128, 128>}, {transform_indices = @transform_6, window_bounds = array<i64: 1, 512, 128>}]} {
    %c0 = arith.constant 0 : index
    %c0_0 = arith.constant 0 : index
    %c0_1 = arith.constant 0 : index
    %0 = vector.load %arg1[%c0, %c0_0, %c0_1] : memref<1x512x512xbf16, #tpu.memory_space<vmem>>, vector<1x512x512xbf16>
    %1 = vector.shape_cast %0 : vector<1x512x512xbf16> to vector<512x512xbf16>
    %c0_2 = arith.constant 0 : index
    %c0_3 = arith.constant 0 : index
    %2 = vector.load %arg2[%c0_2, %c0_3] : memref<512x128xbf16, #tpu.memory_space<vmem>>, vector<512x128xbf16>
    %cst = arith.constant dense<0.000000e+00> : vector<512x128xf32>
    %3 = tpu.matmul %1, %2, %cst {dimension_numbers = #tpu.dot_dimension_numbers<[1], [0], [0], [1], [0, 0, 1, 1], [], []>} : vector<512x512xbf16>, vector<512x128xbf16>, vector<512x128xf32> -> vector<512x128xf32>
    %c0_4 = arith.constant 0 : index
    %c0_5 = arith.constant 0 : index
    %4 = vector.load %arg3[%c0_4, %c0_5] : memref<1x128xf32, #tpu.memory_space<vmem>>, vector<1x128xf32>
    %5 = vector.broadcast %4 : vector<1x128xf32> to vector<512x128xf32>
    %6 = arith.addf %3, %5 : vector<512x128xf32>
    %c0_6 = arith.constant 0 : index
    %c0_7 = arith.constant 0 : index
    %7 = vector.load %arg4[%c0_6, %c0_7] : memref<1x128xf32, #tpu.memory_space<vmem>>, vector<1x128xf32>
    %c0_8 = arith.constant 0 : index
    %c0_9 = arith.constant 0 : index
    %8 = vector.load %arg5[%c0_8, %c0_9] : memref<1x128xf32, #tpu.memory_space<vmem>>, vector<1x128xf32>
    %c0_10 = arith.constant 0 : index
    %c0_11 = arith.constant 0 : index
    %9 = vector.load %arg6[%c0_10, %c0_11] : memref<128x128xf32, #tpu.memory_space<vmem>>, vector<128x128xf32>
    %cst_12 = arith.constant dense<0.000000e+00> : vector<128xf32>
    %10 = vector.multi_reduction <add>, %6, %cst_12 [0] : vector<512x128xf32> to vector<128xf32>
    %11 = vector.shape_cast %10 : vector<128xf32> to vector<1x128xf32>
    %cst_13 = arith.constant dense<0.000000e+00> : vector<1x128xf32>
    %12 = tpu.matmul %11, %9, %cst_13 {dimension_numbers = #tpu.dot_dimension_numbers<[1], [0], [0], [1], [0, 0, 1, 1], [], []>} : vector<1x128xf32>, vector<128x128xf32>, vector<1x128xf32> -> vector<1x128xf32>
    %cst_14 = arith.constant 4.096000e+03 : f32
    %13 = vector.broadcast %cst_14 : f32 to vector<1x128xf32>
    %14 = arith.divf %12, %13 : vector<1x128xf32>
    %15 = vector.broadcast %14 : vector<1x128xf32> to vector<512x128xf32>
    %16 = arith.subf %6, %15 : vector<512x128xf32>
    %17 = arith.mulf %16, %16 : vector<512x128xf32>
    %cst_15 = arith.constant dense<0.000000e+00> : vector<128xf32>
    %18 = vector.multi_reduction <add>, %17, %cst_15 [0] : vector<512x128xf32> to vector<128xf32>
    %19 = vector.shape_cast %18 : vector<128xf32> to vector<1x128xf32>
    %cst_16 = arith.constant dense<0.000000e+00> : vector<1x128xf32>
    %20 = tpu.matmul %19, %9, %cst_16 {dimension_numbers = #tpu.dot_dimension_numbers<[1], [0], [0], [1], [0, 0, 1, 1], [], []>} : vector<1x128xf32>, vector<128x128xf32>, vector<1x128xf32> -> vector<1x128xf32>
    %cst_17 = arith.constant 4.096000e+03 : f32
    %21 = vector.broadcast %cst_17 : f32 to vector<1x128xf32>
    %22 = arith.divf %20, %21 : vector<1x128xf32>
    %cst_18 = arith.constant 9.99999974E-6 : f32
    %23 = vector.broadcast %cst_18 : f32 to vector<1x128xf32>
    %24 = arith.addf %22, %23 : vector<1x128xf32>
    %25 = math.rsqrt %24 : vector<1x128xf32>
    %26 = arith.mulf %25, %7 : vector<1x128xf32>
    %27 = vector.broadcast %26 : vector<1x128xf32> to vector<512x128xf32>
    %28 = arith.mulf %16, %27 : vector<512x128xf32>
    %29 = vector.broadcast %8 : vector<1x128xf32> to vector<512x128xf32>
    %30 = arith.addf %28, %29 : vector<512x128xf32>
    %cst_19 = arith.constant 0.000000e+00 : f32
    %31 = vector.broadcast %cst_19 : f32 to vector<512x128xf32>
    %32 = arith.cmpf ogt, %30, %31 : vector<512x128xf32>
    %cst_20 = arith.constant 0.000000e+00 : f32
    %33 = vector.broadcast %cst_20 : f32 to vector<512x128xf32>
    %34 = arith.minimumf %30, %33 : vector<512x128xf32>
    %35 = math.exp %34 : vector<512x128xf32>
    %cst_21 = arith.constant 1.000000e+00 : f32
    %36 = vector.broadcast %cst_21 : f32 to vector<512x128xf32>
    %37 = arith.subf %35, %36 : vector<512x128xf32>
    %38 = arith.select %32, %30, %37 : vector<512x128xi1>, vector<512x128xf32>
    %c0_22 = arith.constant 0 : index
    %c0_23 = arith.constant 0 : index
    %c0_24 = arith.constant 0 : index
    %39 = vector.load %arg7[%c0_22, %c0_23, %c0_24] : memref<1x512x128xf32, #tpu.memory_space<vmem>>, vector<1x512x128xf32>
    %40 = vector.shape_cast %39 : vector<1x512x128xf32> to vector<512x128xf32>
    %41 = vector.shape_cast %38 : vector<512x128xf32> to vector<1x512x128xf32>
    tpu.vector_store %arg7[%c0_22, %c0_23, %c0_24], %41 {strides = array<i32>} : memref<1x512x128xf32, #tpu.memory_space<vmem>>, vector<1x512x128xf32>,
    return
  }
  func.func @transform_0(%arg0: i32) -> (i32, i32, i32) {
    %c0_i32 = arith.constant 0 : i32
    %c0_i32_0 = arith.constant 0 : i32
    %c0_i32_1 = arith.constant 0 : i32
    return %arg0, %c0_i32, %c0_i32_0 : i32, i32, i32
  }
  func.func @transform_1(%arg0: i32) -> (i32, i32) {
    %c0_i32 = arith.constant 0 : i32
    %c0_i32_0 = arith.constant 0 : i32
    %c0_i32_1 = arith.constant 0 : i32
    return %c0_i32, %c0_i32_0 : i32, i32
  }
  func.func @transform_2(%arg0: i32) -> (i32, i32) {
    %c0_i32 = arith.constant 0 : i32
    %c0_i32_0 = arith.constant 0 : i32
    %c0_i32_1 = arith.constant 0 : i32
    return %c0_i32, %c0_i32_0 : i32, i32
  }
  func.func @transform_3(%arg0: i32) -> (i32, i32) {
    %c0_i32 = arith.constant 0 : i32
    %c0_i32_0 = arith.constant 0 : i32
    %c0_i32_1 = arith.constant 0 : i32
    return %c0_i32, %c0_i32_0 : i32, i32
  }
  func.func @transform_4(%arg0: i32) -> (i32, i32) {
    %c0_i32 = arith.constant 0 : i32
    %c0_i32_0 = arith.constant 0 : i32
    %c0_i32_1 = arith.constant 0 : i32
    return %c0_i32, %c0_i32_0 : i32, i32
  }
  func.func @transform_5(%arg0: i32) -> (i32, i32) {
    %c0_i32 = arith.constant 0 : i32
    %c0_i32_0 = arith.constant 0 : i32
    %c0_i32_1 = arith.constant 0 : i32
    return %c0_i32, %c0_i32_0 : i32, i32
  }
  func.func @transform_6(%arg0: i32) -> (i32, i32, i32) {
    %c0_i32 = arith.constant 0 : i32
    %c0_i32_0 = arith.constant 0 : i32
    %c0_i32_1 = arith.constant 0 : i32
    return %arg0, %c0_i32, %c0_i32_0 : i32, i32, i32
  }
}

</mosaic_0001>

<bundles_post_ra>
// kernel: tpu_custom_call.1
= control target key start
LH: loop header
LB: loop body
LE: loop exit
PB: predicated region body
PF: predicated region fallthrough
CT: control target
= control target key end

     0   :  { %11 = vsyncpa [#allocation3], 0  ;;  %s6155_s0 = inlined_call_operand.hbm [shape: bf16[2,512,512], index: 0, kind: input, shape index: {}]   ;;  %s6156_s1 = inlined_call_operand.hbm [shape: bf16[512,128], index: 1, kind: input, shape index: {}]   ;;  %s6157_s2 = inlined_call_operand.vmem [shape: f32[1,128], index: 2, kind: input, shape index: {}]   ;;  %s6158_s3 = inlined_call_operand.vmem [shape: f32[1,128], index: 3, kind: input, shape index: {}]   ;;  %s6159_s4 = inlined_call_operand.vmem [shape: f32[1,128], index: 4, kind: input, shape index: {}]   ;;  %s6160_s5 = inlined_call_operand.hbm [shape: f32[128,128], index: 5, kind: input, shape index: {}]   ;;  %s6161_s6 = inlined_call_operand.hbm [shape: f32[2,512,128], index: 6, kind: output, shape index: {}]  }
   0x1   :  { %13 = vsyncpa [#allocation3 + $0x1], 0 }
   0x2   :  { %14 = vsyncpa [#allocation6], 0 }
   0x3   :  { %15 = vsyncpa [#allocation4], 0 }
   0x4   :  { %17 = vsyncpa [#allocation4 + $0x1], 0  ;;  %s4018_s21 = smov 0   ;;  %s4020_s22 = smov 0  }
   0x5   :  { %s4022_s23 = smov 0   ;;  %s4024_s24 = smov 0  }
   0x6 LB: > { %s4039_s25 = sadd.s32 4294967295, %s3966_s24   ;;  %s3035_s26 = sadd.s32 4294967294, %s3966_s24   ;;  %s3966_s24 = sphi %s4024_s24, %s6539_s24   ;;  %s3962_s23 = sphi %s4022_s23, %s6538_s23   ;;  %s3958_s22 = sphi %s4020_s22, %s6537_s22   ;;  %s3954_s21 = sphi %s4018_s21, %s6536_s21  }
   0x7   : > { %p43_p0 = scmp.ne.s32.totalorder %s3958_s22, %s3954_s21  ;;  %p6162_p1 = scmp.eq.s32.totalorder %s4039_s25, 0 }
   0x8   : > { %p178_p3 = scmp.eq.s32.totalorder %s3035_s26, 1  ;;  %p3036_p5 = scmp.ge.s32.totalorder %s3966_s24, 1 }
   0x9   : > { %p4048_p4 = por %p6162_p1, %p43_p0  ;;  %p185_p7 = scmp.lt.s32.totalorder %s3966_s24, 3 }
   0xa   : > { %p4053_p6 = por %p178_p3, %p43_p0  ;;  %s3968_s30 = smov [#allocation5]  }
   0xb   : > { %s6280_s27 = scalar_select %p4048_p4, 1, 0 }
   0xc   : > { %s6281_s28 = scalar_select %p4053_p6, 1, 0 }
   0xd   : > { %p4058_p8 = pnand %p3036_p5, %p185_p7  ;;  %s197_s7 = sshll.u32 %s3968_s30, 4  ;;  %s198_s7 = int_to_ptr.vmem [resolvable:$true] %s197_s7 }
   0xe   : > { %s3969_s9 = smov [#allocation7]   ;;  %s3829_s11 = scalar_lea.vmem %s198_s7, 4096 }
   0xf   : > { %s6282_s29 = scalar_select %p4058_p8, 1, 0 }
  0x10   : > { %p3397_p9 = pneg %p4058_p8  ;;  %s219_s10 = sshll.u32 %s3969_s9, 4  ;;  %s220_s10 = int_to_ptr.vmem [resolvable:$true] %s219_s10 }
  0x11   : > { %p3830_p13 = scmp.ne.s32.totalorder %s198_s7, %s3829_s11  ;;  %p3837_p5 = scmp.lt.s32.totalorder %s198_s7, %s198_s7 }
  0x12   : > { %p4067_p11 = pnand %p3397_p9, %p6162_p1  ;;  %p3838_p7 = scmp.lt.s32.totalorder %s3829_s11, %s3829_s11 }
  0x14   : > { %p3820_p12 = pneg %p4067_p11  ;;  %p3839_p10 = por %p3838_p7, %p3837_p5 }
  0x16   : > { %p3832_p0 = pnand %p3830_p13, %p3820_p12 }
  0x18   : > { %p3833_p3 = pneg %p3832_p0 }
  0x1a   : > { %p3840_p9 = pnand %p3839_p10, %p3833_p3 }
  0x1c   : > { %3843 = shalt.err (!%p3840_p9)
}
  0x1d   : > { %s3970_s12 = smov 64   ;;  %s3971_s13 = smov 4  }
  0x1e   : > { %3400 = dma.hbm_to_vmem [thread:$0]  (!%p4067_p11), %s6156_s1, 4096, %s198_s7, [#allocation6], %s3970_s12, %s3970_s12, %s3971_s13  }
  0x1f   : > { %s3855_s16 = scalar_lea.vmem %s220_s10, 2048  ;;  %p3863_p2 = scmp.lt.s32.totalorder %s220_s10, %s220_s10 }
  0x20   : > { %p3856_p1 = scmp.ne.s32.totalorder %s220_s10, %s3855_s16  ;;  %p3864_p6 = scmp.lt.s32.totalorder %s3855_s16, %s3855_s16 }
  0x22   : > { %p3858_p13 = pnand %p3856_p1, %p3820_p12  ;;  %p3865_p5 = por %p3864_p6, %p3863_p2 }
  0x24   : > { %p3859_p0 = pneg %p3858_p13 }
  0x26   : > { %p3866_p10 = pnand %p3865_p5, %p3859_p0 }
  0x28   : > { %3869 = shalt.err (!%p3866_p10)
}
  0x29   : > { %s3972_s17 = smov 128   ;;  %s3973_s18 = smov 8  }
  0x2a   : > { %3403 = dma.hbm_to_vmem [thread:$0]  (!%p4067_p11), %s6160_s5, 2048, %s220_s10, [#allocation6], %s3972_s17, %s3972_s17, %s3973_s18  }
  0x2b   : > { %s4090_s26 = sadd.s32 1, %s3966_s24   ;;  %s30_s7 = sadd.s32 1, %s3962_s23 }
  0x2c   : > { %s27_s30 = ssub.s32 %s3966_s24, %s4090_s26  ;;  %p37_p2 = scmp.ne.s32.totalorder %s3962_s23, %s3958_s22 }
  0x2d   : > { %p28_p1 = scmp.eq.s32.totalorder %s27_s30, 0  ;;  %p38_p6 = scmp.eq.s32.totalorder %s3966_s24, 0 }
  0x2e   : > { %p6284_p3 = scmp.eq.s32.totalorder %s4039_s25, 1  ;;  %p3414_p9 = scmp.lt.s32.totalorder %s3966_s24, 2 }
  0x2f   : > { %s4099_s9 = scalar_select %p28_p1, %s3962_s23, %s30_s7  }
  0x30   : > { %p39_p12 = por %p38_p6, %p37_p2  ;;  %p4103_p7 = por %p6284_p3, %p37_p2 }
  0x31   : > { %s233_s8 = sand.u32 1, %s3962_s23   ;;  %s3279_s10 = sshll.u32 %s3966_s24, 14 }
  0x32   : > { %s6285_s11 = scalar_select %p4103_p7, 1, 0 }
  0x33   : > { %s3040_s12 = sshll.u32 %s233_s8, 10  ;;  %s4113_s15 = scalar_lea.hbm %s6155_s0, %s3279_s10 }
  0x34   : > { %s237_s16 = scalar_lea.vmem [#allocation2], %s3040_s12  ;;  %p4117_p11 = pnand %p3414_p9, %p39_p12 }
  0x35   : > { %s244_s17 = sshll.u32 %s237_s16, 4  ;;  %s4121_s19 = scalar_lea.sflag [#allocation3], %s233_s8  ;;  %s4115_s17 = int_to_ptr.vmem [resolvable:$true] %s244_s17 }
  0x36   : > { %s3870_s20 = scalar_lea.hbm %s4113_s15, 16384  ;;  %p3872_p0 = pneg %p4117_p11 }
  0x37   : > { %p3871_p13 = scmp.ne.s32.totalorder %s4113_s15, %s3870_s20  ;;  %s3875_s12 = scalar_lea.hbm %s6155_s0, 32768 }
  0x38   : > { %p3876_p1 = scmp.lt.s32.totalorder %s4113_s15, %s6155_s0  ;;  %p3877_p2 = scmp.lt.s32.totalorder %s3875_s12, %s3870_s20 }
  0x39   : > { %p3873_p5 = pnand %p3872_p0, %p3871_p13 }
  0x3a   : > { %p3878_p6 = por %p3877_p2, %p3876_p1 }
  0x3b   : > { %p3874_p10 = pneg %p3873_p5 }
  0x3d   : > { %p3879_p12 = pnand %p3878_p6, %p3874_p10 }
  0x3f   : > { %3882 = shalt.err (!%p3879_p12)
}
  0x40   : > { %s3883_s8 = scalar_lea.vmem %s4115_s17, 16384  ;;  %s3974_s14 = smov [#allocation2]  }
  0x41   : > { %p3884_p3 = scmp.ne.s32.totalorder %s4115_s17, %s3883_s8  ;;  %s3888_s16 = sshll.u32 %s3974_s14, 4  ;;  %s3889_s16 = int_to_ptr.vmem [resolvable:$false] %s3888_s16 }
  0x42   : > { %s3890_s30 = scalar_lea.vmem %s3889_s16, 32768  ;;  %p3891_p5 = scmp.lt.s32.totalorder %s4115_s17, %s3889_s16 }
  0x43   : > { %p3886_p9 = pnand %p3884_p3, %p3872_p0  ;;  %p3892_p7 = scmp.lt.s32.totalorder %s3890_s30, %s3883_s8 }
  0x45   : > { %p3887_p13 = pneg %p3886_p9  ;;  %p3893_p4 = por %p3892_p7, %p3891_p5 }
  0x47   : > { %p3894_p8 = pnand %p3893_p4, %p3887_p13 }
  0x49   : > { %3897 = shalt.err (!%p3894_p8)
}
  0x4a   : > { %s3975_s20 = smov 256   ;;  %s3976_s7 = smov 16  }
  0x4b   : > { %3407 = dma.hbm_to_vmem [thread:$0]  (!%p4117_p11), %s4113_s15, 16384, %s4115_s17, %s4121_s19, %s3975_s20, %s3975_s20, %s3976_s7  }
  0x4c   : > { %p6287_p0 = scmp.ne.s32.totalorder %s6282_s29, 0 }
  0x4e   : > { %256 = sbr.rel (%p6287_p0) target bundleno = 1325 (0x52d), region = 44 }
  0x53   : > { %s4145_s12 = sand.u32 1, %s3958_s22   ;;  %p6288_p4 = scmp.ne.s32.totalorder %s6280_s27, 0 }
  0x54   : > { %s3044_s10 = sshll.u32 %s4145_s12, 10  ;;  %s259_s13 = scalar_lea.sflag [#allocation3], %s4145_s12 }
  0x55   : > { %s4149_s8 = scalar_lea.vmem [#allocation2], %s3044_s10 }
  0x56   : > { %3941 = dma.done.wait (%p6288_p4), %s259_s13, 16384  }
  0x57   : > { %3943 = vsyncadd (%p6288_p4), %s259_s13, 4294950912  ;;  %p6289_p8 = scmp.eq.s32.totalorder %s4039_s25, 0 }
  0x59   : > { %3945 = dma.done.wait (%p6289_p8), [#allocation6], 6144   ;;  %p6290_p7 = pmov %p6289_p8 }
  0x5a   : > { %v3977_v0 = vmov 0   ;;  %v3463_v1 = vld [vmem:[#allocation5 + $0x38] sm:$0xff]   ;;  %v3465_v3 = vld [vmem:[#allocation5 + $0x30] sm:$0xff]   ;;  %v3467_v5 = vld [vmem:[#allocation5 + $0x28] sm:$0xff]   ;;  %vm3979_vm0 = vmmov 0   ;;  %s3047_s30 = sshll.u32 %s4145_s12, 9 }
  0x5b   : > { %3947 = vsyncadd (%p6290_p7), [#allocation6], 4294961152  ;;  %1331 = vmatprep.subr.bf16.mxu0 %v3977_v0  ;;  %1620 = vmatprep.subr.bf16.mxu1 %v3977_v0  ;;  %v3464_v2 = vld [vmem:[#allocation5 + $0xb8] sm:$0xff]   ;;  %v3466_v4 = vld [vmem:[#allocation5 + $0xb0] sm:$0xff]   ;;  %s5781_s20 = scalar_lea.vmem [#allocation8], %s3047_s30  ;;  %s3280_s7 = sshll.u32 %s4039_s25, 13 }
  0x5c   : > { %1332 = vmatpush1.bf16.msra.mxu0 %v3463_v1  ;;  %1621 = vmatpush1.bf16.msra.mxu1 %v3464_v2  ;;  %v3468_v6 = vld [vmem:[#allocation5 + $0xa8] sm:$0xff]   ;;  %v3469_v7 = vld [vmem:[#allocation5 + $0x20] sm:$0xff]   ;;  %v3471_v9 = vld [vmem:[#allocation5 + $0x18] sm:$0xff]   ;;  %s2943_s10 = sshll.u32 %s5781_s20, 4  ;;  %s2930_s27 = scalar_lea.sflag [#allocation4], %s4145_s12  ;;  %s6106_s10 = int_to_ptr.vmem [resolvable:$true] %s2943_s10 }
  0x5d   : > { %1333 = vmatprep.subr.bf16.mxu0 %v3977_v0  ;;  %1622 = vmatprep.subr.bf16.mxu1 %v3977_v0  ;;  %v3470_v8 = vld [vmem:[#allocation5 + $0xa0] sm:$0xff]   ;;  %v3472_v10 = vld [vmem:[#allocation5 + $0x98] sm:$0xff]   ;;  %v3473_v11 = vld [vmem:[#allocation5 + $0x10] sm:$0xff]   ;;  %s3898_s29 = scalar_lea.vmem %s6106_s10, 8192  ;;  %p6533_p10 = scmp.ne.s32.totalorder %s6285_s11, 0 }
  0x5e   : > { %v3474_v12 = vld [vmem:[#allocation5 + $0x90] sm:$0xff]   ;;  %v3475_v13 = vld [vmem:[#allocation5 + $0x8] sm:$0xff]   ;;  %v3477_v15 = vld [vmem:[#allocation5] sm:$0xff]   ;;  %p3899_p11 = scmp.ne.s32.totalorder %s6106_s10, %s3898_s29  ;;  %s3980_s15 = smov [#allocation8]  }
  0x5f   : > { %v3476_v14 = vld [vmem:[#allocation5 + $0x88] sm:$0xff]   ;;  %v3478_v16 = vld [vmem:[#allocation5 + $0x80] sm:$0xff]   ;;  %v3479_v17 = vld [vmem:[#allocation5 + $0x78] sm:$0xff]   ;;  %s3902_s17 = sshll.u32 %s3980_s15, 4  ;;  %s3903_s17 = int_to_ptr.vmem [resolvable:$false] %s3902_s17 }
  0x60   : > { %1334 = vmatpush1.bf16.msra.mxu0 %v3465_v3  ;;  %1623 = vmatpush1.bf16.msra.mxu1 %v3466_v4  ;;  %v3480_v18 = vld [vmem:[#allocation5 + $0xf8] sm:$0xff]   ;;  %v3497_v19 = vld [vmem:[%s4149_s8 + $0x4] ss:$16 sps:$4 sm:$0xff]   ;;  %v3483_v23 = vld [vmem:[#allocation5 + $0x68] sm:$0xff]   ;;  %p3900_p1 = pnand %p3899_p11, %p6533_p10  ;;  %s3904_s18 = scalar_lea.vmem %s3903_s17, 16384 }
  0x61   : > { %1335 = vmatprep.subr.bf16.mxu0 %v3977_v0  ;;  %1624 = vmatprep.subr.bf16.mxu1 %v3977_v0  ;;  %v3481_v20 = vld [vmem:[#allocation5 + $0x70] sm:$0xff]   ;;  %v3500_v21 = vld [vmem:[%s4149_s8 + $0xc] ss:$16 sps:$4 sm:$0xff]   ;;  %v3485_v25 = vld [vmem:[#allocation5 + $0x60] sm:$0xff]   ;;  %p3905_p6 = scmp.lt.s32.totalorder %s6106_s10, %s3903_s17  ;;  %p3906_p12 = scmp.lt.s32.totalorder %s3904_s18, %s3898_s29 }
  0x62   : > { %v3482_v22 = vld [vmem:[#allocation5 + $0xf0] sm:$0xff]   ;;  %1363 = vmatprep.mubr.bf16.mxu0 %v3497_v19  ;;  %1652 = vmatprep.mubr.bf16.mxu1 %v3500_v21  ;;  %v3484_v24 = vld [vmem:[#allocation5 + $0xe8] sm:$0xff]   ;;  %v3486_v26 = vld [vmem:[#allocation5 + $0xe0] sm:$0xff]   ;;  %p3901_p2 = pneg %p3900_p1 }
  0x63   : > { %v3487_v27 = vld [vmem:[#allocation5 + $0x58] sm:$0xff]   ;;  %v3489_v29 = vld [vmem:[#allocation5 + $0x50] sm:$0xff]   ;;  %v3491_v31 = vld [vmem:[#allocation5 + $0x48] sm:$0xff]   ;;  %p3907_p3 = por %p3906_p12, %p3905_p6 }
  0x64   : > { %1336 = vmatpush1.bf16.msra.mxu0 %v3467_v5  ;;  %1625 = vmatpush1.bf16.msra.mxu1 %v3468_v6  ;;  %v3488_v28 = vld [vmem:[#allocation5 + $0xd8] sm:$0xff]   ;;  %v3490_v30 = vld [vmem:[#allocation5 + $0xd0] sm:$0xff]   ;;  %v3492_v32 = vld [vmem:[#allocation5 + $0xc8] sm:$0xff]  }
  0x65   : > { %1337 = vmatprep.subr.bf16.mxu0 %v3977_v0  ;;  %1626 = vmatprep.subr.bf16.mxu1 %v3977_v0  ;;  %v3493_v33 = vld [vmem:[#allocation5 + $0x40] sm:$0xff]   ;;  %v3498_v36 = vld [vmem:[%s4149_s8 + $0x8] ss:$16 sps:$4 sm:$0xff]   ;;  %v3503_v38 = vld [vmem:[%s4149_s8 + $0x2c] ss:$16 sps:$4 sm:$0xff]   ;;  %p3908_p9 = pnand %p3907_p3, %p3901_p2 }
  0x66   : > { %v3494_v34 = vld [vmem:[#allocation5 + $0xc0] sm:$0xff]   ;;  %v3506_v40 = vld [vmem:[%s4149_s8 + $0x28] ss:$16 sps:$4 sm:$0xff]   ;;  %v3509_v42 = vld [vmem:[%s4149_s8 + $0x4c] ss:$16 sps:$4 sm:$0xff]  }
  0x67   : > { %v3495_v35 = vld [vmem:[%s4149_s8] ss:$16 sps:$4 sm:$0xff]   ;;  %v3501_v37 = vld [vmem:[%s4149_s8 + $0x24] ss:$16 sps:$4 sm:$0xff]   ;;  %v3512_v44 = vld [vmem:[%s4149_s8 + $0x48] ss:$16 sps:$4 sm:$0xff]  }
  0x68   : > { %1338 = vmatpush1.bf16.msra.mxu0 %v3469_v7  ;;  %1627 = vmatpush1.bf16.msra.mxu1 %v3470_v8  ;;  %v3505_v39 = vld [vmem:[%s4149_s8 + $0x20] ss:$16 sps:$4 sm:$0xff]   ;;  %v3507_v41 = vld [vmem:[%s4149_s8 + $0x44] ss:$16 sps:$4 sm:$0xff]   ;;  %v3515_v46 = vld [vmem:[%s4149_s8 + $0x6c] ss:$16 sps:$4 sm:$0xff]  }
  0x69   : > { %1339 = vmatprep.subr.bf16.mxu0 %v3977_v0  ;;  %1628 = vmatprep.subr.bf16.mxu1 %v3977_v0  ;;  %v3511_v43 = vld [vmem:[%s4149_s8 + $0x40] ss:$16 sps:$4 sm:$0xff]   ;;  %v3513_v45 = vld [vmem:[%s4149_s8 + $0x64] ss:$16 sps:$4 sm:$0xff]   ;;  %v3518_v48 = vld [vmem:[%s4149_s8 + $0x68] ss:$16 sps:$4 sm:$0xff]  }
  0x6a   : > { %v3517_v47 = vld [vmem:[%s4149_s8 + $0x60] ss:$16 sps:$4 sm:$0xff]   ;;  %v3519_v49 = vld [vmem:[%s4149_s8 + $0x84] ss:$16 sps:$4 sm:$0xff]   ;;  %v3521_v50 = vld [vmem:[%s4149_s8 + $0x8c] ss:$16 sps:$4 sm:$0xff]  }
  0x6b   : > { %v3523_v51 = vld [vmem:[%s4149_s8 + $0x80] ss:$16 sps:$4 sm:$0xff]   ;;  %v3524_v52 = vld [vmem:[%s4149_s8 + $0x88] ss:$16 sps:$4 sm:$0xff]   ;;  %v3525_v53 = vld [vmem:[%s4149_s8 + $0xa4] ss:$16 sps:$4 sm:$0xff]  }
  0x6c   : > { %1340 = vmatpush1.bf16.msra.mxu0 %v3471_v9  ;;  %1629 = vmatpush1.bf16.msra.mxu1 %v3472_v10  ;;  %v3527_v54 = vld [vmem:[%s4149_s8 + $0xac] ss:$16 sps:$4 sm:$0xff]   ;;  %v3529_v55 = vld [vmem:[%s4149_s8 + $0xa0] ss:$16 sps:$4 sm:$0xff]   ;;  %v3530_v56 = vld [vmem:[%s4149_s8 + $0xa8] ss:$16 sps:$4 sm:$0xff]  }
  0x6d   : > { %1341 = vmatprep.subr.bf16.mxu0 %v3977_v0  ;;  %1630 = vmatprep.subr.bf16.mxu1 %v3977_v0  ;;  %v3531_v57 = vld [vmem:[%s4149_s8 + $0xc4] ss:$16 sps:$4 sm:$0xff]   ;;  %v3533_v58 = vld [vmem:[%s4149_s8 + $0xcc] ss:$16 sps:$4 sm:$0xff]   ;;  %v3535_v59 = vld [vmem:[%s4149_s8 + $0xc0] ss:$16 sps:$4 sm:$0xff]  }
  0x6e   : > { %v3536_v60 = vld [vmem:[%s4149_s8 + $0xc8] ss:$16 sps:$4 sm:$0xff]   ;;  %v3537_v61 = vld [vmem:[%s4149_s8 + $0xe4] ss:$16 sps:$4 sm:$0xff]   ;;  %v3539_v62 = vld [vmem:[%s4149_s8 + $0xec] ss:$16 sps:$4 sm:$0xff]  }
  0x6f   : > { %v3541_v63 = vld [vmem:[%s4149_s8 + $0xe0] ss:$16 sps:$4 sm:$0xff]   ;;  %v3543_v1 = vld [vmem:[%s4149_s8 + $0x104] ss:$16 sps:$4 sm:$0xff]   ;;  %v3545_v2 = vld [vmem:[%s4149_s8 + $0x10c] ss:$16 sps:$4 sm:$0xff]  }
  0x70   : > { %1342 = vmatpush1.bf16.msra.mxu0 %v3473_v11  ;;  %1631 = vmatpush1.bf16.msra.mxu1 %v3474_v12  ;;  %v3547_v3 = vld [vmem:[%s4149_s8 + $0x100] ss:$16 sps:$4 sm:$0xff]   ;;  %v3548_v4 = vld [vmem:[%s4149_s8 + $0x108] ss:$16 sps:$4 sm:$0xff]   ;;  %v3549_v5 = vld [vmem:[%s4149_s8 + $0x124] ss:$16 sps:$4 sm:$0xff]  }
  0x71   : > { %1343 = vmatprep.subr.bf16.mxu0 %v3977_v0  ;;  %1632 = vmatprep.subr.bf16.mxu1 %v3977_v0  ;;  %v3551_v6 = vld [vmem:[%s4149_s8 + $0x12c] ss:$16 sps:$4 sm:$0xff]   ;;  %v3553_v7 = vld [vmem:[%s4149_s8 + $0x120] ss:$16 sps:$4 sm:$0xff]   ;;  %v3554_v8 = vld [vmem:[%s4149_s8 + $0x128] ss:$16 sps:$4 sm:$0xff]  }
  0x72   : > { %v3555_v9 = vld [vmem:[%s4149_s8 + $0x144] ss:$16 sps:$4 sm:$0xff]   ;;  %v3557_v10 = vld [vmem:[%s4149_s8 + $0x14c] ss:$16 sps:$4 sm:$0xff]   ;;  %v3559_v11 = vld [vmem:[%s4149_s8 + $0x140] ss:$16 sps:$4 sm:$0xff]  }
  0x73   : > { %v3560_v12 = vld [vmem:[%s4149_s8 + $0x148] ss:$16 sps:$4 sm:$0xff]   ;;  %v3567_v19 = vld [vmem:[%s4149_s8 + $0x184] ss:$16 sps:$4 sm:$0xff]   ;;  %v3571_v21 = vld [vmem:[%s4149_s8 + $0x180] ss:$16 sps:$4 sm:$0xff]  }
  0x74   : > { %1344 = vmatpush1.bf16.msra.mxu0 %v3475_v13  ;;  %1633 = vmatpush1.bf16.msra.mxu1 %v3476_v14  ;;  %v3561_v13 = vld [vmem:[%s4149_s8 + $0x164] ss:$16 sps:$4 sm:$0xff]   ;;  %v3563_v14 = vld [vmem:[%s4149_s8 + $0x16c] ss:$16 sps:$4 sm:$0xff]  }
  0x75   : > { %1345 = vmatprep.subr.bf16.mxu0 %v3977_v0  ;;  %1634 = vmatprep.subr.bf16.mxu1 %v3977_v0 }
  0x78   : > { %1346 = vmatpush1.bf16.msra.mxu0 %v3477_v15  ;;  %1635 = vmatpush1.bf16.msra.mxu1 %v3478_v16  ;;  %v1926_v15 = vld [vmem:[#allocation7 + $0x78] sm:$0xff]  ;;  %v3978_v16 = vmov 0.0  }
  0x79   : > { %1347 = vmatprep.subr.bf16.mxu0 %v3977_v0  ;;  %1636 = vmatprep.subr.bf16.mxu1 %v3977_v0 }
  0x7c   : > { %1348 = vmatpush2.bf16.msra.mxu0 %v3479_v17  ;;  %1637 = vmatpush2.bf16.msra.mxu1 %v3480_v18  ;;  %v3565_v17 = vld [vmem:[%s4149_s8 + $0x160] ss:$16 sps:$4 sm:$0xff]   ;;  %v3566_v18 = vld [vmem:[%s4149_s8 + $0x168] ss:$16 sps:$4 sm:$0xff]  }
  0x7d   : > { %1349 = vmatprep.subr.bf16.mxu0 %v3977_v0  ;;  %1638 = vmatprep.subr.bf16.mxu1 %v3977_v0 }
  0x80   : > { %1350 = vmatpush2.bf16.msra.mxu0 %v3481_v20  ;;  %1639 = vmatpush2.bf16.msra.mxu1 %v3482_v22  ;;  %v3569_v20 = vld [vmem:[%s4149_s8 + $0x18c] ss:$16 sps:$4 sm:$0xff]   ;;  %v3572_v22 = vld [vmem:[%s4149_s8 + $0x188] ss:$16 sps:$4 sm:$0xff]  }
  0x81   : > { %1351 = vmatprep.subr.bf16.mxu0 %v3977_v0  ;;  %1640 = vmatprep.subr.bf16.mxu1 %v3977_v0 }
  0x84   : > { %1352 = vmatpush2.bf16.msra.mxu0 %v3483_v23  ;;  %1641 = vmatpush2.bf16.msra.mxu1 %v3484_v24  ;;  %v3573_v23 = vld [vmem:[%s4149_s8 + $0x1a4] ss:$16 sps:$4 sm:$0xff]   ;;  %v3575_v24 = vld [vmem:[%s4149_s8 + $0x1ac] ss:$16 sps:$4 sm:$0xff]  }
  0x85   : > { %1353 = vmatprep.subr.bf16.mxu0 %v3977_v0  ;;  %1642 = vmatprep.subr.bf16.mxu1 %v3977_v0 }
  0x88   : > { %1354 = vmatpush2.bf16.msra.mxu0 %v3485_v25  ;;  %1643 = vmatpush2.bf16.msra.mxu1 %v3486_v26  ;;  %v1925_v25 = vld [vmem:[#allocation7 + $0x70] sm:$0xff] }
  0x89   : > { %1355 = vmatprep.subr.bf16.mxu0 %v3977_v0  ;;  %1644 = vmatprep.subr.bf16.mxu1 %v3977_v0  ;;  %v3577_v26 = vld [vmem:[%s4149_s8 + $0x1a0] ss:$16 sps:$4 sm:$0xff]  }
  0x8c   : > { %1356 = vmatpush2.bf16.msra.mxu0 %v3487_v27  ;;  %1645 = vmatpush2.bf16.msra.mxu1 %v3488_v28  ;;  %v3578_v27 = vld [vmem:[%s4149_s8 + $0x1a8] ss:$16 sps:$4 sm:$0xff]   ;;  %v3579_v28 = vld [vmem:[%s4149_s8 + $0x1c4] ss:$16 sps:$4 sm:$0xff]  }
  0x8d   : > { %1357 = vmatprep.subr.bf16.mxu0 %v3977_v0  ;;  %1646 = vmatprep.subr.bf16.mxu1 %v3977_v0 }
  0x90   : > { %1358 = vmatpush2.bf16.msra.mxu0 %v3489_v29  ;;  %1647 = vmatpush2.bf16.msra.mxu1 %v3490_v30  ;;  %v3581_v29 = vld [vmem:[%s4149_s8 + $0x1cc] ss:$16 sps:$4 sm:$0xff]   ;;  %v3583_v30 = vld [vmem:[%s4149_s8 + $0x1c0] ss:$16 sps:$4 sm:$0xff]  }
  0x91   : > { %1359 = vmatprep.subr.bf16.mxu0 %v3977_v0  ;;  %1648 = vmatprep.subr.bf16.mxu1 %v3977_v0 }
  0x94   : > { %1360 = vmatpush2.bf16.msra.mxu0 %v3491_v31  ;;  %1649 = vmatpush2.bf16.msra.mxu1 %v3492_v32  ;;  %v3584_v31 = vld [vmem:[%s4149_s8 + $0x1c8] ss:$16 sps:$4 sm:$0xff]   ;;  %v3585_v32 = vld [vmem:[%s4149_s8 + $0x1e4] ss:$16 sps:$4 sm:$0xff]  }
  0x95   : > { %1361 = vmatprep.subr.bf16.mxu0 %v3977_v0  ;;  %1650 = vmatprep.subr.bf16.mxu1 %v3977_v0  ;;  %v3542_v0 = vld [vmem:[%s4149_s8 + $0xe8] ss:$16 sps:$4 sm:$0xff]  }
  0x98   : > { %1362 = vmatpush2.bf16.msra.mxu0 %v3493_v33  ;;  %1651 = vmatpush2.bf16.msra.mxu1 %v3494_v34  ;;  %v3587_v33 = vld [vmem:[%s4149_s8 + $0x1ec] ss:$16 sps:$4 sm:$0xff]  }
  0x99   : > { %3315 = vmatprep.subr.mxu0 %v3978_v16  ;;  %3350 = vmatprep.subr.mxu1 %v3978_v16  ;;  %v1924_v34 = vld [vmem:[#allocation7 + $0x68] sm:$0xff] }
  0x9b   : > { %1364 = vmatmul.mubr.bf16.vlgmr.msra.gmra.mxu0 %v3495_v35  ;;  %1653 = vmatmul.mubr.bf16.vlgmr.msra.gmra.mxu1 %v3498_v36  ;;  %v3589_v35 = vld [vmem:[%s4149_s8 + $0x1e0] ss:$16 sps:$4 sm:$0xff]   ;;  %v3590_v36 = vld [vmem:[%s4149_s8 + $0x1e8] ss:$16 sps:$4 sm:$0xff]  }
  0x9c   : > { %1371 = vmatprep.mubr.bf16.mxu0 %v3501_v37  ;;  %1660 = vmatprep.mubr.bf16.mxu1 %v3503_v38  ;;  %v3591_v37 = vld [vmem:[%s4149_s8 + $0x204] ss:$16 sps:$4 sm:$0xff]   ;;  %v3593_v38 = vld [vmem:[%s4149_s8 + $0x20c] ss:$16 sps:$4 sm:$0xff]  }
  0x9d   : > { %3316 = vmatpush3.msra.mxu0 %v1926_v15  ;;  %3351 = vmatpush3.msra.mxu1 %v1926_v15  ;;  %v3647_v15 = vld [vmem:[%s4149_s8 + $0x32c] ss:$16 sps:$4 sm:$0xff]  }
  0x9e   : > { %3317 = vmatprep.subr.mxu0 %v3978_v16  ;;  %3352 = vmatprep.subr.mxu1 %v3978_v16 }
  0x9f   : > { %3318 = vmatpush3.msra.mxu0 %v1925_v25  ;;  %3353 = vmatpush3.msra.mxu1 %v1925_v25  ;;  %v3649_v25 = vld [vmem:[%s4149_s8 + $0x320] ss:$16 sps:$4 sm:$0xff]  }
  0xa0   : > { %3319 = vmatprep.subr.mxu0 %v3978_v16  ;;  %3354 = vmatprep.subr.mxu1 %v3978_v16 }
  0xa1   : > { %3320 = vmatpush3.msra.mxu0 %v1924_v34  ;;  %3355 = vmatpush3.msra.mxu1 %v1924_v34 }
  0xa2   : > { %3321 = vmatprep.subr.mxu0 %v3978_v16  ;;  %3356 = vmatprep.subr.mxu1 %v3978_v16 }
  0xa3   : > { %1372 = vmatmul.mubr.bf16.gmra.mxu0 %v3505_v39  ;;  %1661 = vmatmul.mubr.bf16.gmra.mxu1 %v3506_v40  ;;  %v3595_v39 = vld [vmem:[%s4149_s8 + $0x200] ss:$16 sps:$4 sm:$0xff]   ;;  %v3596_v40 = vld [vmem:[%s4149_s8 + $0x208] ss:$16 sps:$4 sm:$0xff]  }
  0xa4   : > { %1379 = vmatprep.mubr.bf16.mxu0 %v3507_v41  ;;  %1668 = vmatprep.mubr.bf16.mxu1 %v3509_v42  ;;  %v3597_v41 = vld [vmem:[%s4149_s8 + $0x224] ss:$16 sps:$4 sm:$0xff]   ;;  %v3599_v42 = vld [vmem:[%s4149_s8 + $0x22c] ss:$16 sps:$4 sm:$0xff]  }
  0xab   : > { %1380 = vmatmul.mubr.bf16.gmra.mxu0 %v3511_v43  ;;  %1669 = vmatmul.mubr.bf16.gmra.mxu1 %v3512_v44  ;;  %v1923_v43 = vld [vmem:[#allocation7 + $0x60] sm:$0xff] }
  0xac   : > { %1387 = vmatprep.mubr.bf16.mxu0 %v3513_v45  ;;  %1676 = vmatprep.mubr.bf16.mxu1 %v3515_v46  ;;  %v3601_v44 = vld [vmem:[%s4149_s8 + $0x220] ss:$16 sps:$4 sm:$0xff]   ;;  %v3602_v45 = vld [vmem:[%s4149_s8 + $0x228] ss:$16 sps:$4 sm:$0xff]   ;;  %v3603_v46 = vld [vmem:[%s4149_s8 + $0x244] ss:$16 sps:$4 sm:$0xff]  }
  0xad   : > { %3322 = vmatpush3.msra.mxu0 %v1923_v43  ;;  %3357 = vmatpush3.msra.mxu1 %v1923_v43 }
  0xae   : > { %3323 = vmatprep.subr.mxu0 %v3978_v16  ;;  %3358 = vmatprep.subr.mxu1 %v3978_v16 }
  0xb3   : > { %1388 = vmatmul.mubr.bf16.gmra.mxu0 %v3517_v47  ;;  %1677 = vmatmul.mubr.bf16.gmra.mxu1 %v3518_v48  ;;  %v3605_v47 = vld [vmem:[%s4149_s8 + $0x24c] ss:$16 sps:$4 sm:$0xff]   ;;  %v3607_v48 = vld [vmem:[%s4149_s8 + $0x240] ss:$16 sps:$4 sm:$0xff]  }
  0xb4   : > { %1395 = vmatprep.mubr.bf16.mxu0 %v3519_v49  ;;  %1684 = vmatprep.mubr.bf16.mxu1 %v3521_v50  ;;  %v3608_v49 = vld [vmem:[%s4149_s8 + $0x248] ss:$16 sps:$4 sm:$0xff]   ;;  %v3609_v50 = vld [vmem:[%s4149_s8 + $0x264] ss:$16 sps:$4 sm:$0xff]  }
  0xbb   : > { %1396 = vmatmul.mubr.bf16.gmra.mxu0 %v3523_v51  ;;  %1685 = vmatmul.mubr.bf16.gmra.mxu1 %v3524_v52  ;;  %v3611_v51 = vld [vmem:[%s4149_s8 + $0x26c] ss:$16 sps:$4 sm:$0xff]  }
  0xbc   : > { %1403 = vmatprep.mubr.bf16.mxu0 %v3525_v53  ;;  %1692 = vmatprep.mubr.bf16.mxu1 %v3527_v54  ;;  %v1922_v52 = vld [vmem:[#allocation7 + $0x58] sm:$0xff]  ;;  %v3613_v53 = vld [vmem:[%s4149_s8 + $0x260] ss:$16 sps:$4 sm:$0xff]  }
  0xbd   : > { %3324 = vmatpush3.msra.mxu0 %v1922_v52  ;;  %3359 = vmatpush3.msra.mxu1 %v1922_v52  ;;  %v3614_v54 = vld [vmem:[%s4149_s8 + $0x268] ss:$16 sps:$4 sm:$0xff]  }
  0xbe   : > { %3325 = vmatprep.subr.mxu0 %v3978_v16  ;;  %3360 = vmatprep.subr.mxu1 %v3978_v16 }
  0xc3   : > { %1404 = vmatmul.mubr.bf16.gmra.mxu0 %v3529_v55  ;;  %1693 = vmatmul.mubr.bf16.gmra.mxu1 %v3530_v56  ;;  %v3615_v55 = vld [vmem:[%s4149_s8 + $0x284] ss:$16 sps:$4 sm:$0xff]   ;;  %v3617_v56 = vld [vmem:[%s4149_s8 + $0x28c] ss:$16 sps:$4 sm:$0xff]  }
  0xc4   : > { %1411 = vmatprep.mubr.bf16.mxu0 %v3531_v57  ;;  %1700 = vmatprep.mubr.bf16.mxu1 %v3533_v58  ;;  %v3619_v57 = vld [vmem:[%s4149_s8 + $0x280] ss:$16 sps:$4 sm:$0xff]   ;;  %v3620_v58 = vld [vmem:[%s4149_s8 + $0x288] ss:$16 sps:$4 sm:$0xff]  }
  0xcb   : > { %1412 = vmatmul.mubr.bf16.gmra.mxu0 %v3535_v59  ;;  %1701 = vmatmul.mubr.bf16.gmra.mxu1 %v3536_v60  ;;  %v3621_v59 = vld [vmem:[%s4149_s8 + $0x2a4] ss:$16 sps:$4 sm:$0xff]   ;;  %v3623_v60 = vld [vmem:[%s4149_s8 + $0x2ac] ss:$16 sps:$4 sm:$0xff]  }
  0xcc   : > { %1419 = vmatprep.mubr.bf16.mxu0 %v3537_v61  ;;  %1708 = vmatprep.mubr.bf16.mxu1 %v3539_v62  ;;  %v1921_v61 = vld [vmem:[#allocation7 + $0x50] sm:$0xff] }
  0xcd   : > { %3326 = vmatpush3.msra.mxu0 %v1921_v61  ;;  %3361 = vmatpush3.msra.mxu1 %v1921_v61  ;;  %v3625_v62 = vld [vmem:[%s4149_s8 + $0x2a0] ss:$16 sps:$4 sm:$0xff]   ;;  %v3662_v61 = vld [vmem:[%s4149_s8 + $0x368] ss:$16 sps:$4 sm:$0xff]  }
  0xce   : > { %3327 = vmatprep.subr.mxu0 %v3978_v16  ;;  %3362 = vmatprep.subr.mxu1 %v3978_v16 }
  0xd3   : > { %1420 = vmatmul.mubr.bf16.gmra.mxu0 %v3541_v63  ;;  %1709 = vmatmul.mubr.bf16.gmra.mxu1 %v3542_v0  ;;  %v3626_v63 = vld [vmem:[%s4149_s8 + $0x2a8] ss:$16 sps:$4 sm:$0xff]   ;;  %v3627_v0 = vld [vmem:[%s4149_s8 + $0x2c4] ss:$16 sps:$4 sm:$0xff]  }
  0xd4   : > { %1427 = vmatprep.mubr.bf16.mxu0 %v3543_v1  ;;  %1716 = vmatprep.mubr.bf16.mxu1 %v3545_v2  ;;  %v3629_v1 = vld [vmem:[%s4149_s8 + $0x2cc] ss:$16 sps:$4 sm:$0xff]   ;;  %v3631_v2 = vld [vmem:[%s4149_s8 + $0x2c0] ss:$16 sps:$4 sm:$0xff]  }
  0xdb   : > { %1428 = vmatmul.mubr.bf16.gmra.mxu0 %v3547_v3  ;;  %1717 = vmatmul.mubr.bf16.gmra.mxu1 %v3548_v4  ;;  %v3632_v3 = vld [vmem:[%s4149_s8 + $0x2c8] ss:$16 sps:$4 sm:$0xff]   ;;  %v3633_v4 = vld [vmem:[%s4149_s8 + $0x2e4] ss:$16 sps:$4 sm:$0xff]  }
  0xdc   : > { %1435 = vmatprep.mubr.bf16.mxu0 %v3549_v5  ;;  %1724 = vmatprep.mubr.bf16.mxu1 %v3551_v6  ;;  %v3635_v5 = vld [vmem:[%s4149_s8 + $0x2ec] ss:$16 sps:$4 sm:$0xff]  }
  0xdd   : > { %v1920_v6 = vld [vmem:[#allocation7 + $0x48] sm:$0xff] }
  0xde   : > { %3328 = vmatpush3.msra.mxu0 %v1920_v6  ;;  %3363 = vmatpush3.msra.mxu1 %v1920_v6 }
  0xdf   : > { %3329 = vmatprep.subr.mxu0 %v3978_v16  ;;  %3364 = vmatprep.subr.mxu1 %v3978_v16 }
  0xe3   : > { %1436 = vmatmul.mubr.bf16.gmra.mxu0 %v3553_v7  ;;  %1725 = vmatmul.mubr.bf16.gmra.mxu1 %v3554_v8  ;;  %v3637_v7 = vld [vmem:[%s4149_s8 + $0x2e0] ss:$16 sps:$4 sm:$0xff]   ;;  %v3638_v8 = vld [vmem:[%s4149_s8 + $0x2e8] ss:$16 sps:$4 sm:$0xff]  }
  0xe4   : > { %1443 = vmatprep.mubr.bf16.mxu0 %v3555_v9  ;;  %1732 = vmatprep.mubr.bf16.mxu1 %v3557_v10  ;;  %v3639_v9 = vld [vmem:[%s4149_s8 + $0x304] ss:$16 sps:$4 sm:$0xff]   ;;  %v3641_v10 = vld [vmem:[%s4149_s8 + $0x30c] ss:$16 sps:$4 sm:$0xff]  }
  0xeb   : > { %1444 = vmatmul.mubr.bf16.gmra.mxu0 %v3559_v11  ;;  %1733 = vmatmul.mubr.bf16.gmra.mxu1 %v3560_v12  ;;  %v3643_v11 = vld [vmem:[%s4149_s8 + $0x300] ss:$16 sps:$4 sm:$0xff]   ;;  %v3644_v12 = vld [vmem:[%s4149_s8 + $0x308] ss:$16 sps:$4 sm:$0xff]  }
  0xec   : > { %1451 = vmatprep.mubr.bf16.mxu0 %v3561_v13  ;;  %1740 = vmatprep.mubr.bf16.mxu1 %v3563_v14  ;;  %v3645_v13 = vld [vmem:[%s4149_s8 + $0x324] ss:$16 sps:$4 sm:$0xff]   ;;  %v4311_v14 = vld [vmem:[%s6157_s2] ss:$0 sm:$0xff] }
  0xf3   : > { %1452 = vmatmul.mubr.bf16.gmra.mxu0 %v3565_v17  ;;  %1741 = vmatmul.mubr.bf16.gmra.mxu1 %v3566_v18 }
  0xf4   : > { %1459 = vmatprep.mubr.bf16.mxu0 %v3567_v19  ;;  %1748 = vmatprep.mubr.bf16.mxu1 %v3569_v20  ;;  %v1919_v20 = vld [vmem:[#allocation7 + $0x40] sm:$0xff] }
  0xf5   : > { %3330 = vmatpush3.msra.mxu0 %v1919_v20  ;;  %3365 = vmatpush3.msra.mxu1 %v1919_v20 }
  0xf6   : > { %3331 = vmatprep.subr.mxu0 %v3978_v16  ;;  %3366 = vmatprep.subr.mxu1 %v3978_v16 }
  0xfb   : > { %1460 = vmatmul.mubr.bf16.gmra.mxu0 %v3571_v21  ;;  %1749 = vmatmul.mubr.bf16.gmra.mxu1 %v3572_v22 }
  0xfc   : > { %1467 = vmatprep.mubr.bf16.mxu0 %v3573_v23  ;;  %1756 = vmatprep.mubr.bf16.mxu1 %v3575_v24 }
 0x103   : > { %1468 = vmatmul.mubr.bf16.gmra.mxu0 %v3577_v26  ;;  %1757 = vmatmul.mubr.bf16.gmra.mxu1 %v3578_v27 }
 0x104   : > { %1475 = vmatprep.mubr.bf16.mxu0 %v3579_v28  ;;  %1764 = vmatprep.mubr.bf16.mxu1 %v3581_v29  ;;  %v3650_v28 = vld [vmem:[%s4149_s8 + $0x328] ss:$16 sps:$4 sm:$0xff]   ;;  %v3651_v29 = vld [vmem:[%s4149_s8 + $0x344] ss:$16 sps:$4 sm:$0xff]  }
 0x10b   : > { %1476 = vmatmul.mubr.bf16.gmra.mxu0 %v3583_v30  ;;  %1765 = vmatmul.mubr.bf16.gmra.mxu1 %v3584_v31  ;;  %v3653_v31 = vld [vmem:[%s4149_s8 + $0x34c] ss:$16 sps:$4 sm:$0xff]  }
 0x10c   : > { %1483 = vmatprep.mubr.bf16.mxu0 %v3585_v32  ;;  %1772 = vmatprep.mubr.bf16.mxu1 %v3587_v33 }
 0x113   : > { %1484 = vmatmul.mubr.bf16.gmra.mxu0 %v3589_v35  ;;  %1773 = vmatmul.mubr.bf16.gmra.mxu1 %v3590_v36 }
 0x114   : > { %1491 = vmatprep.mubr.bf16.mxu0 %v3591_v37  ;;  %1780 = vmatprep.mubr.bf16.mxu1 %v3593_v38 }
 0x11b   : > { %1492 = vmatmul.mubr.bf16.gmra.mxu0 %v3595_v39  ;;  %1781 = vmatmul.mubr.bf16.gmra.mxu1 %v3596_v40 }
 0x11c   : > { %1499 = vmatprep.mubr.bf16.mxu0 %v3597_v41  ;;  %1788 = vmatprep.mubr.bf16.mxu1 %v3599_v42  ;;  %v3655_v41 = vld [vmem:[%s4149_s8 + $0x340] ss:$16 sps:$4 sm:$0xff]  }
 0x123   : > { %1500 = vmatmul.mubr.bf16.gmra.mxu0 %v3601_v44  ;;  %1789 = vmatmul.mubr.bf16.gmra.mxu1 %v3602_v45  ;;  %v3656_v44 = vld [vmem:[%s4149_s8 + $0x348] ss:$16 sps:$4 sm:$0xff]   ;;  %v3657_v45 = vld [vmem:[%s4149_s8 + $0x364] ss:$16 sps:$4 sm:$0xff]  }
 0x124   : > { %1507 = vmatprep.mubr.bf16.mxu0 %v3603_v46  ;;  %1796 = vmatprep.mubr.bf16.mxu1 %v3605_v47  ;;  %v3659_v47 = vld [vmem:[%s4149_s8 + $0x36c] ss:$16 sps:$4 sm:$0xff]  }
 0x12b   : > { %1508 = vmatmul.mubr.bf16.gmra.mxu0 %v3607_v48  ;;  %1797 = vmatmul.mubr.bf16.gmra.mxu1 %v3608_v49 }
 0x12c   : > { %1515 = vmatprep.mubr.bf16.mxu0 %v3609_v50  ;;  %1804 = vmatprep.mubr.bf16.mxu1 %v3611_v51 }
 0x133   : > { %1516 = vmatmul.mubr.bf16.gmra.mxu0 %v3613_v53  ;;  %1805 = vmatmul.mubr.bf16.gmra.mxu1 %v3614_v54  ;;  %v1918_v53 = vld [vmem:[#allocation7 + $0x38] sm:$0xff] }
 0x134   : > { %1523 = vmatprep.mubr.bf16.mxu0 %v3615_v55  ;;  %1812 = vmatprep.mubr.bf16.mxu1 %v3617_v56 }
 0x135   : > { %3332 = vmatpush3.msra.mxu0 %v1918_v53  ;;  %3367 = vmatpush3.msra.mxu1 %v1918_v53  ;;  %v3683_v53 = vld [vmem:[%s4149_s8 + $0x3e4] ss:$16 sps:$4 sm:$0xff]  }
 0x136   : > { %3333 = vmatprep.subr.mxu0 %v3978_v16  ;;  %3368 = vmatprep.subr.mxu1 %v3978_v16 }
 0x13b   : > { %1524 = vmatmul.mubr.bf16.gmra.mxu0 %v3619_v57  ;;  %1813 = vmatmul.mubr.bf16.gmra.mxu1 %v3620_v58  ;;  %v3661_v58 = vld [vmem:[%s4149_s8 + $0x360] ss:$16 sps:$4 sm:$0xff]  }
 0x13c   : > { %1531 = vmatprep.mubr.bf16.mxu0 %v3621_v59  ;;  %1820 = vmatprep.mubr.bf16.mxu1 %v3623_v60 }
 0x143   : > { %1532 = vmatmul.mubr.bf16.gmra.mxu0 %v3625_v62  ;;  %1821 = vmatmul.mubr.bf16.gmra.mxu1 %v3626_v63  ;;  %v3665_v62 = vld [vmem:[%s4149_s8 + $0x384] ss:$16 sps:$4 sm:$0xff]  }
 0x144   : > { %1539 = vmatprep.mubr.bf16.mxu0 %v3627_v0  ;;  %1828 = vmatprep.mubr.bf16.mxu1 %v3629_v1  ;;  %v3668_v0 = vld [vmem:[%s4149_s8 + $0x38c] ss:$16 sps:$4 sm:$0xff]  }
 0x14b   : > { %1540 = vmatmul.mubr.bf16.gmra.mxu0 %v3631_v2  ;;  %1829 = vmatmul.mubr.bf16.gmra.mxu1 %v3632_v3 }
 0x14c   : > { %1547 = vmatprep.mubr.bf16.mxu0 %v3633_v4  ;;  %1836 = vmatprep.mubr.bf16.mxu1 %v3635_v5 }
 0x153   : > { %1548 = vmatmul.mubr.bf16.gmra.mxu0 %v3637_v7  ;;  %1837 = vmatmul.mubr.bf16.gmra.mxu1 %v3638_v8 }
 0x154   : > { %1555 = vmatprep.mubr.bf16.mxu0 %v3639_v9  ;;  %1844 = vmatprep.mubr.bf16.mxu1 %v3641_v10  ;;  %v3663_v10 = vld [vmem:[%s4149_s8 + $0x380] ss:$16 sps:$4 sm:$0xff]  }
 0x15b   : > { %v1365_v17 = vpop.f32.mrf.mxu0  ;;  %1556 = vmatmul.mubr.bf16.gmra.mxu0 %v3643_v11  ;;  %v1654_v19 = vpop.f32.mrf.mxu1  ;;  %1845 = vmatmul.mubr.bf16.gmra.mxu1 %v3644_v12 }
 0x15c   : > { %v1366_v18 = vadd.f32 %v4311_v14, %v1365_v17  ;;  %1563 = vmatprep.mubr.bf16.mxu0 %v3645_v13  ;;  %1852 = vmatprep.mubr.bf16.mxu1 %v3647_v15  ;;  %v3666_v13 = vld [vmem:[%s4149_s8 + $0x388] ss:$16 sps:$4 sm:$0xff]   ;;  %v3671_v15 = vld [vmem:[%s4149_s8 + $0x3a4] ss:$16 sps:$4 sm:$0xff]  }
 0x15d   : > { %v1367_v21 = vpop.f32.mrf.mxu0  ;;  %v1656_v23 = vpop.f32.mrf.mxu1 }
 0x15e   : > { %v4315_v22 = vadd.f32 %v1654_v19, %v1366_v18  ;;  %v3674_v18 = vld [vmem:[%s4149_s8 + $0x3ac] ss:$16 sps:$4 sm:$0xff]  }
 0x15f   : > { %v1368_v24 = vpop.f32.mrf.mxu0  ;;  %v1657_v27 = vpop.f32.mrf.mxu1 }
 0x160   : > { %v1369_v26 = vadd.f32 %v4311_v14, %v1368_v24 }
 0x161   : > { %v1370_v30 = vpop.f32.mrf.mxu0  ;;  %v1659_v33 = vpop.f32.mrf.mxu1 }
 0x162   : > { %v4324_v32 = vadd.f32 %v1657_v27, %v1369_v26  ;;  %v3669_v30 = vld [vmem:[%s4149_s8 + $0x3a0] ss:$16 sps:$4 sm:$0xff]  }
 0x163   : > { %v1373_v34 = vpop.f32.mrf.mxu0  ;;  %1564 = vmatmul.mubr.bf16.gmra.mxu0 %v3649_v25  ;;  %v1662_v36 = vpop.f32.mrf.mxu1  ;;  %1853 = vmatmul.mubr.bf16.gmra.mxu1 %v3650_v28  ;;  %v1917_v25 = vld [vmem:[#allocation7 + $0x30] sm:$0xff] }
 0x164   : > { %v1374_v35 = vadd.f32 %v4311_v14, %v1373_v34  ;;  %1571 = vmatprep.mubr.bf16.mxu0 %v3651_v29  ;;  %1860 = vmatprep.mubr.bf16.mxu1 %v3653_v31  ;;  %v3672_v34 = vld [vmem:[%s4149_s8 + $0x3a8] ss:$16 sps:$4 sm:$0xff]  }
 0x165   : > { %v1375_v37 = vpop.f32.mrf.mxu0  ;;  %v1664_v39 = vpop.f32.mrf.mxu1  ;;  %3334 = vmatpush3.msra.mxu0 %v1917_v25  ;;  %3369 = vmatpush3.msra.mxu1 %v1917_v25 }
 0x166   : > { %v4327_v38 = vadd.f32 %v1662_v36, %v1374_v35  ;;  %3335 = vmatprep.subr.mxu0 %v3978_v16  ;;  %3370 = vmatprep.subr.mxu1 %v3978_v16  ;;  %v3677_v35 = vld [vmem:[%s4149_s8 + $0x3c4] ss:$16 sps:$4 sm:$0xff]   ;;  %v3680_v37 = vld [vmem:[%s4149_s8 + $0x3cc] ss:$16 sps:$4 sm:$0xff]  }
 0x167   : > { %v1376_v40 = vpop.f32.mrf.mxu0  ;;  %v1665_v43 = vpop.f32.mrf.mxu1 }
 0x168   : > { %v1377_v42 = vadd.f32 %v4311_v14, %v1376_v40 }
 0x169   : > { %v1378_v46 = vpop.f32.mrf.mxu0  ;;  %v1667_v49 = vpop.f32.mrf.mxu1 }
 0x16a   : > { %v4334_v48 = vadd.f32 %v1665_v43, %v1377_v42  ;;  %v3675_v49 = vld [vmem:[%s4149_s8 + $0x3c0] ss:$16 sps:$4 sm:$0xff]  }
 0x16b   : > { %v1381_v50 = vpop.f32.mrf.mxu0  ;;  %1572 = vmatmul.mubr.bf16.gmra.mxu0 %v3655_v41  ;;  %v1670_v52 = vpop.f32.mrf.mxu1  ;;  %1861 = vmatmul.mubr.bf16.gmra.mxu1 %v3656_v44 }
 0x16c   : > { %v1382_v51 = vadd.f32 %v4311_v14, %v1381_v50  ;;  %1579 = vmatprep.mubr.bf16.mxu0 %v3657_v45  ;;  %1868 = vmatprep.mubr.bf16.mxu1 %v3659_v47 }
 0x16d   : > { %v1383_v54 = vpop.f32.mrf.mxu0  ;;  %v1672_v56 = vpop.f32.mrf.mxu1 }
 0x16e   : > { %v4337_v55 = vadd.f32 %v1670_v52, %v1382_v51  ;;  %v3678_v52 = vld [vmem:[%s4149_s8 + $0x3c8] ss:$16 sps:$4 sm:$0xff]   ;;  %v3686_v56 = vld [vmem:[%s4149_s8 + $0x3ec] ss:$16 sps:$4 sm:$0xff]  }
 0x16f   : > { %v1384_v57 = vpop.f32.mrf.mxu0  ;;  %v1673_v60 = vpop.f32.mrf.mxu1 }
 0x170   : > { %v1385_v59 = vadd.f32 %v4311_v14, %v1384_v57 }
 0x171   : > { %v1386_v63 = vpop.f32.mrf.mxu0  ;;  %v1675_v2 = vpop.f32.mrf.mxu1 }
 0x172   : > { %v4346_v1 = vadd.f32 %v1673_v60, %v1385_v59 }
 0x173   : > { %v1389_v3 = vpop.f32.mrf.mxu0  ;;  %1580 = vmatmul.mubr.bf16.gmra.mxu0 %v3661_v58  ;;  %v1678_v5 = vpop.f32.mrf.mxu1  ;;  %1869 = vmatmul.mubr.bf16.gmra.mxu1 %v3662_v61 }
 0x174   : > { %v1390_v4 = vadd.f32 %v4311_v14, %v1389_v3  ;;  %1587 = vmatprep.mubr.bf16.mxu0 %v3665_v62  ;;  %1876 = vmatprep.mubr.bf16.mxu1 %v3668_v0  ;;  %v1916_v62 = vld [vmem:[#allocation7 + $0x28] sm:$0xff] }
 0x175   : > { %v1391_v6 = vpop.f32.mrf.mxu0  ;;  %v1680_v8 = vpop.f32.mrf.mxu1  ;;  %3336 = vmatpush3.msra.mxu0 %v1916_v62  ;;  %3371 = vmatpush3.msra.mxu1 %v1916_v62 }
 0x176   : > { %v4349_v7 = vadd.f32 %v1678_v5, %v1390_v4  ;;  %3337 = vmatprep.subr.mxu0 %v3978_v16  ;;  %v3681_v4 = vld [vmem:[%s4149_s8 + $0x3e0] ss:$16 sps:$4 sm:$0xff]   ;;  %3372 = vmatprep.subr.mxu1 %v3978_v16  ;;  %v3684_v8 = vld [vmem:[%s4149_s8 + $0x3e8] ss:$16 sps:$4 sm:$0xff]   ;;  %s6104_s8 = scalar_lea.hbm %s6161_s6, %s3280_s7 }
 0x177   : > { %v1392_v9 = vpop.f32.mrf.mxu0  ;;  %v1681_v12 = vpop.f32.mrf.mxu1 }
 0x178   : > { %v1393_v11 = vadd.f32 %v4311_v14, %v1392_v9 }
 0x179   : > { %v1394_v17 = vpop.f32.mrf.mxu0  ;;  %v1683_v20 = vpop.f32.mrf.mxu1 }
 0x17a   : > { %v4356_v19 = vadd.f32 %v1681_v12, %v1393_v11 }
 0x17b   : > { %v1397_v21 = vpop.f32.mrf.mxu0  ;;  %1588 = vmatmul.mubr.bf16.gmra.mxu0 %v3663_v10  ;;  %v1686_v24 = vpop.f32.mrf.mxu1  ;;  %1877 = vmatmul.mubr.bf16.gmra.mxu1 %v3666_v13 }
 0x17c   : > { %v1398_v23 = vadd.f32 %v4311_v14, %v1397_v21  ;;  %1595 = vmatprep.mubr.bf16.mxu0 %v3671_v15  ;;  %1884 = vmatprep.mubr.bf16.mxu1 %v3674_v18 }
 0x17d   : > { %v1399_v26 = vpop.f32.mrf.mxu0  ;;  %v1688_v28 = vpop.f32.mrf.mxu1 }
 0x17e   : > { %v4359_v27 = vadd.f32 %v1686_v24, %v1398_v23 }
 0x17f   : > { %v1400_v29 = vpop.f32.mrf.mxu0  ;;  %v1689_v33 = vpop.f32.mrf.mxu1 }
 0x180   : > { %v1401_v31 = vadd.f32 %v4311_v14, %v1400_v29 }
 0x181   : > { %v1402_v36 = vpop.f32.mrf.mxu0  ;;  %v1691_v40 = vpop.f32.mrf.mxu1 }
 0x182   : > { %v4368_v39 = vadd.f32 %v1689_v33, %v1401_v31  ;;  %v1915_v33 = vld [vmem:[#allocation7 + $0x20] sm:$0xff] }
 0x183   : > { %v1405_v41 = vpop.f32.mrf.mxu0  ;;  %1596 = vmatmul.mubr.bf16.gmra.mxu0 %v3669_v30  ;;  %v1694_v43 = vpop.f32.mrf.mxu1  ;;  %1885 = vmatmul.mubr.bf16.gmra.mxu1 %v3672_v34 }
 0x184   : > { %v1406_v42 = vadd.f32 %v4311_v14, %v1405_v41  ;;  %1603 = vmatprep.mubr.bf16.mxu0 %v3677_v35  ;;  %1892 = vmatprep.mubr.bf16.mxu1 %v3680_v37 }
 0x185   : > { %v1407_v44 = vpop.f32.mrf.mxu0  ;;  %v1696_v46 = vpop.f32.mrf.mxu1  ;;  %3338 = vmatpush3.msra.mxu0 %v1915_v33  ;;  %3373 = vmatpush3.msra.mxu1 %v1915_v33 }
 0x186   : > { %v4371_v45 = vadd.f32 %v1694_v43, %v1406_v42  ;;  %3339 = vmatprep.subr.mxu0 %v3978_v16  ;;  %3374 = vmatprep.subr.mxu1 %v3978_v16 }
 0x187   : > { %v1408_v47 = vpop.f32.mrf.mxu0  ;;  %v1697_v51 = vpop.f32.mrf.mxu1 }
 0x188   : > { %v1409_v50 = vadd.f32 %v4311_v14, %v1408_v47 }
 0x189   : > { %v1410_v54 = vpop.f32.mrf.mxu0  ;;  %v1699_v58 = vpop.f32.mrf.mxu1 }
 0x18a   : > { %v4378_v57 = vadd.f32 %v1697_v51, %v1409_v50 }
 0x18b   : > { %v1413_v59 = vpop.f32.mrf.mxu0  ;;  %1604 = vmatmul.mubr.bf16.gmra.mxu0 %v3675_v49  ;;  %v1702_v61 = vpop.f32.mrf.mxu1  ;;  %1893 = vmatmul.mubr.bf16.gmra.mxu1 %v3678_v52 }
 0x18c   : > { %v1414_v60 = vadd.f32 %v4311_v14, %v1413_v59  ;;  %1611 = vmatprep.mubr.bf16.mxu0 %v3683_v53  ;;  %1900 = vmatprep.mubr.bf16.mxu1 %v3686_v56 }
 0x18d   : > { %v1415_v63 = vpop.f32.mrf.mxu0  ;;  %v1704_v2 = vpop.f32.mrf.mxu1 }
 0x18e   : > { %v4381_v0 = vadd.f32 %v1702_v61, %v1414_v60  ;;  %v1914_v2 = vld [vmem:[#allocation7 + $0x18] sm:$0xff] }
 0x18f   : > { %v1416_v3 = vpop.f32.mrf.mxu0  ;;  %v1705_v6 = vpop.f32.mrf.mxu1  ;;  %3340 = vmatpush3.msra.mxu0 %v1914_v2  ;;  %3375 = vmatpush3.msra.mxu1 %v1914_v2 }
 0x190   : > { %v1417_v5 = vadd.f32 %v4311_v14, %v1416_v3  ;;  %3341 = vmatprep.subr.mxu0 %v3978_v16  ;;  %3376 = vmatprep.subr.mxu1 %v3978_v16 }
 0x191   : > { %v1418_v9 = vpop.f32.mrf.mxu0  ;;  %v1707_v11 = vpop.f32.mrf.mxu1 }
 0x192   : > { %v4388_v10 = vadd.f32 %v1705_v6, %v1417_v5 }
 0x193   : > { %v1421_v12 = vpop.f32.mrf.mxu0  ;;  %1612 = vmatmul.mubr.bf16.gmra.mxu0 %v3681_v4  ;;  %v1710_v15 = vpop.f32.mrf.mxu1  ;;  %1901 = vmatmul.mubr.bf16.gmra.mxu1 %v3684_v8 }
 0x194   : > { %v1422_v13 = vadd.f32 %v4311_v14, %v1421_v12  ;;  %3347 = vmatprep.mubr.msk.f32.mxu0 %vm3979_vm0, %v3978_v16  ;;  %3382 = vmatprep.mubr.msk.f32.mxu1 %vm3979_vm0, %v3978_v16 }
 0x195   : > { %v1423_v17 = vpop.f32.mrf.mxu0  ;;  %v1712_v20 = vpop.f32.mrf.mxu1 }
 0x196   : > { %v4391_v18 = vadd.f32 %v1710_v15, %v1422_v13 }
 0x197   : > { %v1424_v21 = vpop.f32.mrf.mxu0  ;;  %v1713_v24 = vpop.f32.mrf.mxu1 }
 0x198   : > { %v1425_v23 = vadd.f32 %v4311_v14, %v1424_v21 }
 0x199   : > { %v1426_v25 = vpop.f32.mrf.mxu0  ;;  %v1715_v28 = vpop.f32.mrf.mxu1 }
 0x19a   : > { %v4394_v26 = vadd.f32 %v1713_v24, %v1425_v23 }
 0x19b   : > { %v1429_v29 = vpop.f32.mrf.mxu0  ;;  %v1718_v31 = vpop.f32.mrf.mxu1 }
 0x19c   : > { %v1430_v30 = vadd.f32 %v4311_v14, %v1429_v29 }
 0x19d   : > { %v1431_v34 = vpop.f32.mrf.mxu0  ;;  %v1720_v36 = vpop.f32.mrf.mxu1 }
 0x19e   : > { %v4397_v35 = vadd.f32 %v1718_v31, %v1430_v30 }
 0x19f   : > { %v1432_v37 = vpop.f32.mrf.mxu0  ;;  %v1721_v41 = vpop.f32.mrf.mxu1 }
 0x1a0   : > { %6291 = vst [vmem:[#allocation12_spill] sm:$0xff] %v4397_v35  ;;  %v1433_v40 = vadd.f32 %v4311_v14, %v1432_v37 }
 0x1a1   : > { %v1434_v42 = vpop.f32.mrf.mxu0  ;;  %v1723_v44 = vpop.f32.mrf.mxu1 }
 0x1a2   : > { %v4402_v43 = vadd.f32 %v1721_v41, %v1433_v40  ;;  %v1913_v40 = vld [vmem:[#allocation7 + $0x10] sm:$0xff] }
 0x1a3   : > { %v1437_v46 = vpop.f32.mrf.mxu0  ;;  %v1726_v49 = vpop.f32.mrf.mxu1  ;;  %3342 = vmatpush3.msra.mxu0 %v1913_v40  ;;  %3377 = vmatpush3.msra.mxu1 %v1913_v40 }
 0x1a4   : > { %6292 = vst [vmem:[#allocation13_spill] sm:$0xff] %v4402_v43  ;;  %v1438_v47 = vadd.f32 %v4311_v14, %v1437_v46  ;;  %3343 = vmatprep.subr.mxu0 %v3978_v16  ;;  %3378 = vmatprep.subr.mxu1 %v3978_v16 }
 0x1a5   : > { %v1439_v50 = vpop.f32.mrf.mxu0  ;;  %v1728_v52 = vpop.f32.mrf.mxu1 }
 0x1a6   : > { %v4405_v51 = vadd.f32 %v1726_v49, %v1438_v47 }
 0x1a7   : > { %v1440_v53 = vpop.f32.mrf.mxu0  ;;  %v1729_v56 = vpop.f32.mrf.mxu1 }
 0x1a8   : > { %6293 = vst [vmem:[#allocation14_spill] sm:$0xff] %v4405_v51  ;;  %v1441_v54 = vadd.f32 %v4311_v14, %v1440_v53 }
 0x1a9   : > { %v1442_v58 = vpop.f32.mrf.mxu0  ;;  %v1731_v60 = vpop.f32.mrf.mxu1 }
 0x1aa   : > { %v4408_v59 = vadd.f32 %v1729_v56, %v1441_v54 }
 0x1ab   : > { %v1445_v61 = vpop.f32.mrf.mxu0  ;;  %v1734_v63 = vpop.f32.mrf.mxu1 }
 0x1ac   : > { %6294 = vst [vmem:[#allocation15_spill] sm:$0xff] %v4408_v59  ;;  %v1446_v62 = vadd.f32 %v4311_v14, %v1445_v61 }
 0x1ad   : > { %v1447_v3 = vpop.f32.mrf.mxu0  ;;  %v1736_v5 = vpop.f32.mrf.mxu1 }
 0x1ae   : > { %v4411_v4 = vadd.f32 %v1734_v63, %v1446_v62 }
 0x1af   : > { %v1448_v6 = vpop.f32.mrf.mxu0  ;;  %v1737_v9 = vpop.f32.mrf.mxu1 }
 0x1b0   : > { %6295 = vst [vmem:[#allocation16_spill] sm:$0xff] %v4411_v4  ;;  %v1449_v8 = vadd.f32 %v4311_v14, %v1448_v6 }
 0x1b1   : > { %v1450_v11 = vpop.f32.mrf.mxu0  ;;  %v1739_v13 = vpop.f32.mrf.mxu1 }
 0x1b2   : > { %v4416_v12 = vadd.f32 %v1737_v9, %v1449_v8 }
 0x1b3   : > { %v1453_v15 = vpop.f32.mrf.mxu0  ;;  %v1742_v20 = vpop.f32.mrf.mxu1 }
 0x1b4   : > { %6296 = vst [vmem:[#allocation17_spill] sm:$0xff] %v4416_v12  ;;  %v1454_v17 = vadd.f32 %v4311_v14, %v1453_v15  ;;  %v1912_v15 = vld [vmem:[#allocation7 + $0x8] sm:$0xff] }
 0x1b5   : > { %v1455_v21 = vpop.f32.mrf.mxu0  ;;  %v1744_v24 = vpop.f32.mrf.mxu1  ;;  %3344 = vmatpush3.msra.mxu0 %v1912_v15  ;;  %3379 = vmatpush3.msra.mxu1 %v1912_v15 }
 0x1b6   : > { %v4419_v23 = vadd.f32 %v1742_v20, %v1454_v17  ;;  %3345 = vmatprep.subr.mxu0 %v3978_v16  ;;  %3380 = vmatprep.subr.mxu1 %v3978_v16 }
 0x1b7   : > { %v1456_v25 = vpop.f32.mrf.mxu0  ;;  %v1745_v29 = vpop.f32.mrf.mxu1 }
 0x1b8   : > { %6297 = vst [vmem:[#allocation18_spill] sm:$0xff] %v4419_v23  ;;  %v1457_v28 = vadd.f32 %v4311_v14, %v1456_v25 }
 0x1b9   : > { %v1458_v30 = vpop.f32.mrf.mxu0  ;;  %v1747_v33 = vpop.f32.mrf.mxu1 }
 0x1ba   : > { %v4422_v31 = vadd.f32 %v1745_v29, %v1457_v28 }
 0x1bb   : > { %v1461_v34 = vpop.f32.mrf.mxu0  ;;  %v1750_v37 = vpop.f32.mrf.mxu1 }
 0x1bc   : > { %6298 = vst [vmem:[#allocation19_spill] sm:$0xff] %v4422_v31  ;;  %v1462_v36 = vadd.f32 %v4311_v14, %v1461_v34 }
 0x1bd   : > { %v1463_v41 = vpop.f32.mrf.mxu0  ;;  %v1752_v44 = vpop.f32.mrf.mxu1 }
 0x1be   : > { %v4425_v42 = vadd.f32 %v1750_v37, %v1462_v36 }
 0x1bf   : > { %v1464_v46 = vpop.f32.mrf.mxu0  ;;  %v1753_v49 = vpop.f32.mrf.mxu1 }
 0x1c0   : > { %6299 = vst [vmem:[#allocation20_spill] sm:$0xff] %v4425_v42  ;;  %v1465_v47 = vadd.f32 %v4311_v14, %v1464_v46 }
 0x1c1   : > { %v1466_v50 = vpop.f32.mrf.mxu0  ;;  %v1755_v53 = vpop.f32.mrf.mxu1 }
 0x1c2   : > { %v4430_v52 = vadd.f32 %v1753_v49, %v1465_v47 }
 0x1c3   : > { %v1469_v54 = vpop.f32.mrf.mxu0  ;;  %v1758_v58 = vpop.f32.mrf.mxu1 }
 0x1c4   : > { %v1470_v56 = vadd.f32 %v4311_v14, %v1469_v54 }
 0x1c5   : > { %v1471_v60 = vpop.f32.mrf.mxu0  ;;  %v1760_v62 = vpop.f32.mrf.mxu1 }
 0x1c6   : > { %v4433_v61 = vadd.f32 %v1758_v58, %v1470_v56 }
 0x1c7   : > { %v1472_v63 = vpop.f32.mrf.mxu0  ;;  %v1761_v3 = vpop.f32.mrf.mxu1 }
 0x1c8   : > { %6300 = vst [vmem:[#allocation21_spill] sm:$0xff] %v4433_v61  ;;  %v1473_v2 = vadd.f32 %v4311_v14, %v1472_v63 }
 0x1c9   : > { %v1474_v5 = vpop.f32.mrf.mxu0  ;;  %v1763_v8 = vpop.f32.mrf.mxu1 }
 0x1ca   : > { %v4436_v6 = vadd.f32 %v1761_v3, %v1473_v2  ;;  %v1927_v2 = vadd.f32 %v4324_v32, %v4315_v22 }
 0x1cb   : > { %v1477_v9 = vpop.f32.mrf.mxu0  ;;  %v1766_v13 = vpop.f32.mrf.mxu1 }
 0x1cc   : > { %v1478_v11 = vadd.f32 %v4311_v14, %v1477_v9  ;;  %v1928_v8 = vadd.f32 %v1927_v2, %v4327_v38 }
 0x1cd   : > { %v1479_v17 = vpop.f32.mrf.mxu0  ;;  %v1768_v21 = vpop.f32.mrf.mxu1 }
 0x1ce   : > { %v4439_v20 = vadd.f32 %v1766_v13, %v1478_v11  ;;  %v1929_v13 = vadd.f32 %v1928_v8, %v4334_v48 }
 0x1cf   : > { %v1480_v24 = vpop.f32.mrf.mxu0  ;;  %v1769_v28 = vpop.f32.mrf.mxu1 }
 0x1d0   : > { %6301 = vst [vmem:[#allocation22_spill] sm:$0xff] %v4439_v20  ;;  %v1481_v25 = vadd.f32 %v4311_v14, %v1480_v24  ;;  %v1930_v21 = vadd.f32 %v1929_v13, %v4337_v55 }
 0x1d1   : > { %v1482_v29 = vpop.f32.mrf.mxu0  ;;  %v1771_v33 = vpop.f32.mrf.mxu1 }
 0x1d2   : > { %v4444_v30 = vadd.f32 %v1769_v28, %v1481_v25  ;;  %v1931_v28 = vadd.f32 %v1930_v21, %v4346_v1  ;;  %v1911_v33 = vld [vmem:[#allocation7] sm:$0xff] }
 0x1d3   : > { %v1485_v34 = vpop.f32.mrf.mxu0  ;;  %v1774_v37 = vpop.f32.mrf.mxu1  ;;  %3346 = vmatpush3.msra.mxu0 %v1911_v33  ;;  %3381 = vmatpush3.msra.mxu1 %v1911_v33 }
 0x1d4   : > { %v1486_v36 = vadd.f32 %v4311_v14, %v1485_v34 }
 0x1d5   : > { %v1487_v40 = vpop.f32.mrf.mxu0  ;;  %v1776_v44 = vpop.f32.mrf.mxu1 }
 0x1d6   : > { %v4447_v41 = vadd.f32 %v1774_v37, %v1486_v36  ;;  %v1932_v36 = vadd.f32 %v1931_v28, %v4349_v7 }
 0x1d7   : > { %v1488_v46 = vpop.f32.mrf.mxu0  ;;  %v1777_v49 = vpop.f32.mrf.mxu1 }
 0x1d8   : > { %6302 = vst [vmem:[#allocation23_spill] sm:$0xff] %v4447_v41  ;;  %v1489_v47 = vadd.f32 %v4311_v14, %v1488_v46  ;;  %v1933_v44 = vadd.f32 %v1932_v36, %v4356_v19 }
 0x1d9   : > { %v1490_v50 = vpop.f32.mrf.mxu0  ;;  %v1779_v54 = vpop.f32.mrf.mxu1 }
 0x1da   : > { %v4450_v53 = vadd.f32 %v1777_v49, %v1489_v47  ;;  %v1934_v49 = vadd.f32 %v1933_v44, %v4359_v27 }
 0x1db   : > { %v4452_v56 = vpop.f32.mrf.mxu0  ;;  %v4454_v58 = vpop.f32.mrf.mxu1 }
 0x1dd   : > { %v1495_v60 = vpop.f32.mrf.mxu0  ;;  %v1784_v62 = vpop.f32.mrf.mxu1 }
 0x1de   : > { %v1935_v60 = vadd.f32 %v1934_v49, %v4368_v39 }
 0x1df   : > { %v4456_v63 = vpop.f32.mrf.mxu0  ;;  %v4460_v3 = vpop.f32.mrf.mxu1 }
 0x1e1   : > { %v1498_v5 = vpop.f32.mrf.mxu0  ;;  %v1787_v9 = vpop.f32.mrf.mxu1 }
 0x1e2   : > { %v1936_v5 = vadd.f32 %v1935_v60, %v4371_v45 }
 0x1e3   : > { %v4463_v11 = vpop.f32.mrf.mxu0  ;;  %v4466_v15 = vpop.f32.mrf.mxu1 }
 0x1e4   : > { %v1937_v9 = vadd.f32 %v1936_v5, %v4378_v57 }
 0x1e5   : > { %v1503_v17 = vpop.f32.mrf.mxu0  ;;  %v1792_v24 = vpop.f32.mrf.mxu1 }
 0x1e6   : > { %v1938_v21 = vadd.f32 %v1937_v9, %v4381_v0 }
 0x1e7   : > { %v4469_v25 = vpop.f32.mrf.mxu0  ;;  %v4472_v29 = vpop.f32.mrf.mxu1 }
 0x1e8   : > { %v1939_v33 = vadd.f32 %v1938_v21, %v4388_v10 }
 0x1e9   : > { %v1506_v34 = vpop.f32.mrf.mxu0  ;;  %v1795_v37 = vpop.f32.mrf.mxu1 }
 0x1ea   : > { %v1940_v37 = vadd.f32 %v1939_v33, %v4391_v18 }
 0x1eb   : > { %v4477_v40 = vpop.f32.mrf.mxu0  ;;  %v4480_v46 = vpop.f32.mrf.mxu1 }
 0x1ec   : > { %v1941_v49 = vadd.f32 %v1940_v37, %v4394_v26 }
 0x1ed   : > { %v1511_v47 = vpop.f32.mrf.mxu0  ;;  %v1800_v50 = vpop.f32.mrf.mxu1 }
 0x1ef   : > { %v4483_v54 = vpop.f32.mrf.mxu0  ;;  %v4486_v62 = vpop.f32.mrf.mxu1 }
 0x1f1   : > { %v1514_v2 = vpop.f32.mrf.mxu0  ;;  %v1803_v16 = vpop.f32.mrf.mxu1 }
 0x1f2   : > { %v1942_v2 = vadd.f32 %v1941_v49, %v4397_v35 }
 0x1f3   : > { %v4489_v8 = vpop.f32.mrf.mxu0  ;;  %v4492_v13 = vpop.f32.mrf.mxu1 }
 0x1f4   : > { %v1943_v9 = vadd.f32 %v1942_v2, %v4402_v43 }
 0x1f5   : > { %v1519_v17 = vpop.f32.mrf.mxu0  ;;  %v1808_v24 = vpop.f32.mrf.mxu1 }
 0x1f6   : > { %v1944_v24 = vadd.f32 %v1943_v9, %v4405_v51 }
 0x1f7   : > { %v4495_v28 = vpop.f32.mrf.mxu0  ;;  %v4498_v34 = vpop.f32.mrf.mxu1 }
 0x1f8   : > { %v1945_v37 = vadd.f32 %v1944_v24, %v4408_v59 }
 0x1f9   : > { %v1522_v36 = vpop.f32.mrf.mxu0  ;;  %v1811_v44 = vpop.f32.mrf.mxu1 }
 0x1fa   : > { %v1946_v49 = vadd.f32 %v1945_v37, %v4411_v4 }
 0x1fb   : > { %v4501_v47 = vpop.f32.mrf.mxu0  ;;  %v4504_v50 = vpop.f32.mrf.mxu1 }
 0x1fc   : > { %v1947_v2 = vadd.f32 %v1946_v49, %v4416_v12 }
 0x1fd   : > { %v1527_v60 = vpop.f32.mrf.mxu0  ;;  %v1816_v5 = vpop.f32.mrf.mxu1 }
 0x1fe   : > { %v1948_v9 = vadd.f32 %v1947_v2, %v4419_v23 }
 0x1ff   : > { %v4507_v16 = vpop.f32.mrf.mxu0  ;;  %v4510_v17 = vpop.f32.mrf.mxu1 }
 0x200   : > { %v1949_v24 = vadd.f32 %v1948_v9, %v4422_v31 }
 0x201   : > { %v1530_v21 = vpop.f32.mrf.mxu0  ;;  %v1819_v33 = vpop.f32.mrf.mxu1 }
 0x202   : > { %v1950_v37 = vadd.f32 %v1949_v24, %v4425_v42 }
 0x203   : > { %v4513_v36 = vpop.f32.mrf.mxu0  ;;  %v4516_v44 = vpop.f32.mrf.mxu1 }
 0x204   : > { %v1951_v49 = vadd.f32 %v1950_v37, %v4430_v52 }
 0x205   : > { %v1535_v60 = vpop.f32.mrf.mxu0  ;;  %v1824_v5 = vpop.f32.mrf.mxu1 }
 0x206   : > { %v1952_v2 = vadd.f32 %v1951_v49, %v4433_v61  ;;  %v1497_v49 = vadd.f32 %v4311_v14, %v4456_v63  ;;  %v1505_v63 = vadd.f32 %v4311_v14, %v4469_v25  ;;  %v1513_v25 = vadd.f32 %v4311_v14, %v4483_v54 }
 0x207   : > { %v4519_v35 = vpop.f32.mrf.mxu0  ;;  %v4522_v43 = vpop.f32.mrf.mxu1  ;;  %v1521_v54 = vadd.f32 %v4311_v14, %v4495_v28  ;;  %v1529_v28 = vadd.f32 %v4311_v14, %v4507_v16 }
 0x208   : > { %v1953_v9 = vadd.f32 %v1952_v2, %v4436_v6  ;;  %v1537_v16 = vadd.f32 %v4311_v14, %v4519_v35 }
 0x209   : > { %v1538_v21 = vpop.f32.mrf.mxu0  ;;  %v1827_v33 = vpop.f32.mrf.mxu1 }
 0x20a   : > { %v1954_v24 = vadd.f32 %v1953_v9, %v4439_v20  ;;  %v1502_v9 = vadd.f32 %v4311_v14, %v4463_v11  ;;  %v1510_v11 = vadd.f32 %v4311_v14, %v4477_v40  ;;  %v1518_v40 = vadd.f32 %v4311_v14, %v4489_v8 }
 0x20b   : > { %v4525_v51 = vpop.f32.mrf.mxu0  ;;  %v4528_v59 = vpop.f32.mrf.mxu1  ;;  %v1526_v8 = vadd.f32 %v4311_v14, %v4501_v47  ;;  %v1534_v47 = vadd.f32 %v4311_v14, %v4513_v36 }
 0x20c   : > { %v1542_v36 = vadd.f32 %v4311_v14, %v4525_v51 }
 0x20d   : > { %v1543_v60 = vpop.f32.mrf.mxu0  ;;  %v1832_v5 = vpop.f32.mrf.mxu1 }
 0x20e   : > { %v1494_v5 = vadd.f32 %v4311_v14, %v4452_v56 }
 0x20f   : > { %v4531_v4 = vpop.f32.mrf.mxu0  ;;  %v4534_v12 = vpop.f32.mrf.mxu1 }
 0x210   : > { %v1545_v35 = vadd.f32 %v4311_v14, %v4531_v4 }
 0x211   : > { %v1546_v21 = vpop.f32.mrf.mxu0  ;;  %v1835_v33 = vpop.f32.mrf.mxu1 }
 0x212   : > { %v1955_v21 = vadd.f32 %v1954_v24, %v4444_v30  ;;  %v4562_v24 = vadd.f32 %v4460_v3, %v1497_v49  ;;  %v4578_v49 = vadd.f32 %v4472_v29, %v1505_v63  ;;  %v4592_v29 = vadd.f32 %v4486_v62, %v1513_v25 }
 0x213   : > { %v4537_v23 = vpop.f32.mrf.mxu0  ;;  %v4540_v31 = vpop.f32.mrf.mxu1  ;;  %v4606_v62 = vadd.f32 %v4498_v34, %v1521_v54  ;;  %v4618_v34 = vadd.f32 %v4510_v17, %v1529_v28  ;;  %v4630_v17 = vadd.f32 %v4522_v43, %v1537_v16  ;;  %v4642_v43 = vadd.f32 %v4534_v12, %v1545_v35 }
 0x214   : > { %v1956_v2 = vadd.f32 %v1955_v21, %v4447_v41  ;;  %v1550_v51 = vadd.f32 %v4311_v14, %v4537_v23 }
 0x215   : > { %v1551_v60 = vpop.f32.mrf.mxu0  ;;  %v1840_v42 = vpop.f32.mrf.mxu1 }
 0x216   : > { %v4554_v60 = vadd.f32 %v4454_v58, %v1494_v5  ;;  %v1957_v20 = vadd.f32 %v1956_v2, %v4450_v53  ;;  %v4570_v5 = vadd.f32 %v4466_v15, %v1502_v9  ;;  %v4586_v9 = vadd.f32 %v4480_v46, %v1510_v11 }
 0x217   : > { %v4545_v37 = vpop.f32.mrf.mxu0  ;;  %v4550_v33 = vpop.f32.mrf.mxu1  ;;  %v4600_v46 = vadd.f32 %v4492_v13, %v1518_v40  ;;  %v4612_v13 = vadd.f32 %v4504_v50, %v1526_v8  ;;  %v4624_v50 = vadd.f32 %v4516_v44, %v1534_v47  ;;  %v4636_v44 = vadd.f32 %v4528_v59, %v1542_v36 }
 0x218   : > { %v1958_v58 = vadd.f32 %v1957_v20, %v4554_v60  ;;  %v1553_v4 = vadd.f32 %v4311_v14, %v4545_v37  ;;  %v4648_v59 = vadd.f32 %v4540_v31, %v1550_v51 }
 0x219   : > { %v1554_v61 = vpop.f32.mrf.mxu0  ;;  %v1843_v56 = vpop.f32.mrf.mxu1  ;;  %6303 = vst [vmem:[#allocation24_spill] sm:$0xff] %v4636_v44 }
 0x21a   : > { %v1959_v3 = vadd.f32 %v1958_v58, %v4562_v24  ;;  %6304 = vst [vmem:[#allocation25_spill] sm:$0xff] %v4648_v59  ;;  %v4654_v12 = vadd.f32 %v4550_v33, %v1553_v4 }
 0x21b   : > { %v4558_v42 = vpop.f32.mrf.mxu0  ;;  %v4566_v61 = vpop.f32.mrf.mxu1 }
 0x21c   : > { %v1960_v15 = vadd.f32 %v1959_v3, %v4570_v5  ;;  %v1558_v23 = vadd.f32 %v4311_v14, %v4558_v42 }
 0x21d   : > { %v1559_v21 = vpop.f32.mrf.mxu0  ;;  %v1848_v56 = vpop.f32.mrf.mxu1 }
 0x21e   : > { %v1961_v58 = vadd.f32 %v1960_v15, %v4578_v49  ;;  %v4660_v31 = vadd.f32 %v4566_v61, %v1558_v23 }
 0x21f   : > { %v4574_v41 = vpop.f32.mrf.mxu0  ;;  %v4582_v2 = vpop.f32.mrf.mxu1 }
 0x220   : > { %v1962_v3 = vadd.f32 %v1961_v58, %v4586_v9  ;;  %v1561_v37 = vadd.f32 %v4311_v14, %v4574_v41 }
 0x221   : > { %v1562_v20 = vpop.f32.mrf.mxu0  ;;  %v1851_v21 = vpop.f32.mrf.mxu1 }
 0x222   : > { %v1963_v15 = vadd.f32 %v1962_v3, %v4592_v29 }
 0x223   : > { %v1565_v56 = vpop.f32.mrf.mxu0  ;;  %v4596_v63 = vpop.f32.mrf.mxu1 }
 0x224   : > { %v1964_v58 = vadd.f32 %v1963_v15, %v4600_v46  ;;  %v1566_v51 = vadd.f32 %v4311_v14, %v1565_v56 }
 0x225   : > { %v1567_v20 = vpop.f32.mrf.mxu0  ;;  %v1856_v11 = vpop.f32.mrf.mxu1 }
 0x226   : > { %v1965_v3 = vadd.f32 %v1964_v58, %v4606_v62 }
 0x227   : > { %v1568_v21 = vpop.f32.mrf.mxu0  ;;  %v1857_v25 = vpop.f32.mrf.mxu1 }
 0x228   : > { %v1966_v15 = vadd.f32 %v1965_v3, %v4612_v13  ;;  %v1569_v33 = vadd.f32 %v4311_v14, %v1568_v21 }
 0x229   : > { %v1570_v20 = vpop.f32.mrf.mxu0  ;;  %v1859_v40 = vpop.f32.mrf.mxu1 }
 0x22a   : > { %v1967_v58 = vadd.f32 %v1966_v15, %v4618_v34 }
 0x22b   : > { %v1573_v11 = vpop.f32.mrf.mxu0  ;;  %v1862_v54 = vpop.f32.mrf.mxu1 }
 0x22c   : > { %v1968_v3 = vadd.f32 %v1967_v58, %v4624_v50  ;;  %v1574_v61 = vadd.f32 %v4311_v14, %v1573_v11 }
 0x22d   : > { %v1575_v20 = vpop.f32.mrf.mxu0  ;;  %v1864_v8 = vpop.f32.mrf.mxu1 }
 0x22e   : > { %v1969_v15 = vadd.f32 %v1968_v3, %v4630_v17 }
 0x22f   : > { %v1576_v40 = vpop.f32.mrf.mxu0  ;;  %v1865_v28 = vpop.f32.mrf.mxu1 }
 0x230   : > { %v1970_v58 = vadd.f32 %v1969_v15, %v4636_v44 }
 0x231   : > { %v1578_v20 = vpop.f32.mrf.mxu0  ;;  %v1867_v47 = vpop.f32.mrf.mxu1 }
 0x232   : > { %v1971_v3 = vadd.f32 %v1970_v58, %v4642_v43  ;;  %v4665_v58 = vadd.f32 %v4582_v2, %v1561_v37  ;;  %v1577_v2 = vadd.f32 %v4311_v14, %v1576_v40 }
 0x233   : > { %v1581_v8 = vpop.f32.mrf.mxu0  ;;  %v1870_v16 = vpop.f32.mrf.mxu1 }
 0x234   : > { %v1972_v15 = vadd.f32 %v1971_v3, %v4648_v59  ;;  %6305 = vst [vmem:[#allocation26_spill] sm:$0xff] %v4665_v58  ;;  %v4670_v3 = vadd.f32 %v4596_v63, %v1566_v51  ;;  %v4674_v59 = vadd.f32 %v1857_v25, %v1569_v33 }
 0x235   : > { %v1583_v20 = vpop.f32.mrf.mxu0  ;;  %v1872_v36 = vpop.f32.mrf.mxu1 }
 0x236   : > { %v1973_v44 = vadd.f32 %v1972_v15, %v4654_v12 }
 0x237   : > { %v1584_v47 = vpop.f32.mrf.mxu0  ;;  %v1873_v35 = vpop.f32.mrf.mxu1 }
 0x239   : > { %v1586_v20 = vpop.f32.mrf.mxu0  ;;  %v1875_v42 = vpop.f32.mrf.mxu1 }
 0x23a   : > { %v1974_v20 = vadd.f32 %v1973_v44, %v4660_v31  ;;  %v1582_v44 = vadd.f32 %v4311_v14, %v1581_v8 }
 0x23b   : > { %v1589_v36 = vpop.f32.mrf.mxu0  ;;  %v1878_v4 = vpop.f32.mrf.mxu1 }
 0x23c   : > { %v1975_v42 = vadd.f32 %v1974_v20, %v4665_v58  ;;  %v1585_v20 = vadd.f32 %v4311_v14, %v1584_v47  ;;  %v4686_v58 = vadd.f32 %v1870_v16, %v1582_v44  ;;  %v3817_v16 = vld [vmem:[%s6157_s2] ss:$0 sm:$0xff] }
 0x23d   : > { %v1591_v41 = vpop.f32.mrf.mxu0  ;;  %v1880_v23 = vpop.f32.mrf.mxu1 }
 0x23e   : > { %v1976_v21 = vadd.f32 %v1975_v42, %v4670_v3  ;;  %v4678_v41 = vadd.f32 %v1862_v54, %v1574_v61  ;;  %v4682_v23 = vadd.f32 %v1865_v28, %v1577_v2  ;;  %6307 = vst [vmem:[#allocation28_spill] sm:$0xff] %v4686_v58  ;;  %v1590_v42 = vadd.f32 %v4311_v14, %v1589_v36 }
 0x23f   : > { %v1592_v56 = vpop.f32.mrf.mxu0  ;;  %v1881_v37 = vpop.f32.mrf.mxu1 }
 0x240   : > { %v1977_v11 = vadd.f32 %v1976_v21, %v4674_v59  ;;  %6306 = vst [vmem:[#allocation27_spill] sm:$0xff] %v4682_v23  ;;  %v1593_v21 = vadd.f32 %v4311_v14, %v1592_v56 }
 0x241   : > { %v1594_v15 = vpop.f32.mrf.mxu0  ;;  %v1883_v63 = vpop.f32.mrf.mxu1 }
 0x242   : > { %v1978_v40 = vadd.f32 %v1977_v11, %v4678_v41  ;;  %v4690_v15 = vadd.f32 %v1873_v35, %v1585_v20  ;;  %v4694_v63 = vadd.f32 %v1878_v4, %v1590_v42 }
 0x243   : > { %v1597_v51 = vpop.f32.mrf.mxu0  ;;  %v1886_v25 = vpop.f32.mrf.mxu1 }
 0x244   : > { %v1979_v8 = vadd.f32 %v1978_v40, %v4682_v23  ;;  %v1598_v44 = vadd.f32 %v3817_v16, %v1597_v51  ;;  %v4700_v40 = vadd.f32 %v1881_v37, %v1593_v21 }
 0x245   : > { %v1599_v33 = vpop.f32.mrf.mxu0  ;;  %v1888_v54 = vpop.f32.mrf.mxu1 }
 0x246   : > { %v1980_v47 = vadd.f32 %v1979_v8, %v4686_v58  ;;  %v4703_v54 = vadd.f32 %v1886_v25, %v1598_v44 }
 0x247   : > { %v1600_v61 = vpop.f32.mrf.mxu0  ;;  %v1889_v28 = vpop.f32.mrf.mxu1 }
 0x248   : > { %v1981_v33 = vadd.f32 %v1980_v47, %v4690_v15  ;;  %v1601_v35 = vadd.f32 %v3817_v16, %v1600_v61 }
 0x249   : > { %v1602_v2 = vpop.f32.mrf.mxu0  ;;  %v1891_v36 = vpop.f32.mrf.mxu1 }
 0x24a   : > { %v1982_v56 = vadd.f32 %v1981_v33, %v4694_v63  ;;  %v4706_v58 = vadd.f32 %v1889_v28, %v1601_v35 }
 0x24b   : > { %v1605_v11 = vpop.f32.mrf.mxu0  ;;  %v1894_v20 = vpop.f32.mrf.mxu1 }
 0x24c   : > { %v1606_v4 = vadd.f32 %v3817_v16, %v1605_v11  ;;  %v1983_v2 = vadd.f32 %v1982_v56, %v4700_v40 }
 0x24d   : > { %v1607_v14 = vpop.f32.mrf.mxu0  ;;  %v1896_v42 = vpop.f32.mrf.mxu1 }
 0x24e   : > { %v1984_v37 = vadd.f32 %v1983_v2, %v4703_v54  ;;  %v4709_v21 = vadd.f32 %v1894_v20, %v1606_v4 }
 0x24f   : > { %v1608_v8 = vpop.f32.mrf.mxu0  ;;  %v1897_v36 = vpop.f32.mrf.mxu1 }
 0x250   : > { %v1609_v51 = vadd.f32 %v3817_v16, %v1608_v8  ;;  %6308 = vst [vmem:[#allocation29_spill] sm:$0xff] %v4709_v21  ;;  %v1985_v33 = vadd.f32 %v1984_v37, %v4706_v58 }
 0x251   : > { %v1610_v23 = vpop.f32.mrf.mxu0  ;;  %v1899_v61 = vpop.f32.mrf.mxu1 }
 0x252   : > { %v4712_v25 = vadd.f32 %v1897_v36, %v1609_v51  ;;  %v1986_v56 = vadd.f32 %v1985_v33, %v4709_v21 }
 0x253   : > { %v1613_v47 = vpop.f32.mrf.mxu0  ;;  %v1902_v11 = vpop.f32.mrf.mxu1 }
 0x254   : > { %v1614_v44 = vadd.f32 %v3817_v16, %v1613_v47  ;;  %v1987_v23 = vadd.f32 %v1986_v56, %v4712_v25  ;;  %v2068_v56 = vlaneseq }
 0x255   : > { %v1615_v14 = vpop.f32.mrf.mxu0  ;;  %v1904_v35 = vpop.f32.mrf.mxu1 }
 0x256   : > { %v4715_v28 = vadd.f32 %v1902_v11, %v1614_v44 }
 0x257   : > { %v1616_v42 = vpop.f32.mrf.mxu0  ;;  %v1905_v20 = vpop.f32.mrf.mxu1 }
 0x258   : > { %v1617_v8 = vadd.f32 %v3817_v16, %v1616_v42  ;;  %v1988_v2 = vadd.f32 %v1987_v23, %v4715_v28  ;;  %v4722_v16 = vshrl.u32 %v2068_v56, 7 }
 0x259   : > { %v1618_v4 = vpop.f32.mrf.mxu0  ;;  %v1907_v51 = vpop.f32.mrf.mxu1 }
 0x25a   : > { %v4719_v61 = vadd.f32 %v1905_v20, %v1617_v8  ;;  %v6184_v23 = vsub.s32 0, %v4722_v16 }
 0x25c   : > { %v1989_v36 = vadd.f32 %v1988_v2, %v4719_v61 }
 0x25e   : > { %v1990_v37 = vrot.slane %v1989_v36, 4 }
 0x260   : > { %v1991_v47 = vadd.f32 %v1990_v37, %v1989_v36 }
 0x262   : > { %v1992_v14 = vrot.slane %v1991_v47, 2 }
 0x264   : > { %v1993_v33 = vadd.f32 %v1992_v14, %v1991_v47 }
 0x266   : > { %v1994_v44 = vrot.slane %v1993_v33, 1 }
 0x268   : > { %v1995_v11 = vadd.f32 %v1994_v44, %v1993_v33 }
 0x26a   : > { %3348 = vmatmul.mubr.f32.vlgmr.msra.gmra.mxu0 %v1995_v11 }
 0x32a   : > { %v2062_v35 = vpop.f32.mrf.mxu0 }
 0x32b   : > { %v2067_v42 = vmul.f32 0.00024414063, %v2062_v35 }
 0x32c   : > { %v3349_v21 = vpop.f32.mrf.mxu0 }
 0x32d   : > { %v4727_v8 = vrot.slane %v2067_v42, %v6184_v23 }
 0x32f   : > { %v4731_v20 = vsub.f32 %v4315_v22, %v4727_v8  ;;  %v4735_v4 = vsub.f32 %v4324_v32, %v4727_v8  ;;  %v4739_v21 = vsub.f32 %v4327_v38, %v4727_v8  ;;  %v4747_v36 = vsub.f32 %v4334_v48, %v4727_v8 }
 0x330   : > { %v4751_v22 = vsub.f32 %v4337_v55, %v4727_v8  ;;  %v4757_v38 = vsub.f32 %v4346_v1, %v4727_v8  ;;  %v4763_v48 = vsub.f32 %v4349_v7, %v4727_v8  ;;  %v4769_v44 = vsub.f32 %v4356_v19, %v4727_v8 }
 0x331   : > { %v2136_v2 = vmul.f32 %v4731_v20, %v4731_v20  ;;  %v2137_v51 = vmul.f32 %v4735_v4, %v4735_v4  ;;  %v2138_v32 = vmul.f32 %v4739_v21, %v4739_v21  ;;  %v2139_v47 = vmul.f32 %v4747_v36, %v4747_v36 }
 0x332   : > { %v2140_v55 = vmul.f32 %v4751_v22, %v4751_v22  ;;  %v2141_v1 = vmul.f32 %v4757_v38, %v4757_v38  ;;  %v4775_v35 = vsub.f32 %v4359_v27, %v4727_v8  ;;  %v2142_v7 = vmul.f32 %v4763_v48, %v4763_v48 }
 0x333   : > { %v2200_v37 = vadd.f32 %v2137_v51, %v2136_v2  ;;  %v4781_v42 = vsub.f32 %v4368_v39, %v4727_v8  ;;  %v2143_v19 = vmul.f32 %v4769_v44, %v4769_v44  ;;  %v4787_v51 = vsub.f32 %v4371_v45, %v4727_v8 }
 0x334   : > { %v2144_v27 = vmul.f32 %v4775_v35, %v4775_v35 }
 0x335   : > { %v2201_v14 = vadd.f32 %v2200_v37, %v2138_v32  ;;  %v4793_v37 = vsub.f32 %v4378_v57, %v4727_v8  ;;  %v2145_v39 = vmul.f32 %v4781_v42, %v4781_v42  ;;  %v2146_v45 = vmul.f32 %v4787_v51, %v4787_v51 }
 0x337   : > { %v2202_v33 = vadd.f32 %v2201_v14, %v2139_v47  ;;  %v4799_v14 = vsub.f32 %v4381_v0, %v4727_v8  ;;  %v2147_v57 = vmul.f32 %v4793_v37, %v4793_v37 }
 0x339   : > { %v2203_v11 = vadd.f32 %v2202_v33, %v2140_v55  ;;  %v4805_v33 = vsub.f32 %v4388_v10, %v4727_v8  ;;  %v2148_v0 = vmul.f32 %v4799_v14, %v4799_v14 }
 0x33b   : > { %v2204_v56 = vadd.f32 %v2203_v11, %v2141_v1  ;;  %v4811_v11 = vsub.f32 %v4391_v18, %v4727_v8  ;;  %v2149_v10 = vmul.f32 %v4805_v33, %v4805_v33 }
 0x33d   : > { %v2205_v2 = vadd.f32 %v2204_v56, %v2142_v7  ;;  %v4817_v56 = vsub.f32 %v4394_v26, %v4727_v8  ;;  %v2150_v18 = vmul.f32 %v4811_v11, %v4811_v11 }
 0x33f   : > { %v2206_v32 = vadd.f32 %v2205_v2, %v2143_v19  ;;  %v6309_v2 = vld [vmem:[#allocation12_spill] sm:$0xff]  ;;  %v2151_v26 = vmul.f32 %v4817_v56, %v4817_v56 }
 0x341   : > { %v2207_v47 = vadd.f32 %v2206_v32, %v2144_v27  ;;  %v4823_v27 = vsub.f32 %v6309_v2, %v4727_v8 }
 0x343   : > { %v2208_v55 = vadd.f32 %v2207_v47, %v2145_v39  ;;  %6310 = vst [vmem:[#allocation12_spill] sm:$0xff] %v4823_v27  ;;  %v6311_v39 = vld [vmem:[#allocation13_spill] sm:$0xff] }
 0x344   : > { %v4829_v47 = vsub.f32 %v6311_v39, %v4727_v8  ;;  %v6317_v39 = vld [vmem:[#allocation16_spill] sm:$0xff] }
 0x345   : > { %v2209_v1 = vadd.f32 %v2208_v55, %v2146_v45  ;;  %v6313_v55 = vld [vmem:[#allocation14_spill] sm:$0xff]  ;;  %v4847_v23 = vsub.f32 %v6317_v39, %v4727_v8  ;;  %v6321_v39 = vld [vmem:[#allocation19_spill] sm:$0xff] }
 0x346   : > { %6312 = vst [vmem:[#allocation13_spill] sm:$0xff] %v4829_v47 }
 0x347   : > { %v2210_v7 = vadd.f32 %v2209_v1, %v2147_v57  ;;  %v4835_v57 = vsub.f32 %v6313_v55, %v4727_v8  ;;  %v2152_v1 = vmul.f32 %v4823_v27, %v4823_v27  ;;  %v6318_v55 = vld [vmem:[#allocation17_spill] sm:$0xff] }
 0x348   : > { %v4853_v27 = vsub.f32 %v6318_v55, %v4727_v8  ;;  %v6323_v55 = vld [vmem:[#allocation20_spill] sm:$0xff] }
 0x349   : > { %v2211_v19 = vadd.f32 %v2210_v7, %v2148_v0  ;;  %6314 = vst [vmem:[#allocation14_spill] sm:$0xff] %v4835_v57  ;;  %v6315_v7 = vld [vmem:[#allocation15_spill] sm:$0xff] }
 0x34a   : > { %v4841_v2 = vsub.f32 %v6315_v7, %v4727_v8  ;;  %6319 = vst [vmem:[#allocation16_spill] sm:$0xff] %v4853_v27  ;;  %v6320_v7 = vld [vmem:[#allocation18_spill] sm:$0xff] }
 0x34b   : > { %v2212_v32 = vadd.f32 %v2211_v19, %v2149_v10  ;;  %v2153_v10 = vmul.f32 %v4829_v47, %v4829_v47  ;;  %v4859_v47 = vsub.f32 %v6320_v7, %v4727_v8  ;;  %v4877_v7 = vsub.f32 %v4430_v52, %v4727_v8 }
 0x34c   : > { %6316 = vst [vmem:[#allocation15_spill] sm:$0xff] %v4841_v2 }
 0x34d   : > { %v2213_v45 = vadd.f32 %v2212_v32, %v2150_v18  ;;  %v2154_v18 = vmul.f32 %v4835_v57, %v4835_v57  ;;  %v4865_v57 = vsub.f32 %v6321_v39, %v4727_v8  ;;  %6324 = vst [vmem:[#allocation18_spill] sm:$0xff] %v4877_v7  ;;  %v6325_v39 = vld [vmem:[#allocation21_spill] sm:$0xff]  ;;  %v2161_v52 = vmul.f32 %v4877_v7, %v4877_v7 }
 0x34f   : > { %v2214_v0 = vadd.f32 %v2213_v45, %v2151_v26  ;;  %v2155_v26 = vmul.f32 %v4841_v2, %v4841_v2  ;;  %6322 = vst [vmem:[#allocation17_spill] sm:$0xff] %v4865_v57  ;;  %v4871_v2 = vsub.f32 %v6323_v55, %v4727_v8  ;;  %v4889_v55 = vsub.f32 %v4436_v6, %v4727_v8 }
 0x351   : > { %v2215_v19 = vadd.f32 %v2214_v0, %v2152_v1  ;;  %v2156_v1 = vmul.f32 %v4847_v23, %v4847_v23  ;;  %v2163_v6 = vmul.f32 %v4889_v55, %v4889_v55 }
 0x353   : > { %v2216_v32 = vadd.f32 %v2215_v19, %v2153_v10  ;;  %v2157_v10 = vmul.f32 %v4853_v27, %v4853_v27  ;;  %v4883_v27 = vsub.f32 %v6325_v39, %v4727_v8  ;;  %v4901_v39 = vsub.f32 %v4444_v30, %v4727_v8 }
 0x355   : > { %v2217_v45 = vadd.f32 %v2216_v32, %v2154_v18  ;;  %v2158_v18 = vmul.f32 %v4859_v47, %v4859_v47  ;;  %v2165_v30 = vmul.f32 %v4901_v39, %v4901_v39 }
 0x357   : > { %v2218_v0 = vadd.f32 %v2217_v45, %v2155_v26  ;;  %v2159_v26 = vmul.f32 %v4865_v57, %v4865_v57 }
 0x359   : > { %v2219_v19 = vadd.f32 %v2218_v0, %v2156_v1  ;;  %v2160_v1 = vmul.f32 %v4871_v2, %v4871_v2 }
 0x35b   : > { %v2220_v32 = vadd.f32 %v2219_v19, %v2157_v10  ;;  %v6326_v19 = vld [vmem:[#allocation22_spill] sm:$0xff] }
 0x35c   : > { %v4895_v57 = vsub.f32 %v6326_v19, %v4727_v8  ;;  %v4913_v19 = vsub.f32 %v4450_v53, %v4727_v8 }
 0x35d   : > { %v2221_v45 = vadd.f32 %v2220_v32, %v2158_v18  ;;  %v2162_v18 = vmul.f32 %v4883_v27, %v4883_v27 }
 0x35e   : > { %v2167_v53 = vmul.f32 %v4913_v19, %v4913_v19 }
 0x35f   : > { %v2222_v0 = vadd.f32 %v2221_v45, %v2159_v26  ;;  %v6327_v45 = vld [vmem:[#allocation23_spill] sm:$0xff] }
 0x360   : > { %v4907_v7 = vsub.f32 %v6327_v45, %v4727_v8  ;;  %v4925_v45 = vsub.f32 %v4562_v24, %v4727_v8 }
 0x361   : > { %v2223_v10 = vadd.f32 %v2222_v0, %v2160_v1  ;;  %v2164_v1 = vmul.f32 %v4895_v57, %v4895_v57 }
 0x362   : > { %v2169_v24 = vmul.f32 %v4925_v45, %v4925_v45 }
 0x363   : > { %v2224_v32 = vadd.f32 %v2223_v10, %v2161_v52  ;;  %v4919_v10 = vsub.f32 %v4554_v60, %v4727_v8 }
 0x365   : > { %v2225_v26 = vadd.f32 %v2224_v32, %v2162_v18  ;;  %v2166_v18 = vmul.f32 %v4907_v7, %v4907_v7  ;;  %v2168_v60 = vmul.f32 %v4919_v10, %v4919_v10 }
 0x367   : > { %v2226_v0 = vadd.f32 %v2225_v26, %v2163_v6  ;;  %v4931_v26 = vsub.f32 %v4570_v5, %v4727_v8 }
 0x369   : > { %v2227_v52 = vadd.f32 %v2226_v0, %v2164_v1  ;;  %v4937_v0 = vsub.f32 %v4578_v49, %v4727_v8  ;;  %v2170_v5 = vmul.f32 %v4931_v26, %v4931_v26 }
 0x36b   : > { %v2228_v32 = vadd.f32 %v2227_v52, %v2165_v30  ;;  %v4943_v52 = vsub.f32 %v4586_v9, %v4727_v8  ;;  %v2171_v49 = vmul.f32 %v4937_v0, %v4937_v0 }
 0x36d   : > { %v2229_v6 = vadd.f32 %v2228_v32, %v2166_v18  ;;  %v4949_v32 = vsub.f32 %v4592_v29, %v4727_v8  ;;  %v2172_v9 = vmul.f32 %v4943_v52, %v4943_v52 }
 0x36f   : > { %v2230_v1 = vadd.f32 %v2229_v6, %v2167_v53  ;;  %v4955_v6 = vsub.f32 %v4600_v46, %v4727_v8  ;;  %v2173_v29 = vmul.f32 %v4949_v32, %v4949_v32 }
 0x371   : > { %v2231_v30 = vadd.f32 %v2230_v1, %v2168_v60  ;;  %v4961_v1 = vsub.f32 %v4606_v62, %v4727_v8  ;;  %v2174_v46 = vmul.f32 %v4955_v6, %v4955_v6 }
 0x373   : > { %v2232_v18 = vadd.f32 %v2231_v30, %v2169_v24  ;;  %6328 = vst [vmem:[#allocation19_spill] sm:$0xff] %v4961_v1  ;;  %v4967_v30 = vsub.f32 %v4612_v13, %v4727_v8  ;;  %v2175_v62 = vmul.f32 %v4961_v1, %v4961_v1 }
 0x375   : > { %v2233_v53 = vadd.f32 %v2232_v18, %v2170_v5  ;;  %v4973_v18 = vsub.f32 %v4618_v34, %v4727_v8  ;;  %v2176_v13 = vmul.f32 %v4967_v30, %v4967_v30 }
 0x377   : > { %v2234_v60 = vadd.f32 %v2233_v53, %v2171_v49  ;;  %6329 = vst [vmem:[#allocation20_spill] sm:$0xff] %v4973_v18  ;;  %v4979_v53 = vsub.f32 %v4624_v50, %v4727_v8  ;;  %v2177_v34 = vmul.f32 %v4973_v18, %v4973_v18 }
 0x379   : > { %v2235_v24 = vadd.f32 %v2234_v60, %v2172_v9  ;;  %v4985_v60 = vsub.f32 %v4630_v17, %v4727_v8  ;;  %v2178_v50 = vmul.f32 %v4979_v53, %v4979_v53 }
 0x37b   : > { %v2236_v5 = vadd.f32 %v2235_v24, %v2173_v29  ;;  %v6330_v24 = vld [vmem:[#allocation24_spill] sm:$0xff]  ;;  %v2179_v17 = vmul.f32 %v4985_v60, %v4985_v60 }
 0x37c   : > { %v4991_v1 = vsub.f32 %v6330_v24, %v4727_v8  ;;  %v5009_v24 = vsub.f32 %v4654_v12, %v4727_v8 }
 0x37d   : > { %v2237_v49 = vadd.f32 %v2236_v5, %v2174_v46  ;;  %v4997_v5 = vsub.f32 %v4642_v43, %v4727_v8 }
 0x37e   : > { %6331 = vst [vmem:[#allocation21_spill] sm:$0xff] %v4991_v1  ;;  %v2183_v12 = vmul.f32 %v5009_v24, %v5009_v24 }
 0x37f   : > { %v2238_v9 = vadd.f32 %v2237_v49, %v2175_v62  ;;  %v6332_v49 = vld [vmem:[#allocation25_spill] sm:$0xff]  ;;  %v2181_v43 = vmul.f32 %v4997_v5, %v4997_v5 }
 0x380   : > { %v5003_v18 = vsub.f32 %v6332_v49, %v4727_v8  ;;  %v6334_v49 = vld [vmem:[#allocation26_spill] sm:$0xff] }
 0x381   : > { %v2239_v29 = vadd.f32 %v2238_v9, %v2176_v13  ;;  %v2180_v13 = vmul.f32 %v4991_v1, %v4991_v1  ;;  %v5021_v1 = vsub.f32 %v6334_v49, %v4727_v8  ;;  %v5039_v49 = vsub.f32 %v4678_v41, %v4727_v8 }
 0x383   : > { %v2240_v46 = vadd.f32 %v2239_v29, %v2177_v34  ;;  %v5015_v29 = vsub.f32 %v4660_v31, %v4727_v8  ;;  %6335 = vst [vmem:[#allocation23_spill] sm:$0xff] %v5021_v1  ;;  %v2188_v41 = vmul.f32 %v5039_v49, %v5039_v49 }
 0x385   : > { %v2241_v62 = vadd.f32 %v2240_v46, %v2178_v50  ;;  %6333 = vst [vmem:[#allocation22_spill] sm:$0xff] %v5015_v29  ;;  %v2182_v50 = vmul.f32 %v5003_v18, %v5003_v18  ;;  %v2184_v31 = vmul.f32 %v5015_v29, %v5015_v29 }
 0x387   : > { %v2242_v9 = vadd.f32 %v2241_v62, %v2179_v17  ;;  %v5027_v62 = vsub.f32 %v4670_v3, %v4727_v8 }
 0x389   : > { %v2243_v34 = vadd.f32 %v2242_v9, %v2180_v13  ;;  %v5033_v9 = vsub.f32 %v4674_v59, %v4727_v8  ;;  %v2186_v3 = vmul.f32 %v5027_v62, %v5027_v62 }
 0x38b   : > { %v2244_v46 = vadd.f32 %v2243_v34, %v2181_v43  ;;  %v2185_v43 = vmul.f32 %v5021_v1, %v5021_v1  ;;  %v2187_v59 = vmul.f32 %v5033_v9, %v5033_v9 }
 0x38d   : > { %v2245_v17 = vadd.f32 %v2244_v46, %v2182_v50  ;;  %v6336_v46 = vld [vmem:[#allocation27_spill] sm:$0xff] }
 0x38e   : > { %v5045_v29 = vsub.f32 %v6336_v46, %v4727_v8  ;;  %v5063_v46 = vsub.f32 %v4694_v63, %v4727_v8 }
 0x38f   : > { %v2246_v13 = vadd.f32 %v2245_v17, %v2183_v12  ;;  %v6337_v17 = vld [vmem:[#allocation28_spill] sm:$0xff] }
 0x390   : > { %v5051_v1 = vsub.f32 %v6337_v17, %v4727_v8  ;;  %6339 = vst [vmem:[#allocation25_spill] sm:$0xff] %v5063_v46  ;;  %v5069_v17 = vsub.f32 %v4700_v40, %v4727_v8  ;;  %v2192_v63 = vmul.f32 %v5063_v46, %v5063_v46 }
 0x391   : > { %v2247_v34 = vadd.f32 %v2246_v13, %v2184_v31  ;;  %v5057_v13 = vsub.f32 %v4690_v15, %v4727_v8 }
 0x392   : > { %6340 = vst [vmem:[#allocation26_spill] sm:$0xff] %v5069_v17  ;;  %v2193_v40 = vmul.f32 %v5069_v17, %v5069_v17 }
 0x393   : > { %v2248_v50 = vadd.f32 %v2247_v34, %v2185_v43  ;;  %6338 = vst [vmem:[#allocation24_spill] sm:$0xff] %v5057_v13  ;;  %v2189_v43 = vmul.f32 %v5045_v29, %v5045_v29  ;;  %v2191_v15 = vmul.f32 %v5057_v13, %v5057_v13 }
 0x395   : > { %v2249_v12 = vadd.f32 %v2248_v50, %v2186_v3  ;;  %v2190_v3 = vmul.f32 %v5051_v1, %v5051_v1 }
 0x397   : > { %v2250_v31 = vadd.f32 %v2249_v12, %v2187_v59  ;;  %v5075_v12 = vsub.f32 %v4703_v54, %v4727_v8 }
 0x399   : > { %v2251_v34 = vadd.f32 %v2250_v31, %v2188_v41  ;;  %6341 = vst [vmem:[#allocation27_spill] sm:$0xff] %v5075_v12  ;;  %v5081_v31 = vsub.f32 %v4706_v58, %v4727_v8  ;;  %v2194_v54 = vmul.f32 %v5075_v12, %v5075_v12 }
 0x39b   : > { %v2252_v50 = vadd.f32 %v2251_v34, %v2189_v43  ;;  %6342 = vst [vmem:[#allocation28_spill] sm:$0xff] %v5081_v31  ;;  %v6343_v34 = vld [vmem:[#allocation29_spill] sm:$0xff]  ;;  %v2195_v58 = vmul.f32 %v5081_v31, %v5081_v31 }
 0x39c   : > { %v5087_v13 = vsub.f32 %v6343_v34, %v4727_v8  ;;  %v5105_v34 = vsub.f32 %v4719_v61, %v4727_v8 }
 0x39d   : > { %v2253_v59 = vadd.f32 %v2252_v50, %v2190_v3  ;;  %v5093_v50 = vsub.f32 %v4712_v25, %v4727_v8 }
 0x39e   : > { %6344 = vst [vmem:[#allocation29_spill] sm:$0xff] %v5087_v13 }
 0x39f   : > { %v2254_v41 = vadd.f32 %v2253_v59, %v2191_v15  ;;  %6345 = vst [vmem:[#allocation30_spill] sm:$0xff] %v5093_v50  ;;  %v5099_v59 = vsub.f32 %v4715_v28, %v4727_v8  ;;  %v2197_v25 = vmul.f32 %v5093_v50, %v5093_v50  ;;  %v2199_v28 = vmul.f32 %v5105_v34, %v5105_v34 }
 0x3a1   : > { %v2255_v43 = vadd.f32 %v2254_v41, %v2192_v63  ;;  %v2196_v63 = vmul.f32 %v5087_v13, %v5087_v13 }
 0x3a3   : > { %v2256_v3 = vadd.f32 %v2255_v43, %v2193_v40  ;;  %v2198_v43 = vmul.f32 %v5099_v59, %v5099_v59 }
 0x3a5   : > { %v2257_v15 = vadd.f32 %v2256_v3, %v2194_v54 }
 0x3a7   : > { %v2258_v41 = vadd.f32 %v2257_v15, %v2195_v58 }
 0x3a9   : > { %v2259_v40 = vadd.f32 %v2258_v41, %v2196_v63 }
 0x3ab   : > { %v2260_v54 = vadd.f32 %v2259_v40, %v2197_v25  ;;  %v1909_v25 = vld [vmem:[%s6158_s3] sm:$0x1] }
 0x3ad   : > { %v2261_v3 = vadd.f32 %v2260_v54, %v2198_v43  ;;  %v6346_v43 = vsub.s32 0, %v4722_v16 }
 0x3af   : > { %v2262_v31 = vadd.f32 %v2261_v3, %v2199_v28  ;;  %v6349_v28 = vld [vmem:[#allocation14_spill] sm:$0xff]  ;;  %v6350_v3 = vld [vmem:[#allocation15_spill] sm:$0xff] }
 0x3b1   : > { %v2263_v12 = vrot.slane %v2262_v31, 4 }
 0x3b3   : > { %v2264_v13 = vadd.f32 %v2263_v12, %v2262_v31  ;;  %v6347_v31 = vld [vmem:[#allocation12_spill] sm:$0xff] }
 0x3b5   : > { %v2265_v58 = vrot.slane %v2264_v13, 2 }
 0x3b7   : > { %v2266_v15 = vadd.f32 %v2265_v58, %v2264_v13  ;;  %v6351_v58 = vld [vmem:[#allocation16_spill] sm:$0xff] }
 0x3b9   : > { %v2267_v17 = vrot.slane %v2266_v15, 1 }
 0x3bb   : > { %v2268_v61 = vadd.f32 %v2267_v17, %v2266_v15 }
 0x3bd   : > { %3383 = vmatmul.mubr.f32.vlgmr.msra.gmra.mxu1 %v2268_v61 }
 0x47d   : > { %v2335_v8 = vpop.f32.mrf.mxu1 }
 0x47e   : > { %v2339_v50 = vmul.f32 0.00024414063, %v2335_v8  ;;  %v6352_v8 = vld [vmem:[#allocation17_spill] sm:$0xff] }
 0x47f   : > { %v3384_v46 = vpop.f32.mrf.mxu1 }
 0x480   : > { %v2340_v63 = vadd.f32 1e-05, %v2339_v50  ;;  %v6348_v50 = vld [vmem:[#allocation13_spill] sm:$0xff] }
 0x482   : > { %3687 = vrsqrt.f32 %v2340_v63 }
 0x48f   : > { %v3688_v41 = vpop.eup %3687 }
 0x490   : > { %v2342_v40 = vmul.f32 %v3688_v41, %v1909_v25  ;;  %v6353_v25 = vld [vmem:[#allocation18_spill] sm:$0xff] }
 0x492   : > { %v5118_v54 = vrot.slane %v2342_v40, %v6346_v43 }
 0x494   : > { %v5122_v13 = vmul.f32 %v5118_v54, %v4731_v20  ;;  %v5126_v46 = vmul.f32 %v5118_v54, %v4735_v4  ;;  %v5130_v17 = vmul.f32 %v5118_v54, %v4739_v21  ;;  %v5134_v12 = vmul.f32 %v5118_v54, %v4747_v36 }
 0x495   : > { %v5138_v16 = vmul.f32 %v5118_v54, %v4751_v22  ;;  %v5142_v20 = vmul.f32 %v5118_v54, %v4757_v38  ;;  %v5146_v4 = vmul.f32 %v5118_v54, %v4763_v48  ;;  %v5150_v21 = vmul.f32 %v5118_v54, %v4769_v44 }
 0x496   : > { %v5154_v36 = vmul.f32 %v5118_v54, %v4775_v35  ;;  %v5158_v22 = vmul.f32 %v5118_v54, %v4781_v42  ;;  %v5162_v38 = vmul.f32 %v5118_v54, %v4787_v51  ;;  %v5166_v48 = vmul.f32 %v5118_v54, %v4793_v37 }
 0x497   : > { %v5170_v44 = vmul.f32 %v5118_v54, %v4799_v14  ;;  %v5174_v35 = vmul.f32 %v5118_v54, %v4805_v33  ;;  %v5178_v42 = vmul.f32 %v5118_v54, %v4811_v11  ;;  %v5182_v51 = vmul.f32 %v5118_v54, %v4817_v56 }
 0x498   : > { %v5186_v37 = vmul.f32 %v5118_v54, %v6347_v31  ;;  %v5190_v14 = vmul.f32 %v5118_v54, %v6348_v50  ;;  %v5194_v33 = vmul.f32 %v5118_v54, %v6349_v28  ;;  %v5198_v11 = vmul.f32 %v5118_v54, %v6350_v3  ;;  %v6354_v50 = vld [vmem:[#allocation19_spill] sm:$0xff]  ;;  %v6355_v28 = vld [vmem:[#allocation20_spill] sm:$0xff]  ;;  %v6356_v3 = vld [vmem:[#allocation21_spill] sm:$0xff] }
 0x499   : > { %v5202_v56 = vmul.f32 %v5118_v54, %v4847_v23  ;;  %v5206_v15 = vmul.f32 %v5118_v54, %v6351_v58  ;;  %v5210_v61 = vmul.f32 %v5118_v54, %v4859_v47  ;;  %v5214_v63 = vmul.f32 %v5118_v54, %v6352_v8 }
 0x49a   : > { %v5218_v41 = vmul.f32 %v5118_v54, %v4871_v2  ;;  %v5222_v23 = vmul.f32 %v5118_v54, %v6353_v25  ;;  %v5226_v40 = vmul.f32 %v5118_v54, %v4883_v27  ;;  %v5230_v47 = vmul.f32 %v5118_v54, %v4889_v55  ;;  %v6357_v25 = vld [vmem:[#allocation22_spill] sm:$0xff] }
 0x49b   : > { %v5234_v43 = vmul.f32 %v5118_v54, %v4895_v57  ;;  %v5238_v2 = vmul.f32 %v5118_v54, %v4901_v39  ;;  %v5242_v31 = vmul.f32 %v5118_v54, %v4907_v7  ;;  %v5246_v27 = vmul.f32 %v5118_v54, %v4913_v19 }
 0x49c   : > { %v5250_v55 = vmul.f32 %v5118_v54, %v4919_v10  ;;  %v5254_v57 = vmul.f32 %v5118_v54, %v4925_v45  ;;  %v5258_v39 = vmul.f32 %v5118_v54, %v4931_v26  ;;  %v5262_v7 = vmul.f32 %v5118_v54, %v4937_v0 }
 0x49d   : > { %v5266_v19 = vmul.f32 %v5118_v54, %v4943_v52  ;;  %v5270_v10 = vmul.f32 %v5118_v54, %v4949_v32  ;;  %v5274_v45 = vmul.f32 %v5118_v54, %v4955_v6  ;;  %v5278_v26 = vmul.f32 %v5118_v54, %v6354_v50  ;;  %v6358_v50 = vld [vmem:[#allocation23_spill] sm:$0xff] }
 0x49e   : > { %v5282_v0 = vmul.f32 %v5118_v54, %v4967_v30  ;;  %v5286_v52 = vmul.f32 %v5118_v54, %v6355_v28  ;;  %v5290_v32 = vmul.f32 %v5118_v54, %v4979_v53  ;;  %v5294_v6 = vmul.f32 %v5118_v54, %v4985_v60 }
 0x49f   : > { %v5298_v58 = vmul.f32 %v5118_v54, %v6356_v3  ;;  %v5302_v30 = vmul.f32 %v5118_v54, %v4997_v5  ;;  %v5306_v8 = vmul.f32 %v5118_v54, %v5003_v18  ;;  %v5310_v53 = vmul.f32 %v5118_v54, %v5009_v24  ;;  %v5323_v5 = vld [vmem:[%s6159_s4] ss:$0 sm:$0xff] }
 0x4a0   : > { %v5314_v60 = vmul.f32 %v5118_v54, %v6357_v25  ;;  %v5318_v28 = vmul.f32 %v5118_v54, %v6358_v50  ;;  %v5327_v18 = vmul.f32 %v5118_v54, %v5027_v62  ;;  %v5331_v24 = vmul.f32 %v5118_v54, %v5033_v9 }
 0x4a1   : > { %v5335_v3 = vmul.f32 %v5118_v54, %v5039_v49  ;;  %v5339_v25 = vmul.f32 %v5118_v54, %v5045_v29  ;;  %v5343_v50 = vmul.f32 %v5118_v54, %v5051_v1 }
 0x4a2   : > { %6359 = vst [vmem:[#allocation12_spill] sm:$0xff] %v5318_v28  ;;  %6360 = vst [vmem:[#allocation13_spill] sm:$0xff] %v5327_v18  ;;  %v6365_v28 = vld [vmem:[#allocation24_spill] sm:$0xff]  ;;  %v6367_v18 = vld [vmem:[#allocation25_spill] sm:$0xff] }
 0x4a3   : > { %6361 = vst [vmem:[#allocation14_spill] sm:$0xff] %v5331_v24  ;;  %6362 = vst [vmem:[#allocation15_spill] sm:$0xff] %v5335_v3  ;;  %v5347_v62 = vmul.f32 %v5118_v54, %v6365_v28  ;;  %v5351_v9 = vmul.f32 %v5118_v54, %v6367_v18  ;;  %v6368_v24 = vld [vmem:[#allocation26_spill] sm:$0xff]  ;;  %v6369_v3 = vld [vmem:[#allocation27_spill] sm:$0xff] }
 0x4a4   : > { %6363 = vst [vmem:[#allocation16_spill] sm:$0xff] %v5339_v25  ;;  %6364 = vst [vmem:[#allocation17_spill] sm:$0xff] %v5343_v50  ;;  %v5355_v49 = vmul.f32 %v5118_v54, %v6368_v24  ;;  %v5359_v29 = vmul.f32 %v5118_v54, %v6369_v3  ;;  %v6370_v25 = vld [vmem:[#allocation28_spill] sm:$0xff]  ;;  %v6371_v50 = vld [vmem:[#allocation29_spill] sm:$0xff]  ;;  %v5375_v24 = vmul.f32 %v5118_v54, %v5099_v59 }
 0x4a5   : > { %6366 = vst [vmem:[#allocation18_spill] sm:$0xff] %v5347_v62  ;;  %v5363_v1 = vmul.f32 %v5118_v54, %v6370_v25  ;;  %v5367_v28 = vmul.f32 %v5118_v54, %v6371_v50  ;;  %v6372_v62 = vld [vmem:[#allocation30_spill] sm:$0xff]  ;;  %v5379_v3 = vmul.f32 %v5118_v54, %v5105_v34  ;;  %v5383_v25 = vadd.f32 %v5323_v5, %v5122_v13 }
 0x4a6   : > { %v5371_v18 = vmul.f32 %v5118_v54, %v6372_v62  ;;  %v5387_v50 = vadd.f32 %v5323_v5, %v5126_v46  ;;  %v5391_v62 = vadd.f32 %v5323_v5, %v5130_v17  ;;  %v5395_v59 = vadd.f32 %v5323_v5, %v5134_v12 }
 0x4a7   : > { %v5399_v34 = vadd.f32 %v5323_v5, %v5138_v16  ;;  %v5403_v54 = vadd.f32 %v5323_v5, %v5142_v20  ;;  %v5407_v13 = vadd.f32 %v5323_v5, %v5146_v4  ;;  %v5411_v46 = vadd.f32 %v5323_v5, %v5150_v21 }
 0x4a8   : > { %6373 = vst [vmem:[#allocation19_spill] sm:$0xff] %v5387_v50  ;;  %6374 = vst [vmem:[#allocation20_spill] sm:$0xff] %v5391_v62  ;;  %v5415_v17 = vadd.f32 %v5323_v5, %v5154_v36  ;;  %v5419_v12 = vadd.f32 %v5323_v5, %v5158_v22  ;;  %v5423_v16 = vadd.f32 %v5323_v5, %v5162_v38  ;;  %vm2481_vm1 = vcmp.gt.f32.partialorder %v5383_v25, 0.0 }
 0x4a9   : > { %6375 = vst [vmem:[#allocation21_spill] sm:$0xff] %v5395_v59  ;;  %6376 = vst [vmem:[#allocation22_spill] sm:$0xff] %v5399_v34  ;;  %v5427_v20 = vadd.f32 %v5323_v5, %v5166_v48  ;;  %v5431_v4 = vadd.f32 %v5323_v5, %v5170_v44  ;;  %v5435_v21 = vadd.f32 %v5323_v5, %v5174_v35 }
 0x4aa   : > { %6377 = vst [vmem:[#allocation23_spill] sm:$0xff] %v5403_v54  ;;  %6378 = vst [vmem:[#allocation24_spill] sm:$0xff] %v5407_v13  ;;  %v5439_v36 = vadd.f32 %v5323_v5, %v5178_v42  ;;  %v5443_v22 = vadd.f32 %v5323_v5, %v5182_v51  ;;  %v5447_v38 = vadd.f32 %v5323_v5, %v5186_v37 }
 0x4ab   : > { %6379 = vst [vmem:[#allocation25_spill] sm:$0xff] %v5411_v46  ;;  %6380 = vst [vmem:[#allocation26_spill] sm:$0xff] %v5415_v17  ;;  %v5451_v48 = vadd.f32 %v5323_v5, %v5190_v14  ;;  %v5455_v44 = vadd.f32 %v5323_v5, %v5194_v33  ;;  %v5459_v35 = vadd.f32 %v5323_v5, %v5198_v11  ;;  %vm2494_vm14 = vcmp.gt.f32.partialorder %v5435_v21, 0.0 }
 0x4ac   : > { %6381 = vst [vmem:[#allocation27_spill] sm:$0xff] %v5419_v12  ;;  %6382 = vst [vmem:[#allocation28_spill] sm:$0xff] %v5423_v16  ;;  %v5463_v42 = vadd.f32 %v5323_v5, %v5202_v56  ;;  %v5467_v51 = vadd.f32 %v5323_v5, %v5206_v15  ;;  %v5471_v37 = vadd.f32 %v5323_v5, %v5210_v61  ;;  %vm2496_vm0 = vcmp.gt.f32.partialorder %v5443_v22, 0.0 }
 0x4ad   : > { %6383 = vst [vmem:[#allocation29_spill] sm:$0xff] %v5427_v20  ;;  %6384 = vst [vmem:[#allocation30_spill] sm:$0xff] %v5431_v4  ;;  %v5475_v14 = vadd.f32 %v5323_v5, %v5214_v63  ;;  %v5479_v33 = vadd.f32 %v5323_v5, %v5218_v41  ;;  %v5483_v11 = vadd.f32 %v5323_v5, %v5222_v23  ;;  %vm2497_vm15 = vcmp.gt.f32.partialorder %v5447_v38, 0.0 }
 0x4ae   : > { %v5487_v56 = vadd.f32 %v5323_v5, %v5226_v40  ;;  %v5491_v15 = vadd.f32 %v5323_v5, %v5230_v47  ;;  %v5495_v61 = vadd.f32 %v5323_v5, %v5234_v43  ;;  %v5499_v63 = vadd.f32 %v5323_v5, %v5238_v2 }
 0x4af   : > { %6385 = vst [vmem:[#allocation31_spill] sm:$0xff] %v5475_v14  ;;  %v5503_v41 = vadd.f32 %v5323_v5, %v5242_v31  ;;  %v5507_v23 = vadd.f32 %v5323_v5, %v5246_v27  ;;  %v5511_v40 = vadd.f32 %v5323_v5, %v5250_v55  ;;  %v5515_v47 = vadd.f32 %v5323_v5, %v5254_v57 }
 0x4b0   : > { %6386 = vst [vmem:[#allocation32_spill] sm:$0xff] %v5491_v15  ;;  %6387 = vst [vmem:[#allocation33_spill] sm:$0xff] %v5495_v61  ;;  %v5519_v43 = vadd.f32 %v5323_v5, %v5258_v39  ;;  %v5523_v2 = vadd.f32 %v5323_v5, %v5262_v7  ;;  %v5527_v31 = vadd.f32 %v5323_v5, %v5266_v19 }
 0x4b1   : > { %6388 = vst [vmem:[#allocation34_spill] sm:$0xff] %v5499_v63  ;;  %6389 = vst [vmem:[#allocation35_spill] sm:$0xff] %v5503_v41  ;;  %v5531_v27 = vadd.f32 %v5323_v5, %v5270_v10  ;;  %v5535_v55 = vadd.f32 %v5323_v5, %v5274_v45  ;;  %v5539_v57 = vadd.f32 %v5323_v5, %v5278_v26  ;;  %v6463_v41 = vmin.f32 %v5495_v61, 0.0 }
 0x4b2   : > { %6390 = vst [vmem:[#allocation36_spill] sm:$0xff] %v5507_v23  ;;  %v5543_v39 = vadd.f32 %v5323_v5, %v5282_v0  ;;  %v5547_v7 = vadd.f32 %v5323_v5, %v5286_v52  ;;  %v5551_v19 = vadd.f32 %v5323_v5, %v5290_v32  ;;  %v5555_v10 = vadd.f32 %v5323_v5, %v5294_v6  ;;  %v6402_v6 = vld [vmem:[#allocation12_spill] sm:$0xff] }
 0x4b3   : > { %6391 = vst [vmem:[#allocation37_spill] sm:$0xff] %v5535_v55  ;;  %6392 = vst [vmem:[#allocation38_spill] sm:$0xff] %v5539_v57  ;;  %v5559_v45 = vadd.f32 %v5323_v5, %v5298_v58  ;;  %v5563_v26 = vadd.f32 %v5323_v5, %v5302_v30  ;;  %v5567_v0 = vadd.f32 %v5323_v5, %v5306_v8 }
 0x4b4   : > { %6393 = vst [vmem:[#allocation39_spill] sm:$0xff] %v5543_v39  ;;  %6394 = vst [vmem:[#allocation40_spill] sm:$0xff] %v5547_v7  ;;  %v5571_v52 = vadd.f32 %v5323_v5, %v5310_v53  ;;  %v5575_v32 = vadd.f32 %v5323_v5, %v5314_v60  ;;  %v5579_v58 = vadd.f32 %v5323_v5, %v6402_v6  ;;  %v6467_v7 = vld [vmem:[#allocation30_spill] sm:$0xff]  ;;  %v6468_v39 = vmin.f32 %v5507_v23, 0.0 }
 0x4b5   : > { %6395 = vst [vmem:[#allocation41_spill] sm:$0xff] %v5551_v19  ;;  %6396 = vst [vmem:[#allocation42_spill] sm:$0xff] %v5555_v10  ;;  %vm2493_vm13 = vcmp.gt.f32.partialorder %v6467_v7, 0.0 }
 0x4b6   : > { %6397 = vst [vmem:[#allocation43_spill] sm:$0xff] %v5559_v45  ;;  %6398 = vst [vmem:[#allocation44_spill] sm:$0xff] %v5563_v26  ;;  %v6404_v45 = vld [vmem:[#allocation13_spill] sm:$0xff]  ;;  %v6406_v26 = vld [vmem:[#allocation14_spill] sm:$0xff]  ;;  %v5761_v57 = vmul.f32 1.442695, %v6468_v39 }
 0x4b7   : > { %6399 = vst [vmem:[#allocation45_spill] sm:$0xff] %v5567_v0  ;;  %6400 = vst [vmem:[#allocation46_spill] sm:$0xff] %v5571_v52  ;;  %v5583_v30 = vadd.f32 %v5323_v5, %v6404_v45  ;;  %v5587_v8 = vadd.f32 %v5323_v5, %v6406_v26  ;;  %v6408_v0 = vld [vmem:[#allocation15_spill] sm:$0xff]  ;;  %v6410_v52 = vld [vmem:[#allocation16_spill] sm:$0xff]  ;;  %v5607_v26 = vadd.f32 %v5323_v5, %v5351_v9 }
 0x4b8   : > { %6401 = vst [vmem:[#allocation47_spill] sm:$0xff] %v5575_v32  ;;  %6403 = vst [vmem:[#allocation12_spill] sm:$0xff] %v5579_v58  ;;  %v5591_v53 = vadd.f32 %v5323_v5, %v6408_v0  ;;  %v5595_v60 = vadd.f32 %v5323_v5, %v6410_v52  ;;  %v6412_v32 = vld [vmem:[#allocation17_spill] sm:$0xff]  ;;  %v6414_v58 = vld [vmem:[#allocation18_spill] sm:$0xff]  ;;  %v5611_v0 = vadd.f32 %v5323_v5, %v5355_v49 }
 0x4b9   : > { %6405 = vst [vmem:[#allocation13_spill] sm:$0xff] %v5583_v30  ;;  %6407 = vst [vmem:[#allocation14_spill] sm:$0xff] %v5587_v8  ;;  %v5599_v6 = vadd.f32 %v5323_v5, %v6412_v32  ;;  %v5603_v45 = vadd.f32 %v5323_v5, %v6414_v58  ;;  %v5615_v52 = vadd.f32 %v5323_v5, %v5359_v29  ;;  %v2546_v29 = vmin.f32 %v5387_v50, 0.0  ;;  %v6457_v30 = vld [vmem:[#allocation27_spill] sm:$0xff] }
 0x4ba   : > { %6409 = vst [vmem:[#allocation15_spill] sm:$0xff] %v5591_v53  ;;  %6411 = vst [vmem:[#allocation16_spill] sm:$0xff] %v5595_v60  ;;  %v5619_v32 = vadd.f32 %v5323_v5, %v5363_v1  ;;  %v5623_v58 = vadd.f32 %v5323_v5, %v5367_v28  ;;  %v5627_v9 = vadd.f32 %v5323_v5, %v5371_v18  ;;  %v2548_v1 = vmin.f32 %v5395_v59, 0.0  ;;  %v6465_v10 = vld [vmem:[#allocation35_spill] sm:$0xff] }
 0x4bb   : > { %6413 = vst [vmem:[#allocation17_spill] sm:$0xff] %v5599_v6  ;;  %6415 = vst [vmem:[#allocation18_spill] sm:$0xff] %v5603_v45  ;;  %v5631_v49 = vadd.f32 %v5323_v5, %v5375_v24  ;;  %v2550_v28 = vmin.f32 %v5403_v54, 0.0  ;;  %v2552_v18 = vmin.f32 %v5411_v46, 0.0  ;;  %v2554_v24 = vmin.f32 %v5419_v12, 0.0  ;;  %v6453_v6 = vld [vmem:[#allocation31_spill] sm:$0xff] }
 0x4bc   : > { %6416 = vst [vmem:[#allocation48_spill] sm:$0xff] %v5607_v26  ;;  %6417 = vst [vmem:[#allocation49_spill] sm:$0xff] %v5611_v0  ;;  %v2545_v0 = vmin.f32 %v5383_v25, 0.0  ;;  %v2556_v50 = vmin.f32 %v5427_v20, 0.0  ;;  %v5666_v20 = vadd.f32 %v5323_v5, %v5379_v3  ;;  %v2611_v59 = vmul.f32 1.442695, %v2546_v29 }
 0x4bd   : > { %6418 = vst [vmem:[#allocation50_spill] sm:$0xff] %v5615_v52  ;;  %6419 = vst [vmem:[#allocation51_spill] sm:$0xff] %v5619_v32  ;;  %v2547_v52 = vmin.f32 %v5391_v62, 0.0  ;;  %v2549_v32 = vmin.f32 %v5399_v34, 0.0  ;;  %v2557_v62 = vmin.f32 %v5431_v4, 0.0  ;;  %vm2490_vm10 = vcmp.gt.f32.partialorder %v6457_v30, 0.0 }
 0x4be   : > { %6420 = vst [vmem:[#allocation52_spill] sm:$0xff] %v5623_v58  ;;  %6421 = vst [vmem:[#allocation53_spill] sm:$0xff] %v5627_v9  ;;  %v2551_v58 = vmin.f32 %v5407_v13, 0.0  ;;  %v2553_v9 = vmin.f32 %v5415_v17, 0.0  ;;  %v2609_v4 = vmul.f32 1.442695, %v2545_v0 }
 0x4bf   : > { %6422 = vst [vmem:[#allocation54_spill] sm:$0xff] %v5631_v49  ;;  %v2555_v49 = vmin.f32 %v5423_v16, 0.0  ;;  %6423 = vst [vmem:[#allocation55_spill] sm:$0xff] %v5666_v20  ;;  %v2613_v14 = vmul.f32 1.442695, %v2547_v52  ;;  %v6451_v20 = vld [vmem:[#allocation25_spill] sm:$0xff] }
 0x4c0   : > { %v2615_v46 = vmul.f32 1.442695, %v2548_v1  ;;  %3689 = vpow2.f32 %v2609_v4  ;;  %v2617_v16 = vmul.f32 1.442695, %v2549_v32  ;;  %v2619_v3 = vmul.f32 1.442695, %v2550_v28 }
 0x4c1   : > { %3691 = vpow2.f32 %v2611_v59  ;;  %v2621_v29 = vmul.f32 1.442695, %v2551_v58  ;;  %v2623_v12 = vmul.f32 1.442695, %v2552_v18  ;;  %v2625_v5 = vmul.f32 1.442695, %v2553_v9 }
 0x4c2   : > { %3693 = vpow2.f32 %v2613_v14  ;;  %v2627_v52 = vmul.f32 1.442695, %v2554_v24  ;;  %v2629_v17 = vmul.f32 1.442695, %v2555_v49  ;;  %v2631_v32 = vmul.f32 1.442695, %v2556_v50 }
 0x4c3   : > { %3695 = vpow2.f32 %v2615_v46  ;;  %v2633_v0 = vmul.f32 1.442695, %v2557_v62  ;;  %v6431_v50 = vmin.f32 %v5439_v36, 0.0  ;;  %v6436_v4 = vmin.f32 %v5447_v38, 0.0  ;;  %v6441_v1 = vld [vmem:[#allocation20_spill] sm:$0xff] }
 0x4c4   : > { %3697 = vpow2.f32 %v2617_v16  ;;  %vm2483_vm3 = vcmp.gt.f32.partialorder %v6441_v1, 0.0  ;;  %v6444_v24 = vmin.f32 %v5455_v44, 0.0  ;;  %vm2488_vm8 = vcmp.gt.f32.partialorder %v6451_v20, 0.0  ;;  %v6461_v14 = vld [vmem:[#allocation28_spill] sm:$0xff] }
 0x4c5   : > { %3699 = vpow2.f32 %v2619_v3  ;;  %v6433_v3 = vmin.f32 %v5443_v22, 0.0  ;;  %vm2491_vm11 = vcmp.gt.f32.partialorder %v6461_v14, 0.0  ;;  %v5748_v59 = vmul.f32 1.442695, %v6463_v41 }
 0x4c6   : > { %3701 = vpow2.f32 %v2621_v29  ;;  %v6430_v29 = vmin.f32 %v5435_v21, 0.0  ;;  %v2645_v58 = vmul.f32 1.442695, %v6444_v24  ;;  %v6452_v24 = vmin.f32 %v5471_v37, 0.0 }
 0x4c7   : > { %3703 = vpow2.f32 %v2623_v12  ;;  %v2637_v12 = vmul.f32 1.442695, %v6431_v50  ;;  %v6437_v50 = vld [vmem:[#allocation19_spill] sm:$0xff] }
 0x4c8   : > { %3705 = vpow2.f32 %v2625_v5  ;;  %v2635_v49 = vmul.f32 1.442695, %v6430_v29  ;;  %vm2482_vm2 = vcmp.gt.f32.partialorder %v6437_v50, 0.0  ;;  %v6448_v5 = vmin.f32 %v5463_v42, 0.0 }
 0x4c9   : > { %3707 = vpow2.f32 %v2627_v52  ;;  %v2639_v52 = vmul.f32 1.442695, %v6433_v3  ;;  %v6440_v3 = vmin.f32 %v5451_v48, 0.0  ;;  %v2653_v45 = vmul.f32 1.442695, %v6452_v24 }
 0x4ca   : > { %3709 = vpow2.f32 %v2629_v17  ;;  %v2641_v17 = vmul.f32 1.442695, %v6436_v4  ;;  %v2649_v26 = vmul.f32 1.442695, %v6448_v5  ;;  %v6456_v5 = vld [vmem:[#allocation26_spill] sm:$0xff]  ;;  %v6460_v24 = vmin.f32 %v5491_v15, 0.0 }
 0x4cb   : > { %3711 = vpow2.f32 %v2631_v32  ;;  %v2643_v28 = vmul.f32 1.442695, %v6440_v3  ;;  %v6445_v32 = vmov %v5399_v34  ;;  %v6447_v3 = vmin.f32 %v5459_v35, 0.0 }
 0x4cc   : > { %3713 = vpow2.f32 %v2633_v0  ;;  %v6442_v0 = vld [vmem:[#allocation21_spill] sm:$0xff]  ;;  %vm2485_vm5 = vcmp.gt.f32.partialorder %v6445_v32, 0.0  ;;  %v6449_v34 = vmin.f32 %v5467_v51, 0.0  ;;  %vm2489_vm9 = vcmp.gt.f32.partialorder %v6456_v5, 0.0 }
 0x4cd   : > { %v3690_v18 = vpop.eup %3689  ;;  %3715 = vpow2.f32 %v2635_v49  ;;  %vm2484_vm4 = vcmp.gt.f32.partialorder %v6442_v0, 0.0  ;;  %v6446_v49 = vld [vmem:[#allocation23_spill] sm:$0xff]  ;;  %v2647_v62 = vmul.f32 1.442695, %v6447_v3  ;;  %v6455_v3 = vmin.f32 %v5479_v33, 0.0 }
 0x4ce   : > { %v3692_v16 = vpop.eup %3691  ;;  %3717 = vpow2.f32 %v2637_v12  ;;  %vm2486_vm6 = vcmp.gt.f32.partialorder %v6446_v49, 0.0  ;;  %v2651_v4 = vmul.f32 1.442695, %v6449_v34  ;;  %v6450_v12 = vld [vmem:[#allocation24_spill] sm:$0xff]  ;;  %v6458_v34 = vmin.f32 %v5483_v11, 0.0 }
 0x4cf   : > { %v3694_v9 = vpop.eup %3693  ;;  %3719 = vpow2.f32 %v2639_v52  ;;  %vm2487_vm7 = vcmp.gt.f32.partialorder %v6450_v12, 0.0  ;;  %v6454_v52 = vmin.f32 %v6453_v6, 0.0  ;;  %v2657_v53 = vmul.f32 1.442695, %v6455_v3  ;;  %v6462_v3 = vld [vmem:[#allocation29_spill] sm:$0xff] }
 0x4d0   : > { %v3696_v29 = vpop.eup %3695  ;;  %3721 = vpow2.f32 %v2641_v17  ;;  %v2659_v54 = vmul.f32 1.442695, %v6458_v34  ;;  %v6459_v17 = vmin.f32 %v5487_v56, 0.0  ;;  %v5742_v13 = vmul.f32 1.442695, %v6460_v24 }
 0x4d1   : > { %v2655_v60 = vmul.f32 1.442695, %v6454_v52  ;;  %v3698_v8 = vpop.eup %3697  ;;  %3723 = vpow2.f32 %v2643_v28  ;;  %vm2492_vm12 = vcmp.gt.f32.partialorder %v6462_v3, 0.0  ;;  %v6464_v28 = vmin.f32 %v5499_v63, 0.0 }
 0x4d2   : > { %v2661_v46 = vmul.f32 1.442695, %v6459_v17  ;;  %v3700_v52 = vpop.eup %3699  ;;  %3725 = vpow2.f32 %v2645_v58  ;;  %v6466_v17 = vmin.f32 %v6465_v10, 0.0  ;;  %v3210_v58 = vadd.f32 -1.0, %v3690_v18 }
 0x4d3   : > { %v5752_v34 = vmul.f32 1.442695, %v6464_v28  ;;  %v3702_v24 = vpop.eup %3701  ;;  %3727 = vpow2.f32 %v2647_v62  ;;  %v3211_v61 = vadd.f32 -1.0, %v3692_v16  ;;  %v3212_v28 = vadd.f32 -1.0, %v3694_v9 }
 0x4d4   : > { %v5756_v19 = vmul.f32 1.442695, %v6466_v17  ;;  %v3704_v41 = vpop.eup %3703  ;;  %3729 = vpow2.f32 %v2649_v26  ;;  %v3213_v63 = vadd.f32 -1.0, %v3696_v29  ;;  %v3214_v55 = vadd.f32 -1.0, %v3698_v8 }
 0x4d5   : > { %v3706_v10 = vpop.eup %3705  ;;  %3731 = vpow2.f32 %v2651_v4  ;;  %v3215_v17 = vadd.f32 -1.0, %v3700_v52  ;;  %v3216_v62 = vadd.f32 -1.0, %v3702_v24  ;;  %v3217_v15 = vadd.f32 -1.0, %v3704_v41 }
 0x4d6   : > { %v3708_v23 = vpop.eup %3707  ;;  %3733 = vpow2.f32 %v2653_v45  ;;  %v3218_v39 = vadd.f32 -1.0, %v3706_v10  ;;  %v2801_v26 = vsel %vm2481_vm1, %v5383_v25, %v3210_v58  ;;  %v2802_v8 = vsel %vm2482_vm2, %v6437_v50, %v3211_v61 }
 0x4d7   : > { %v3710_v18 = vpop.eup %3709  ;;  %3735 = vpow2.f32 %v2655_v60  ;;  %v3219_v16 = vadd.f32 -1.0, %v3708_v23  ;;  %v2803_v9 = vsel %vm2483_vm3, %v6441_v1, %v3212_v28  ;;  %v2804_v10 = vsel %vm2484_vm4, %v6442_v0, %v3213_v63  ;;  %2865 = vst [vmem:[%s5781_s20] sm:$0xff] %v2801_v26  ;;  %2866 = vst [vmem:[%s5781_s20 + $0x8] sm:$0xff] %v2802_v8 }
 0x4d8   : > { %v3712_v25 = vpop.eup %3711  ;;  %vm2498_vm1 = vcmp.gt.f32.partialorder %v5451_v48, 0.0  ;;  %3737 = vpow2.f32 %v2657_v53  ;;  %v3220_v61 = vadd.f32 -1.0, %v3710_v18  ;;  %v2805_v63 = vsel %vm2485_vm5, %v6445_v32, %v3214_v55  ;;  %2867 = vst [vmem:[%s5781_s20 + $0x10] sm:$0xff] %v2803_v9  ;;  %2868 = vst [vmem:[%s5781_s20 + $0x18] sm:$0xff] %v2804_v10 }
 0x4d9   : > { %v2806_v23 = vsel %vm2486_vm6, %v6446_v49, %v3215_v17  ;;  %v3714_v60 = vpop.eup %3713  ;;  %vm2499_vm2 = vcmp.gt.f32.partialorder %v5455_v44, 0.0  ;;  %3739 = vpow2.f32 %v2659_v54  ;;  %v3221_v45 = vadd.f32 -1.0, %v3712_v25  ;;  %2869 = vst [vmem:[%s5781_s20 + $0x20] sm:$0xff] %v2805_v63  ;;  %v6476_v25 = vld [vmem:[#allocation32_spill] sm:$0xff] }
 0x4da   : > { %v2807_v53 = vsel %vm2487_vm7, %v6450_v12, %v3216_v62  ;;  %v2808_v55 = vsel %vm2488_vm8, %v6451_v20, %v3217_v15  ;;  %2870 = vst [vmem:[%s5781_s20 + $0x28] sm:$0xff] %v2806_v23  ;;  %v3716_v1 = vpop.eup %3715  ;;  %vm2500_vm3 = vcmp.gt.f32.partialorder %v5459_v35, 0.0  ;;  %3741 = vpow2.f32 %v2661_v46 }
 0x4db   : > { %v3222_v29 = vadd.f32 -1.0, %v3714_v60  ;;  %v2809_v54 = vsel %vm2489_vm9, %v6456_v5, %v3218_v39  ;;  %v2810_v50 = vsel %vm2490_vm10, %v6457_v30, %v3219_v16  ;;  %2871 = vst [vmem:[%s5781_s20 + $0x30] sm:$0xff] %v2807_v53  ;;  %2872 = vst [vmem:[%s5781_s20 + $0x38] sm:$0xff] %v2808_v55  ;;  %v3718_v20 = vpop.eup %3717  ;;  %vm2501_vm4 = vcmp.gt.f32.partialorder %v5463_v42, 0.0  ;;  %v6479_v53 = vld [vmem:[#allocation33_spill] sm:$0xff] }
 0x4dc   : > { %3743 = vpow2.f32 %v5742_v13  ;;  %v3223_v15 = vadd.f32 -1.0, %v3716_v1  ;;  %v2811_v46 = vsel %vm2491_vm11, %v6461_v14, %v3220_v61  ;;  %v2812_v32 = vsel %vm2492_vm12, %v6462_v3, %v3221_v45  ;;  %2873 = vst [vmem:[%s5781_s20 + $0x40] sm:$0xff] %v2809_v54  ;;  %2874 = vst [vmem:[%s5781_s20 + $0x48] sm:$0xff] %v2810_v50  ;;  %v3720_v30 = vpop.eup %3719 }
 0x4dd   : > { %vm2502_vm5 = vcmp.gt.f32.partialorder %v5467_v51, 0.0  ;;  %3745 = vpow2.f32 %v5748_v59  ;;  %v6469_v0 = vmin.f32 %v5511_v40, 0.0  ;;  %v3224_v4 = vadd.f32 -1.0, %v3718_v20  ;;  %2875 = vst [vmem:[%s5781_s20 + $0x50] sm:$0xff] %v2811_v46  ;;  %2876 = vst [vmem:[%s5781_s20 + $0x58] sm:$0xff] %v2812_v32  ;;  %v3722_v49 = vpop.eup %3721  ;;  %v6482_v20 = vld [vmem:[#allocation34_spill] sm:$0xff] }
 0x4de   : > { %v2813_v14 = vsel %vm2493_vm13, %v6467_v7, %v3222_v29  ;;  %vm2503_vm6 = vcmp.gt.f32.partialorder %v5471_v37, 0.0  ;;  %3747 = vpow2.f32 %v5752_v34  ;;  %v6470_v12 = vmin.f32 %v5515_v47, 0.0  ;;  %v3724_v3 = vpop.eup %3723 }
 0x4df   : > { %v2673_v13 = vmul.f32 1.442695, %v6469_v0  ;;  %v3225_v59 = vadd.f32 -1.0, %v3720_v30  ;;  %v2814_v52 = vsel %vm2494_vm14, %v5435_v21, %v3223_v15  ;;  %2877 = vst [vmem:[%s5781_s20 + $0x60] sm:$0xff] %v2813_v14  ;;  %vm2504_vm7 = vcmp.gt.f32.partialorder %v6453_v6, 0.0  ;;  %v3726_v41 = vpop.eup %3725 }
 0x4e0   : > { %v2675_v5 = vmul.f32 1.442695, %v6470_v12  ;;  %3749 = vpow2.f32 %v5756_v19  ;;  %v6471_v7 = vmin.f32 %v5519_v43, 0.0  ;;  %v3226_v58 = vadd.f32 -1.0, %v3722_v49  ;;  %2878 = vst [vmem:[%s5781_s20 + $0x68] sm:$0xff] %v2814_v52  ;;  %v3728_v62 = vpop.eup %3727 }
 0x4e1   : > { %vm6472_vm8 = vcmp.gt.f32.partialorder %v5439_v36, 0.0  ;;  %vm2505_vm9 = vcmp.gt.f32.partialorder %v5479_v33, 0.0  ;;  %3751 = vpow2.f32 %v5761_v57  ;;  %v6473_v21 = vmin.f32 %v5523_v2, 0.0  ;;  %v3730_v8 = vpop.eup %3729 }
 0x4e2   : > { %v2677_v24 = vmul.f32 1.442695, %v6471_v7  ;;  %v2815_v34 = vsel %vm6472_vm8, %v5439_v36, %v3224_v4  ;;  %v3227_v17 = vadd.f32 -1.0, %v3724_v3  ;;  %v2816_v19 = vsel %vm2496_vm0, %v5443_v22, %v3225_v59  ;;  %v3732_v10 = vpop.eup %3731  ;;  %v6488_v59 = vld [vmem:[#allocation36_spill] sm:$0xff] }
 0x4e3   : > { %v2679_v28 = vmul.f32 1.442695, %v6473_v21  ;;  %2879 = vst [vmem:[%s5781_s20 + $0x70] sm:$0xff] %v2815_v34  ;;  %vm2506_vm10 = vcmp.gt.f32.partialorder %v5483_v11, 0.0  ;;  %3753 = vpow2.f32 %v2673_v13  ;;  %v6474_v36 = vmin.f32 %v5527_v31, 0.0  ;;  %2880 = vst [vmem:[%s5781_s20 + $0x78] sm:$0xff] %v2816_v19  ;;  %v3734_v45 = vpop.eup %3733 }
 0x4e4   : > { %v3228_v26 = vadd.f32 -1.0, %v3726_v41  ;;  %v2817_v57 = vsel %vm2497_vm15, %v5447_v38, %v3226_v58  ;;  %vm2507_vm11 = vcmp.gt.f32.partialorder %v5487_v56, 0.0  ;;  %3755 = vpow2.f32 %v2675_v5  ;;  %v6477_v38 = vld [vmem:[#allocation37_spill] sm:$0xff]  ;;  %v3736_v50 = vpop.eup %3735  ;;  %v6485_v13 = vld [vmem:[#allocation35_spill] sm:$0xff] }
 0x4e5   : > { %v2681_v39 = vmul.f32 1.442695, %v6474_v36  ;;  %v6475_v22 = vmin.f32 %v5531_v27, 0.0  ;;  %v3229_v16 = vadd.f32 -1.0, %v3728_v62  ;;  %v2818_v9 = vsel %vm2498_vm1, %v5451_v48, %v3227_v17  ;;  %2881 = vst [vmem:[%s5781_s20 + $0x80] sm:$0xff] %v2817_v57  ;;  %v6480_v48 = vld [vmem:[#allocation38_spill] sm:$0xff]  ;;  %v3738_v0 = vpop.eup %3737 }
 0x4e6   : > { %vm2508_vm12 = vcmp.gt.f32.partialorder %v6476_v25, 0.0  ;;  %3757 = vpow2.f32 %v2677_v24  ;;  %v6478_v61 = vmin.f32 %v6477_v38, 0.0  ;;  %v3230_v23 = vadd.f32 -1.0, %v3730_v8  ;;  %2882 = vst [vmem:[%s5781_s20 + $0x88] sm:$0xff] %v2818_v9  ;;  %v3740_v5 = vpop.eup %3739 }
 0x4e7   : > { %v2683_v18 = vmul.f32 1.442695, %v6475_v22  ;;  %v2819_v60 = vsel %vm2499_vm2, %v5455_v44, %v3228_v26  ;;  %vm2509_vm13 = vcmp.gt.f32.partialorder %v6479_v53, 0.0  ;;  %3759 = vpow2.f32 %v2679_v28  ;;  %v6483_v44 = vld [vmem:[#allocation39_spill] sm:$0xff]  ;;  %v3742_v58 = vpop.eup %3741 }
 0x4e8   : > { %v2685_v63 = vmul.f32 1.442695, %v6478_v61  ;;  %v6481_v55 = vmin.f32 %v6480_v48, 0.0  ;;  %v3231_v29 = vadd.f32 -1.0, %v3732_v10  ;;  %v2820_v54 = vsel %vm2500_vm3, %v5459_v35, %v3229_v16  ;;  %2883 = vst [vmem:[%s5781_s20 + $0x90] sm:$0xff] %v2819_v60  ;;  %v6486_v35 = vld [vmem:[#allocation40_spill] sm:$0xff] }
 0x4e9   : > { %vm2510_vm14 = vcmp.gt.f32.partialorder %v6482_v20, 0.0  ;;  %3761 = vpow2.f32 %v2681_v39  ;;  %v6484_v15 = vmin.f32 %v6483_v44, 0.0  ;;  %v3232_v32 = vadd.f32 -1.0, %v3734_v45  ;;  %2884 = vst [vmem:[%s5781_s20 + $0x98] sm:$0xff] %v2820_v54  ;;  %v3744_v17 = vpop.eup %3743 }
 0x4ea   : > { %v2687_v1 = vmul.f32 1.442695, %v6481_v55  ;;  %v2821_v30 = vsel %vm2501_vm4, %v5463_v42, %v3230_v23  ;;  %vm2511_vm15 = vcmp.gt.f32.partialorder %v6485_v13, 0.0  ;;  %3763 = vpow2.f32 %v2683_v18  ;;  %v6489_v42 = vld [vmem:[#allocation41_spill] sm:$0xff]  ;;  %v3746_v26 = vpop.eup %3745 }
 0x4eb   : > { %v2689_v46 = vmul.f32 1.442695, %v6484_v15  ;;  %v6487_v4 = vmin.f32 %v6486_v35, 0.0  ;;  %v3233_v49 = vadd.f32 -1.0, %v3736_v50  ;;  %v2822_v12 = vsel %vm2502_vm5, %v5467_v51, %v3231_v29  ;;  %2885 = vst [vmem:[%s5781_s20 + $0xa0] sm:$0xff] %v2821_v30  ;;  %v6491_v51 = vld [vmem:[#allocation42_spill] sm:$0xff]  ;;  %v3748_v16 = vpop.eup %3747 }
 0x4ec   : > { %vm2512_vm0 = vcmp.gt.f32.partialorder %v6488_v59, 0.0  ;;  %3765 = vpow2.f32 %v2685_v63  ;;  %v6490_v52 = vmin.f32 %v6489_v42, 0.0  ;;  %v3234_v7 = vadd.f32 -1.0, %v3738_v0  ;;  %2886 = vst [vmem:[%s5781_s20 + $0xa8] sm:$0xff] %v2822_v12 }
 0x4ed   : > { %v2691_v14 = vmul.f32 1.442695, %v6487_v4  ;;  %v2823_v24 = vsel %vm2503_vm6, %v5471_v37, %v3232_v32  ;;  %vm2513_vm1 = vcmp.gt.f32.partialorder %v5511_v40, 0.0  ;;  %3767 = vpow2.f32 %v2687_v1  ;;  %v6493_v37 = vld [vmem:[#allocation43_spill] sm:$0xff]  ;;  %v3750_v23 = vpop.eup %3749 }
 0x4ee   : > { %v2693_v3 = vmul.f32 1.442695, %v6490_v52  ;;  %v6492_v34 = vmin.f32 %v6491_v51, 0.0  ;;  %v3235_v21 = vadd.f32 -1.0, %v3740_v5  ;;  %v2824_v28 = vsel %vm2504_vm7, %v6453_v6, %v3233_v49  ;;  %2887 = vst [vmem:[%s5781_s20 + $0xb0] sm:$0xff] %v2823_v24  ;;  %v6495_v6 = vld [vmem:[#allocation44_spill] sm:$0xff]  ;;  %v3752_v29 = vpop.eup %3751 }
 0x4ef   : > { %vm2514_vm2 = vcmp.gt.f32.partialorder %v5515_v47, 0.0  ;;  %3769 = vpow2.f32 %v2689_v46  ;;  %v6494_v19 = vmin.f32 %v6493_v37, 0.0  ;;  %v3236_v36 = vadd.f32 -1.0, %v3742_v58  ;;  %2888 = vst [vmem:[%s5781_s20 + $0xb8] sm:$0xff] %v2824_v28 }
 0x4f0   : > { %v2695_v41 = vmul.f32 1.442695, %v6492_v34  ;;  %v2825_v39 = vsel %vm2505_vm9, %v5479_v33, %v3234_v7  ;;  %vm2515_vm3 = vcmp.gt.f32.partialorder %v5519_v43, 0.0  ;;  %3771 = vpow2.f32 %v2691_v14  ;;  %v6497_v33 = vld [vmem:[#allocation45_spill] sm:$0xff]  ;;  %v3754_v32 = vpop.eup %3753 }
 0x4f1   : > { %v2697_v62 = vmul.f32 1.442695, %v6494_v19  ;;  %v6496_v57 = vmin.f32 %v6495_v6, 0.0  ;;  %v3237_v22 = vadd.f32 -1.0, %v3744_v17  ;;  %v2826_v18 = vsel %vm2506_vm10, %v5483_v11, %v3235_v21  ;;  %2889 = vst [vmem:[%s5781_s20 + $0xc0] sm:$0xff] %v2825_v39  ;;  %v6499_v11 = vld [vmem:[#allocation46_spill] sm:$0xff]  ;;  %v3756_v49 = vpop.eup %3755 }
 0x4f2   : > { %vm2516_vm4 = vcmp.gt.f32.partialorder %v5523_v2, 0.0  ;;  %3773 = vpow2.f32 %v2693_v3  ;;  %v6498_v9 = vmin.f32 %v6497_v33, 0.0  ;;  %v3238_v61 = vadd.f32 -1.0, %v3746_v26  ;;  %2890 = vst [vmem:[%s5781_s20 + $0xc8] sm:$0xff] %v2826_v18 }
 0x4f3   : > { %v2699_v8 = vmul.f32 1.442695, %v6496_v57  ;;  %v2827_v63 = vsel %vm2507_vm11, %v5487_v56, %v3236_v36  ;;  %vm2517_vm5 = vcmp.gt.f32.partialorder %v5527_v31, 0.0  ;;  %3775 = vpow2.f32 %v2695_v41  ;;  %v6501_v56 = vld [vmem:[#allocation47_spill] sm:$0xff]  ;;  %v3758_v7 = vpop.eup %3757 }
 0x4f4   : > { %v2701_v10 = vmul.f32 1.442695, %v6498_v9  ;;  %v6500_v60 = vmin.f32 %v6499_v11, 0.0  ;;  %v3239_v55 = vadd.f32 -1.0, %v3748_v16  ;;  %v2828_v1 = vsel %vm2508_vm12, %v6476_v25, %v3237_v22  ;;  %2891 = vst [vmem:[%s5781_s20 + $0xd0] sm:$0xff] %v2827_v63  ;;  %v6503_v25 = vld [vmem:[#allocation12_spill] sm:$0xff]  ;;  %v3760_v21 = vpop.eup %3759 }
 0x4f5   : > { %vm2518_vm6 = vcmp.gt.f32.partialorder %v5531_v27, 0.0  ;;  %3777 = vpow2.f32 %v2697_v62  ;;  %v6502_v54 = vmin.f32 %v6501_v56, 0.0  ;;  %v3240_v15 = vadd.f32 -1.0, %v3750_v23  ;;  %2892 = vst [vmem:[%s5781_s20 + $0xd8] sm:$0xff] %v2828_v1  ;;  %v6517_v1 = vld [vmem:[#allocation48_spill] sm:$0xff] }
 0x4f6   : > { %v2703_v45 = vmul.f32 1.442695, %v6500_v60  ;;  %v2829_v46 = vsel %vm2509_vm13, %v6479_v53, %v3238_v61  ;;  %vm2519_vm7 = vcmp.gt.f32.partialorder %v6477_v38, 0.0  ;;  %3779 = vpow2.f32 %v2699_v8  ;;  %v6505_v53 = vld [vmem:[#allocation13_spill] sm:$0xff]  ;;  %v3762_v36 = vpop.eup %3761 }
 0x4f7   : > { %v2705_v50 = vmul.f32 1.442695, %v6502_v54  ;;  %v6504_v30 = vmin.f32 %v6503_v25, 0.0  ;;  %v3241_v4 = vadd.f32 -1.0, %v3752_v29  ;;  %v2830_v14 = vsel %vm2510_vm14, %v6482_v20, %v3239_v55  ;;  %2893 = vst [vmem:[%s5781_s20 + $0xe0] sm:$0xff] %v2829_v46  ;;  %v6507_v20 = vld [vmem:[#allocation14_spill] sm:$0xff]  ;;  %v3764_v22 = vpop.eup %3763 }
 0x4f8   : > { %vm2520_vm8 = vcmp.gt.f32.partialorder %v6480_v48, 0.0  ;;  %3781 = vpow2.f32 %v2701_v10  ;;  %v6506_v12 = vmin.f32 %v6505_v53, 0.0  ;;  %v3242_v52 = vadd.f32 -1.0, %v3754_v32  ;;  %2894 = vst [vmem:[%s5781_s20 + $0xe8] sm:$0xff] %v2830_v14  ;;  %v6519_v46 = vld [vmem:[#allocation49_spill] sm:$0xff]  ;;  %v6521_v14 = vld [vmem:[#allocation50_spill] sm:$0xff] }
 0x4f9   : > { %v2707_v0 = vmul.f32 1.442695, %v6504_v30  ;;  %v2831_v3 = vsel %vm2511_vm15, %v6485_v13, %v3240_v15  ;;  %vm2521_vm9 = vcmp.gt.f32.partialorder %v6483_v44, 0.0  ;;  %3783 = vpow2.f32 %v2703_v45  ;;  %v6509_v13 = vld [vmem:[#allocation15_spill] sm:$0xff]  ;;  %v3766_v61 = vpop.eup %3765 }
 0x4fa   : > { %v2709_v5 = vmul.f32 1.442695, %v6506_v12  ;;  %v6508_v24 = vmin.f32 %v6507_v20, 0.0  ;;  %v3243_v34 = vadd.f32 -1.0, %v3756_v49  ;;  %v2832_v41 = vsel %vm2512_vm0, %v6488_v59, %v3241_v4  ;;  %2895 = vst [vmem:[%s5781_s20 + $0xf0] sm:$0xff] %v2831_v3  ;;  %v6511_v59 = vld [vmem:[#allocation16_spill] sm:$0xff]  ;;  %v3768_v55 = vpop.eup %3767 }
 0x4fb   : > { %vm2522_vm10 = vcmp.gt.f32.partialorder %v6486_v35, 0.0  ;;  %3785 = vpow2.f32 %v2705_v50  ;;  %v6510_v28 = vmin.f32 %v6509_v13, 0.0  ;;  %v3244_v19 = vadd.f32 -1.0, %v3758_v7  ;;  %2896 = vst [vmem:[%s5781_s20 + $0xf8] sm:$0xff] %v2832_v41  ;;  %v6523_v3 = vld [vmem:[#allocation51_spill] sm:$0xff]  ;;  %v6525_v41 = vld [vmem:[#allocation52_spill] sm:$0xff] }
 0x4fc   : > { %v2711_v58 = vmul.f32 1.442695, %v6508_v24  ;;  %v2833_v62 = vsel %vm2513_vm1, %v5511_v40, %v3242_v52  ;;  %vm2523_vm11 = vcmp.gt.f32.partialorder %v6489_v42, 0.0  ;;  %3787 = vpow2.f32 %v2707_v0  ;;  %v6513_v40 = vld [vmem:[#allocation17_spill] sm:$0xff]  ;;  %v3770_v15 = vpop.eup %3769 }
 0x4fd   : > { %v2713_v17 = vmul.f32 1.442695, %v6510_v28  ;;  %v6512_v39 = vmin.f32 %v6511_v59, 0.0  ;;  %v3245_v57 = vadd.f32 -1.0, %v3760_v21  ;;  %v2834_v8 = vsel %vm2514_vm2, %v5515_v47, %v3243_v34  ;;  %2897 = vst [vmem:[%s5781_s20 + $0x100] sm:$0xff] %v2833_v62  ;;  %v6515_v47 = vld [vmem:[#allocation18_spill] sm:$0xff]  ;;  %v3772_v4 = vpop.eup %3771 }
 0x4fe   : > { %vm2524_vm12 = vcmp.gt.f32.partialorder %v6491_v51, 0.0  ;;  %3789 = vpow2.f32 %v2709_v5  ;;  %v6514_v18 = vmin.f32 %v6513_v40, 0.0  ;;  %v3246_v9 = vadd.f32 -1.0, %v3762_v36  ;;  %2898 = vst [vmem:[%s5781_s20 + $0x108] sm:$0xff] %v2834_v8  ;;  %v6527_v62 = vld [vmem:[#allocation53_spill] sm:$0xff]  ;;  %v6529_v8 = vld [vmem:[#allocation54_spill] sm:$0xff] }
 0x4ff   : > { %v2715_v26 = vmul.f32 1.442695, %v6512_v39  ;;  %v2835_v10 = vsel %vm2515_vm3, %v5519_v43, %v3244_v19  ;;  %vm2525_vm13 = vcmp.gt.f32.partialorder %v6493_v37, 0.0  ;;  %3791 = vpow2.f32 %v2711_v58  ;;  %v3774_v52 = vpop.eup %3773 }
 0x500   : > { %v2717_v16 = vmul.f32 1.442695, %v6514_v18  ;;  %v6516_v63 = vmin.f32 %v6515_v47, 0.0  ;;  %v3247_v60 = vadd.f32 -1.0, %v3764_v22  ;;  %v2836_v45 = vsel %vm2516_vm4, %v5523_v2, %v3245_v57  ;;  %2899 = vst [vmem:[%s5781_s20 + $0x110] sm:$0xff] %v2835_v10  ;;  %v3776_v34 = vpop.eup %3775  ;;  %v6531_v10 = vld [vmem:[#allocation55_spill] sm:$0xff] }
 0x501   : > { %3793 = vpow2.f32 %v2713_v17  ;;  %v6518_v29 = vmin.f32 %v6517_v1, 0.0  ;;  %v3248_v54 = vadd.f32 -1.0, %v3766_v61  ;;  %v2837_v50 = vsel %vm2517_vm5, %v5527_v31, %v3246_v9  ;;  %2900 = vst [vmem:[%s5781_s20 + $0x118] sm:$0xff] %v2836_v45 }
 0x502   : > { %v2719_v23 = vmul.f32 1.442695, %v6516_v63  ;;  %3795 = vpow2.f32 %v2715_v26  ;;  %v6520_v32 = vmin.f32 %v6519_v46, 0.0  ;;  %v3249_v2 = vadd.f32 -1.0, %v3768_v55  ;;  %2901 = vst [vmem:[%s5781_s20 + $0x120] sm:$0xff] %v2837_v50  ;;  %v3778_v19 = vpop.eup %3777 }
 0x503   : > { %v2721_v43 = vmul.f32 1.442695, %v6518_v29  ;;  %v2838_v0 = vsel %vm2518_vm6, %v5531_v27, %v3247_v60  ;;  %3797 = vpow2.f32 %v2717_v16  ;;  %v6522_v49 = vmin.f32 %v6521_v14, 0.0  ;;  %v3780_v57 = vpop.eup %3779 }
 0x504   : > { %v2723_v30 = vmul.f32 1.442695, %v6520_v32  ;;  %v3250_v31 = vadd.f32 -1.0, %v3770_v15  ;;  %v2839_v5 = vsel %vm2519_vm7, %v6477_v38, %v3248_v54  ;;  %2902 = vst [vmem:[%s5781_s20 + $0x128] sm:$0xff] %v2838_v0  ;;  %3799 = vpow2.f32 %v2719_v23 }
 0x505   : > { %v2725_v12 = vmul.f32 1.442695, %v6522_v49  ;;  %v6524_v7 = vmin.f32 %v6523_v3, 0.0  ;;  %v3251_v27 = vadd.f32 -1.0, %v3772_v4  ;;  %v2840_v58 = vsel %vm2520_vm8, %v6480_v48, %v3249_v2  ;;  %2903 = vst [vmem:[%s5781_s20 + $0x130] sm:$0xff] %v2839_v5  ;;  %v3782_v9 = vpop.eup %3781 }
 0x506   : > { %3801 = vpow2.f32 %v2721_v43  ;;  %v6526_v21 = vmin.f32 %v6525_v41, 0.0  ;;  %v3252_v38 = vadd.f32 -1.0, %v3774_v52  ;;  %v2841_v17 = vsel %vm2521_vm9, %v6483_v44, %v3250_v31  ;;  %2904 = vst [vmem:[%s5781_s20 + $0x138] sm:$0xff] %v2840_v58  ;;  %v3784_v60 = vpop.eup %3783 }
 0x507   : > { %v2727_v24 = vmul.f32 1.442695, %v6524_v7  ;;  %3803 = vpow2.f32 %v2723_v30  ;;  %v6528_v36 = vmin.f32 %v6527_v62, 0.0  ;;  %v3253_v48 = vadd.f32 -1.0, %v3776_v34  ;;  %2905 = vst [vmem:[%s5781_s20 + $0x140] sm:$0xff] %v2841_v17 }
 0x508   : > { %v2729_v28 = vmul.f32 1.442695, %v6526_v21  ;;  %v2842_v26 = vsel %vm2522_vm10, %v6486_v35, %v3251_v27  ;;  %3805 = vpow2.f32 %v2725_v12  ;;  %v6530_v22 = vmin.f32 %v6529_v8, 0.0  ;;  %v3786_v55 = vpop.eup %3785 }
 0x509   : > { %v2731_v39 = vmul.f32 1.442695, %v6528_v36  ;;  %v3254_v44 = vadd.f32 -1.0, %v3778_v19  ;;  %v2843_v16 = vsel %vm2523_vm11, %v6489_v42, %v3252_v38  ;;  %2906 = vst [vmem:[%s5781_s20 + $0x148] sm:$0xff] %v2842_v26  ;;  %3807 = vpow2.f32 %v2727_v24  ;;  %v3788_v43 = vpop.eup %3787 }
 0x50a   : > { %v2733_v18 = vmul.f32 1.442695, %v6530_v22  ;;  %v6532_v61 = vmin.f32 %v6531_v10, 0.0  ;;  %v3255_v35 = vadd.f32 -1.0, %v3780_v57  ;;  %v2844_v23 = vsel %vm2524_vm12, %v6491_v51, %v3253_v48  ;;  %2907 = vst [vmem:[%s5781_s20 + $0x150] sm:$0xff] %v2843_v16 }
 0x50b   : > { %vm2526_vm14 = vcmp.gt.f32.partialorder %v6495_v6, 0.0  ;;  %3809 = vpow2.f32 %v2729_v28  ;;  %v3256_v45 = vadd.f32 -1.0, %v3782_v9  ;;  %v2845_v42 = vsel %vm2525_vm13, %v6493_v37, %v3254_v44  ;;  %2908 = vst [vmem:[%s5781_s20 + $0x158] sm:$0xff] %v2844_v23  ;;  %v3790_v37 = vpop.eup %3789 }
 0x50c   : > { %v2735_v63 = vmul.f32 1.442695, %v6532_v61  ;;  %vm2527_vm15 = vcmp.gt.f32.partialorder %v6497_v33, 0.0  ;;  %3811 = vpow2.f32 %v2731_v39  ;;  %v3257_v29 = vadd.f32 -1.0, %v3784_v60  ;;  %2909 = vst [vmem:[%s5781_s20 + $0x160] sm:$0xff] %v2845_v42 }
 0x50d   : > { %v2846_v51 = vsel %vm2526_vm14, %v6495_v6, %v3255_v35  ;;  %vm2528_vm0 = vcmp.gt.f32.partialorder %v6499_v11, 0.0  ;;  %3813 = vpow2.f32 %v2733_v18  ;;  %v3258_v54 = vadd.f32 -1.0, %v3786_v55  ;;  %v3792_v6 = vpop.eup %3791 }
 0x50e   : > { %v2847_v50 = vsel %vm2527_vm15, %v6497_v33, %v3256_v45  ;;  %2910 = vst [vmem:[%s5781_s20 + $0x168] sm:$0xff] %v2846_v51  ;;  %vm2529_vm1 = vcmp.gt.f32.partialorder %v6501_v56, 0.0  ;;  %3815 = vpow2.f32 %v2735_v63  ;;  %v3259_v15 = vadd.f32 -1.0, %v3788_v43  ;;  %v3794_v33 = vpop.eup %3793 }
 0x50f   : > { %v2848_v32 = vsel %vm2528_vm0, %v6499_v11, %v3257_v29  ;;  %2911 = vst [vmem:[%s5781_s20 + $0x170] sm:$0xff] %v2847_v50  ;;  %vm2530_vm2 = vcmp.gt.f32.partialorder %v6503_v25, 0.0  ;;  %v3260_v30 = vadd.f32 -1.0, %v3790_v37  ;;  %v2849_v2 = vsel %vm2529_vm1, %v6501_v56, %v3258_v54  ;;  %v3796_v49 = vpop.eup %3795 }
 0x510   : > { %2912 = vst [vmem:[%s5781_s20 + $0x178] sm:$0xff] %v2848_v32  ;;  %vm2531_vm3 = vcmp.gt.f32.partialorder %v6505_v53, 0.0  ;;  %v3261_v0 = vadd.f32 -1.0, %v3792_v6  ;;  %v2850_v4 = vsel %vm2530_vm2, %v6503_v25, %v3259_v15  ;;  %2913 = vst [vmem:[%s5781_s20 + $0x180] sm:$0xff] %v2849_v2  ;;  %vm2532_vm4 = vcmp.gt.f32.partialorder %v6507_v20, 0.0  ;;  %v3798_v31 = vpop.eup %3797 }
 0x511   : > { %v3262_v11 = vadd.f32 -1.0, %v3794_v33  ;;  %v2851_v12 = vsel %vm2531_vm3, %v6505_v53, %v3260_v30  ;;  %2914 = vst [vmem:[%s5781_s20 + $0x188] sm:$0xff] %v2850_v4  ;;  %vm2533_vm5 = vcmp.gt.f32.partialorder %v6509_v13, 0.0  ;;  %v3263_v56 = vadd.f32 -1.0, %v3796_v49  ;;  %v3800_v52 = vpop.eup %3799 }
 0x512   : > { %v2852_v5 = vsel %vm2532_vm4, %v6507_v20, %v3261_v0  ;;  %2915 = vst [vmem:[%s5781_s20 + $0x190] sm:$0xff] %v2851_v12  ;;  %vm2534_vm6 = vcmp.gt.f32.partialorder %v6511_v59, 0.0  ;;  %v3264_v25 = vadd.f32 -1.0, %v3798_v31  ;;  %vm2535_vm7 = vcmp.gt.f32.partialorder %v6513_v40, 0.0 }
 0x513   : > { %v2853_v7 = vsel %vm2533_vm5, %v6509_v13, %v3262_v11  ;;  %2916 = vst [vmem:[%s5781_s20 + $0x198] sm:$0xff] %v2852_v5  ;;  %v3802_v24 = vpop.eup %3801  ;;  %v3265_v53 = vadd.f32 -1.0, %v3800_v52  ;;  %v2854_v27 = vsel %vm2534_vm6, %v6511_v59, %v3263_v56  ;;  %vm2536_vm8 = vcmp.gt.f32.partialorder %v6515_v47, 0.0 }
 0x514   : > { %2917 = vst [vmem:[%s5781_s20 + $0x1a0] sm:$0xff] %v2853_v7  ;;  %v3804_v58 = vpop.eup %3803  ;;  %v3266_v20 = vadd.f32 -1.0, %v3802_v24  ;;  %v2855_v34 = vsel %vm2535_vm7, %v6513_v40, %v3264_v25  ;;  %2918 = vst [vmem:[%s5781_s20 + $0x1a8] sm:$0xff] %v2854_v27  ;;  %vm2537_vm9 = vcmp.gt.f32.partialorder %v6517_v1, 0.0  ;;  %vm2538_vm10 = vcmp.gt.f32.partialorder %v6519_v46, 0.0 }
 0x515   : > { %v3806_v21 = vpop.eup %3805  ;;  %v3267_v13 = vadd.f32 -1.0, %v3804_v58  ;;  %v2856_v28 = vsel %vm2536_vm8, %v6515_v47, %v3265_v53  ;;  %2919 = vst [vmem:[%s5781_s20 + $0x1b0] sm:$0xff] %v2855_v34  ;;  %vm2539_vm11 = vcmp.gt.f32.partialorder %v6521_v14, 0.0  ;;  %vm2540_vm12 = vcmp.gt.f32.partialorder %v6523_v3, 0.0 }
 0x516   : > { %v3808_v59 = vpop.eup %3807  ;;  %v3268_v38 = vadd.f32 -1.0, %v3806_v21  ;;  %v2857_v17 = vsel %vm2537_vm9, %v6517_v1, %v3266_v20  ;;  %2920 = vst [vmem:[%s5781_s20 + $0x1b8] sm:$0xff] %v2856_v28  ;;  %vm2541_vm13 = vcmp.gt.f32.partialorder %v6525_v41, 0.0  ;;  %vm2542_vm14 = vcmp.gt.f32.partialorder %v6527_v62, 0.0 }
 0x517   : > { %v3269_v19 = vadd.f32 -1.0, %v3808_v59  ;;  %v2858_v36 = vsel %vm2538_vm10, %v6519_v46, %v3267_v13  ;;  %2921 = vst [vmem:[%s5781_s20 + $0x1c0] sm:$0xff] %v2857_v17  ;;  %vm2543_vm15 = vcmp.gt.f32.partialorder %v6529_v8, 0.0  ;;  %vm2544_vm0 = vcmp.gt.f32.partialorder %v6531_v10, 0.0 }
 0x518   : > { %v3810_v40 = vpop.eup %3809  ;;  %v2859_v48 = vsel %vm2539_vm11, %v6521_v14, %v3268_v38  ;;  %2922 = vst [vmem:[%s5781_s20 + $0x1c8] sm:$0xff] %v2858_v36 }
 0x519   : > { %v3812_v47 = vpop.eup %3811  ;;  %v3270_v39 = vadd.f32 -1.0, %v3810_v40  ;;  %v2860_v57 = vsel %vm2540_vm12, %v6523_v3, %v3269_v19  ;;  %2923 = vst [vmem:[%s5781_s20 + $0x1d0] sm:$0xff] %v2859_v48 }
 0x51a   : > { %v3814_v1 = vpop.eup %3813  ;;  %v3271_v26 = vadd.f32 -1.0, %v3812_v47  ;;  %2924 = vst [vmem:[%s5781_s20 + $0x1d8] sm:$0xff] %v2860_v57 }
 0x51b   : > { %v3816_v46 = vpop.eup %3815  ;;  %v3272_v22 = vadd.f32 -1.0, %v3814_v1  ;;  %v2861_v14 = vsel %vm2541_vm13, %v6525_v41, %v3270_v39 }
 0x51c   : > { %v3273_v18 = vadd.f32 -1.0, %v3816_v46  ;;  %v2862_v44 = vsel %vm2542_vm14, %v6527_v62, %v3271_v26  ;;  %2925 = vst [vmem:[%s5781_s20 + $0x1e0] sm:$0xff] %v2861_v14 }
 0x51d   : > { %v2863_v3 = vsel %vm2543_vm15, %v6529_v8, %v3272_v22  ;;  %2926 = vst [vmem:[%s5781_s20 + $0x1e8] sm:$0xff] %v2862_v44 }
 0x51e   : > { %v2864_v41 = vsel %vm2544_vm0, %v6531_v10, %v3273_v18  ;;  %2927 = vst [vmem:[%s5781_s20 + $0x1f0] sm:$0xff] %v2863_v3 }
 0x51f   : > { %2928 = vst [vmem:[%s5781_s20 + $0x1f8] sm:$0xff] %v2864_v41 }
 0x520   : > { %3911 = shalt.err (!%p3908_p9)
}
 0x521   : > { %s3912_s19 = scalar_lea.hbm %s6104_s8, 8192  ;;  %s3916_s30 = scalar_lea.hbm %s6161_s6, 16384 }
 0x522   : > { %p3913_p13 = scmp.ne.s32.totalorder %s6104_s8, %s3912_s19  ;;  %p3917_p4 = scmp.lt.s32.totalorder %s6104_s8, %s6161_s6 }
 0x523   : > { %p3918_p8 = scmp.lt.s32.totalorder %s3916_s30, %s3912_s19 }
 0x524   : > { %p3914_p5 = pnand %p3913_p13, %p6533_p10 }
 0x525   : > { %p3919_p7 = por %p3918_p8, %p3917_p4 }
 0x526   : > { %p3915_p0 = pneg %p3914_p5 }
 0x528   : > { %p3920_p11 = pnand %p3919_p7, %p3915_p0 }
 0x52a   : > { %3923 = shalt.err (!%p3920_p11)
}
 0x52b   : > { %s3981_s25 = smov 128   ;;  %s3982_s13 = smov 8  }
 0x52c   : > { %3395 = dma.vmem_to_hbm [thread:$0]  (%p6533_p10), %s6106_s10, 8192, %s6104_s8, %s2930_s27, %s3981_s25, %s3981_s25, %s3982_s13  }
 0x52d PF: > { %s2958_s29 = sand.u32 1, %s3954_s21   ;;  %p6534_p1 = scmp.ne.s32.totalorder %s6281_s28, 0 }
 0x52e   : > { %p6535_p2 = scmp.ge.s32.totalorder %s3966_s24, 2  ;;  %s2959_s15 = scalar_lea.sflag [#allocation4], %s2958_s29 }
 0x530   : > { %p3409_p6 = pnand %p6535_p2, %p6534_p1 }
 0x532   : > { %p3410_p12 = pneg %p3409_p6 }
 0x534   : > { %3949 = dma.done.wait (%p3410_p12), %s2959_s15, 8192  }
 0x535   : > { %3951 = vsyncadd (%p3410_p12), %s2959_s15, 4294959104  ;;  %p20_p3 = scmp.ge.s32.totalorder %s4090_s26, 4   ;;  %s6536_s21 = smov %s3958_s22 }
 0x536   : > { %s6537_s22 = smov %s3962_s23  ;;  %s6538_s23 = smov %s4099_s9 }
 0x537   : > { %s6539_s24 = smov %s4090_s26  ;;  %22 = sbr.rel (!%p20_p3) target bundleno = 6 (0x6), region = 97 }
 0x53c   :  { %2964 = vsyncpa [#allocation3], 1 }
 0x53d   :  { %2966 = vsyncpa [#allocation3 + $0x1], 1 }
 0x53e   :  { %2967 = vsyncpa [#allocation6], 1 }
 0x53f   :  { %2968 = vsyncpa [#allocation4], 1 }
 0x540   :  { %2970 = vsyncpa [#allocation4 + $0x1], 1 }

</bundles_post_ra>
